<compile_context>
chip_gen: v5e
topology: v5e:2x2
jax: 0.10.0
libtpu: 0.0.40
codegen_flags: <defaults>
</compile_context>

<pallas_src>
import functools

import jax
import jax.numpy as jnp
from jax.experimental import pallas as pl
from jax.experimental.pallas import tpu as pltpu


_OFFSETS = tuple((dy, dx) for dy in (-1, 0, 1) for dx in (-1, 0, 1))
_MASK_IDX = {off: i for i, off in enumerate(o for o in _OFFSETS if o != (0, 0))}


def _norm_act_conv_kernel(x_ref, masks_ref, pool_ref, gamma_ref, beta_ref,
                          w_ref, bias_ref, o_ref, *scratch,
                          W, NB, eps, fuse_k):
    C, HW = x_ref.shape[1], x_ref.shape[2]
    Cout = o_ref.shape[1]
    cdtype = w_ref.dtype
    patches_ref = scratch[0] if fuse_k else None

    # ---- GroupNorm statistics for all NB images fused into ONE small MXU
    # matmul: pool (C,C) @ [s1_0 | s2_0 | s1_1 | s2_1 | ...]  -> (C, 2*NB).
    lane = jax.lax.broadcasted_iota(jnp.int32, (1, 2 * NB), 1)
    sums = jnp.zeros((C, 2 * NB), jnp.float32)
    for n in range(NB):
        xf = x_ref[n].astype(jnp.float32)                       # (C, HW)
        s1 = jnp.sum(xf, axis=1, keepdims=True)                 # (C, 1)
        s2 = jnp.sum(xf * xf, axis=1, keepdims=True)            # (C, 1)
        sums = (sums + jnp.where(lane == 2 * n, s1, 0.0)
                + jnp.where(lane == 2 * n + 1, s2, 0.0))
    stats = jnp.dot(pool_ref[...], sums, preferred_element_type=jnp.float32)

    gamma = gamma_ref[...]          # (C, 1)    f32
    beta = beta_ref[...]            # (C, 1)    f32
    bias = bias_ref[...]            # (Cout, 1) f32

    for n in range(NB):
        # Per-image group mean / E[x^2] (extracted from the fused stats matrix).
        mean = jnp.sum(jnp.where(lane == 2 * n, stats, 0.0), axis=1, keepdims=True)
        ex2 = jnp.sum(jnp.where(lane == 2 * n + 1, stats, 0.0), axis=1, keepdims=True)
        var = jnp.maximum(ex2 - mean * mean, 0.0)
        inv = jax.lax.rsqrt(var + eps)

        xf = x_ref[n].astype(jnp.float32)
        xn = (xf - mean) * (inv * gamma) + beta
        # SiLU: exp goes to the EUP; explicit reciprocal for the logistic.
        a = (xn * pl.reciprocal(1.0 + jnp.exp(-xn), approx=False)).astype(cdtype)

        if not fuse_k:
            acc = jnp.zeros((Cout, HW), jnp.float32)

        for t, (dy, dx) in enumerate(_OFFSETS):
            s = dy * W + dx
            if s == 0:
                tap = a
            else:
                # tap[:, r] = a[:, r + s]; wrap-around rows/cols (image edges)
                # are zeroed by the precomputed per-image boundary mask.
                tap = pltpu.roll(a, shift=(-s) % HW, axis=1)
                tap = tap * masks_ref[pl.ds(_MASK_IDX[(dy, dx)], 1), :]
            if fuse_k:
                # Sublane offset t*C (C % 8 == 0) and lane offset n*HW
                # (HW % 128 == 0 whenever NB > 1) keep these stores aligned.
                if NB == 1:
                    patches_ref[pl.ds(t * C, C), :] = tap
                else:
                    patches_ref[pl.ds(t * C, C), pl.ds(n * HW, HW)] = tap
            else:
                acc = acc + jnp.dot(w_ref[t], tap,
                                    preferred_element_type=jnp.float32)

        if not fuse_k:
            o_ref[n] = (acc + bias).astype(o_ref.dtype)

    if fuse_k:
        # Conv as a single MXU matmul, K = 9*C, N = NB*HW (lane-dense output).
        acc = jnp.dot(w_ref[...], patches_ref[...],
                      preferred_element_type=jnp.float32) + bias    # (Cout, NB*HW)
        for n in range(NB):
            o_ref[n] = acc[:, n * HW:(n + 1) * HW].astype(o_ref.dtype)


def _const_index_map(ndim):
    zeros = (0,) * ndim
    return lambda g: zeros


def norm_act_conv(x_nchw, gamma, beta, weight, bias, num_groups, eps=1e-5,
                  conv_dtype=None, force_accumulate=False):
    """x_nchw: (N, C, H, W); weight: (Cout, Cin, 3, 3) (PyTorch conventions)."""
    N, C, H, W = x_nchw.shape
    Cout, Cin, kH, kW = weight.shape
    assert Cin == C and kH == 3 and kW == 3
    assert C % num_groups == 0
    assert C % 8 == 0, "channel count must be a multiple of the sublane tile"
    HW = H * W
    Cg = C // num_groups
    cdtype = x_nchw.dtype if conv_dtype is None else jnp.dtype(conv_dtype)
    itemsize = jnp.dtype(cdtype).itemsize

    # ---- Images per grid step (lane batching): widens the conv matmul N dim
    # and amortizes per-step overhead.  Only when per-image lane slices stay
    # 128-aligned.
    NB = 1
    if HW % 128 == 0:
        for cand in (8, 4, 2):
            if (N % cand == 0 and cand * HW <= 4096
                    and cand * C * HW * itemsize <= (2 << 20)):
                NB = cand
                break

    # ---- im2col strategy: single K=9C matmul from a VMEM scratch when the
    # patches buffer is small; otherwise 9 accumulated matmuls, no patches
    # buffer (bounded VMEM for large C*H*W, e.g. on v7x).
    patches_bytes = 9 * C * NB * HW * itemsize
    fuse_k = (not force_accumulate) and patches_bytes <= (8 << 20)

    # NCHW -> (N, C, H*W): free reshape, channels stay major (no transpose).
    x = x_nchw.reshape(N, C, HW)

    if fuse_k:
        # row co, column (ky*3 + kx)*C + ci  == weight[co, ci, ky, kx]
        w_oper = jnp.transpose(weight, (0, 2, 3, 1)).reshape(Cout, 9 * C).astype(cdtype)
    else:
        # tap-major: w_oper[ky*3 + kx, co, ci] == weight[co, ci, ky, kx]
        w_oper = jnp.transpose(weight, (2, 3, 0, 1)).reshape(9, Cout, C).astype(cdtype)

    # Per-image boundary masks for the 8 non-center taps, precomputed once in
    # the wrapper (no in-kernel iota / integer div / mod / compares).
    r = jnp.arange(HW, dtype=jnp.int32)
    hh, ww = r // W, r % W
    mask_rows = []
    for dy in (-1, 0, 1):
        for dx in (-1, 0, 1):
            if dy == 0 and dx == 0:
                continue
            mask_rows.append((hh + dy >= 0) & (hh + dy < H)
                             & (ww + dx >= 0) & (ww + dx < W))
    masks = jnp.stack(mask_rows).astype(cdtype)                  # (8, HW)

    # Symmetric group-averaging matrix: pool[i, j] = 1/(HW*Cg) iff same group.
    grp = jnp.arange(C, dtype=jnp.int32) // Cg
    pool = (grp[:, None] == grp[None, :]).astype(jnp.float32) / float(HW * Cg)

    gamma2 = gamma.reshape(C, 1).astype(jnp.float32)
    beta2 = beta.reshape(C, 1).astype(jnp.float32)
    bias2 = bias.reshape(Cout, 1).astype(jnp.float32)

    scratch_shapes = [pltpu.VMEM((9 * C, NB * HW), cdtype)] if fuse_k else []

    # VMEM budget derived from actual block sizes (x/out double-buffered,
    # invariants single-buffered, optional patches scratch) + headroom; never
    # request the full physical VMEM (v7x has only 64 MiB per TensorCore).
    x_itemsize = x.dtype.itemsize
    block_bytes = (
        2 * NB * C * HW * x_itemsize
        + 2 * NB * Cout * HW * x_itemsize
        + 8 * HW * itemsize
        + (C * C + 2 * C + Cout) * 4
        + int(w_oper.size) * itemsize
        + (patches_bytes if fuse_k else 0)
    )
    vmem_limit = int(min(max(32 << 20, int(1.5 * block_bytes) + (8 << 20)), 100 << 20))

    kernel = functools.partial(_norm_act_conv_kernel,
                               W=W, NB=NB, eps=float(eps), fuse_k=fuse_k)

    cost = pl.CostEstimate(
        flops=2 * N * HW * (9 * C) * Cout + 4 * N * C * C + 12 * N * HW * C,
        transcendentals=N * HW * C,
        bytes_accessed=(N * C * HW + N * Cout * HW) * x_itemsize
        + (int(w_oper.size) + 8 * HW) * itemsize
        + (C * C + 2 * C + Cout) * 4,
    )

    out_shape = jax.ShapeDtypeStruct((N, Cout, HW), x_nchw.dtype)

    def _call(single_buffer_invariants):
        def inv_spec(shape):
            idx = _const_index_map(len(shape))
            if single_buffer_invariants:
                return pl.BlockSpec(shape, idx,
                                    pipeline_mode=pl.Buffered(buffer_count=1))
            return pl.BlockSpec(shape, idx)

        grid_spec = pltpu.PrefetchScalarGridSpec(
            num_scalar_prefetch=0,
            grid=(N // NB,),
            in_specs=[
                pl.BlockSpec((NB, C, HW), lambda g: (g, 0, 0)),   # x
                inv_spec((8, HW)),                                # boundary masks
                inv_spec((C, C)),                                 # group pooling
                inv_spec((C, 1)),                                 # gamma
                inv_spec((C, 1)),                                 # beta
                inv_spec(tuple(w_oper.shape)),                    # conv weight
                inv_spec((Cout, 1)),                              # bias
            ],
            out_specs=pl.BlockSpec((NB, Cout, HW), lambda g: (g, 0, 0)),
            scratch_shapes=scratch_shapes,
        )
        return pl.pallas_call(
            kernel,
            out_shape=out_shape,
            grid_spec=grid_spec,
            compiler_params=pltpu.CompilerParams(
                dimension_semantics=("parallel",),
                vmem_limit_bytes=vmem_limit,
            ),
            cost_estimate=cost,
        )(x, masks, pool, gamma2, beta2, w_oper, bias2)

    try:
        out = _call(True)
    except Exception:
        # TODO(synk): pl.Buffered(1) single-buffering rejected by this jax
        # version; fall back to default double-buffered invariant operands.
        out = _call(False)

    # (N, Cout, H*W) -> (N, Cout, H, W): free reshape, already NCHW-ordered.
    return out.reshape(N, Cout, H, W)


def _reference(x, gamma, beta, weight, bias, num_groups, eps=1e-5):
    N, C, H, W = x.shape
    G = num_groups
    xg = x.reshape(N, G, C // G, H, W).astype(jnp.float32)
    mean = xg.mean(axis=(2, 3, 4), keepdims=True)
    var = ((xg - mean) ** 2).mean(axis=(2, 3, 4), keepdims=True)
    xn = ((xg - mean) / jnp.sqrt(var + eps)).reshape(N, C, H, W)
    xn = xn * gamma[None, :, None, None] + beta[None, :, None, None]
    a = xn * jax.nn.sigmoid(xn)
    y = jax.lax.conv_general_dilated(
        a, weight.astype(jnp.float32), window_strides=(1, 1), padding="SAME",
        dimension_numbers=("NCHW", "OIHW", "NCHW"))
    return y + bias[None, :, None, None]


if __name__ == "__main__":
    key = jax.random.PRNGKey(0)
    kx, kw, kb, kg, kbt = jax.random.split(key, 5)

    N, C, H, W = 2, 32, 16, 16        # in_channels=32
    Cout, num_groups = 16, 8          # out_channels=16, num_groups=8

    x = jax.random.normal(kx, (N, C, H, W), jnp.float32)
    weight = 0.1 * jax.random.normal(kw, (Cout, C, 3, 3), jnp.float32)
    bias = 0.1 * jax.random.normal(kb, (Cout,), jnp.float32)
    gamma = 1.0 + 0.1 * jax.random.normal(kg, (C,), jnp.float32)
    beta = 0.1 * jax.random.normal(kbt, (C,), jnp.float32)

    ref = _reference(x, gamma, beta, weight, bias, num_groups)

    # Path 1: fused im2col (VMEM patches scratch + single K=9C matmul).
    out = jax.block_until_ready(norm_act_conv(x, gamma, beta, weight, bias, num_groups))
    assert out.shape == (N, Cout, H, W)
    err = float(jnp.max(jnp.abs(out - ref)))
    assert jnp.allclose(out, ref, atol=1e-4, rtol=1e-4), f"fused path max abs err {err}"

    # Path 2: per-tap accumulation (no patches buffer; large-shape / v7x mode).
    out2 = jax.block_until_ready(
        norm_act_conv(x, gamma, beta, weight, bias, num_groups, force_accumulate=True))
    err2 = float(jnp.max(jnp.abs(out2 - ref)))
    assert jnp.allclose(out2, ref, atol=1e-4, rtol=1e-4), f"accum path max abs err {err2}"

    print("KERNEL_OK")
</pallas_src>

<mosaic_0001>
module attributes {stable_mosaic.version = 11 : i64} {
  func.func @_norm_act_conv_kernel(%arg0: i32, %arg1: memref<2x32x256xf32, #tpu.memory_space<vmem>>, %arg2: memref<8x256xf32, #tpu.memory_space<vmem>>, %arg3: memref<32x32xf32, #tpu.memory_space<vmem>>, %arg4: memref<32x1xf32, #tpu.memory_space<vmem>>, %arg5: memref<32x1xf32, #tpu.memory_space<vmem>>, %arg6: memref<16x288xf32, #tpu.memory_space<vmem>>, %arg7: memref<16x1xf32, #tpu.memory_space<vmem>>, %arg8: memref<2x16x256xf32, #tpu.memory_space<vmem>>, %arg9: memref<288x512xf32, #tpu.memory_space<vmem>>) attributes {dimension_semantics = [#tpu.dimension_semantics<parallel>], iteration_bounds = array<i64: 1>, scalar_prefetch = 0 : i64, scratch_operands = 1 : i64, tpu.core_type = #tpu.core_type<tc>, window_params = [{transform_indices = @transform_0, window_bounds = array<i64: 2, 32, 256>}, {pipeline_mode = #tpu.pipeline_mode<synchronous>, transform_indices = @transform_1, window_bounds = array<i64: 8, 256>}, {pipeline_mode = #tpu.pipeline_mode<synchronous>, transform_indices = @transform_2, window_bounds = array<i64: 32, 32>}, {pipeline_mode = #tpu.pipeline_mode<synchronous>, transform_indices = @transform_3, window_bounds = array<i64: 32, 1>}, {pipeline_mode = #tpu.pipeline_mode<synchronous>, transform_indices = @transform_4, window_bounds = array<i64: 32, 1>}, {pipeline_mode = #tpu.pipeline_mode<synchronous>, transform_indices = @transform_5, window_bounds = array<i64: 16, 288>}, {pipeline_mode = #tpu.pipeline_mode<synchronous>, transform_indices = @transform_6, window_bounds = array<i64: 16, 1>}, {transform_indices = @transform_7, window_bounds = array<i64: 2, 16, 256>}]} {
    %0 = tpu.iota {dimensions = array<i32: 1>} : vector<1x4xi32>
    %cst = arith.constant 0.000000e+00 : f32
    %1 = vector.broadcast %cst : f32 to vector<32x4xf32>
    %c0 = arith.constant 0 : index
    %c0_0 = arith.constant 0 : index
    %c0_1 = arith.constant 0 : index
    %2 = vector.load %arg1[%c0, %c0_0, %c0_1] : memref<2x32x256xf32, #tpu.memory_space<vmem>>, vector<1x32x256xf32>
    %3 = vector.shape_cast %2 : vector<1x32x256xf32> to vector<32x256xf32>
    %cst_2 = arith.constant dense<0.000000e+00> : vector<32xf32>
    %4 = vector.multi_reduction <add>, %3, %cst_2 [1] : vector<32x256xf32> to vector<32xf32>
    %5 = vector.shape_cast %4 : vector<32xf32> to vector<32x1xf32>
    %6 = arith.mulf %3, %3 : vector<32x256xf32>
    %cst_3 = arith.constant dense<0.000000e+00> : vector<32xf32>
    %7 = vector.multi_reduction <add>, %6, %cst_3 [1] : vector<32x256xf32> to vector<32xf32>
    %8 = vector.shape_cast %7 : vector<32xf32> to vector<32x1xf32>
    %c0_i32 = arith.constant 0 : i32
    %9 = vector.broadcast %c0_i32 : i32 to vector<1x4xi32>
    %10 = arith.cmpi eq, %0, %9 : vector<1x4xi32>
    %cst_4 = arith.constant 0.000000e+00 : f32
    %11 = vector.shape_cast %10 : vector<1x4xi1> to vector<1x4xi1>
    %12 = vector.broadcast %11 : vector<1x4xi1> to vector<32x4xi1>
    %13 = vector.shape_cast %5 : vector<32x1xf32> to vector<32x1xf32>
    %14 = vector.broadcast %13 : vector<32x1xf32> to vector<32x4xf32>
    %15 = vector.broadcast %cst_4 : f32 to vector<32x4xf32>
    %16 = arith.select %12, %14, %15 : vector<32x4xi1>, vector<32x4xf32>
    %17 = arith.addf %1, %16 : vector<32x4xf32>
    %c1_i32 = arith.constant 1 : i32
    %18 = vector.broadcast %c1_i32 : i32 to vector<1x4xi32>
    %19 = arith.cmpi eq, %0, %18 : vector<1x4xi32>
    %cst_5 = arith.constant 0.000000e+00 : f32
    %20 = vector.shape_cast %19 : vector<1x4xi1> to vector<1x4xi1>
    %21 = vector.broadcast %20 : vector<1x4xi1> to vector<32x4xi1>
    %22 = vector.shape_cast %8 : vector<32x1xf32> to vector<32x1xf32>
    %23 = vector.broadcast %22 : vector<32x1xf32> to vector<32x4xf32>
    %24 = vector.broadcast %cst_5 : f32 to vector<32x4xf32>
    %25 = arith.select %21, %23, %24 : vector<32x4xi1>, vector<32x4xf32>
    %26 = arith.addf %17, %25 : vector<32x4xf32>
    %c1 = arith.constant 1 : index
    %c0_6 = arith.constant 0 : index
    %c0_7 = arith.constant 0 : index
    %27 = vector.load %arg1[%c1, %c0_6, %c0_7] : memref<2x32x256xf32, #tpu.memory_space<vmem>>, vector<1x32x256xf32>
    %28 = vector.shape_cast %27 : vector<1x32x256xf32> to vector<32x256xf32>
    %cst_8 = arith.constant dense<0.000000e+00> : vector<32xf32>
    %29 = vector.multi_reduction <add>, %28, %cst_8 [1] : vector<32x256xf32> to vector<32xf32>
    %30 = vector.shape_cast %29 : vector<32xf32> to vector<32x1xf32>
    %31 = arith.mulf %28, %28 : vector<32x256xf32>
    %cst_9 = arith.constant dense<0.000000e+00> : vector<32xf32>
    %32 = vector.multi_reduction <add>, %31, %cst_9 [1] : vector<32x256xf32> to vector<32xf32>
    %33 = vector.shape_cast %32 : vector<32xf32> to vector<32x1xf32>
    %c2_i32 = arith.constant 2 : i32
    %34 = vector.broadcast %c2_i32 : i32 to vector<1x4xi32>
    %35 = arith.cmpi eq, %0, %34 : vector<1x4xi32>
    %cst_10 = arith.constant 0.000000e+00 : f32
    %36 = vector.shape_cast %35 : vector<1x4xi1> to vector<1x4xi1>
    %37 = vector.broadcast %36 : vector<1x4xi1> to vector<32x4xi1>
    %38 = vector.shape_cast %30 : vector<32x1xf32> to vector<32x1xf32>
    %39 = vector.broadcast %38 : vector<32x1xf32> to vector<32x4xf32>
    %40 = vector.broadcast %cst_10 : f32 to vector<32x4xf32>
    %41 = arith.select %37, %39, %40 : vector<32x4xi1>, vector<32x4xf32>
    %42 = arith.addf %26, %41 : vector<32x4xf32>
    %c3_i32 = arith.constant 3 : i32
    %43 = vector.broadcast %c3_i32 : i32 to vector<1x4xi32>
    %44 = arith.cmpi eq, %0, %43 : vector<1x4xi32>
    %cst_11 = arith.constant 0.000000e+00 : f32
    %45 = vector.shape_cast %44 : vector<1x4xi1> to vector<1x4xi1>
    %46 = vector.broadcast %45 : vector<1x4xi1> to vector<32x4xi1>
    %47 = vector.shape_cast %33 : vector<32x1xf32> to vector<32x1xf32>
    %48 = vector.broadcast %47 : vector<32x1xf32> to vector<32x4xf32>
    %49 = vector.broadcast %cst_11 : f32 to vector<32x4xf32>
    %50 = arith.select %46, %48, %49 : vector<32x4xi1>, vector<32x4xf32>
    %51 = arith.addf %42, %50 : vector<32x4xf32>
    %c0_12 = arith.constant 0 : index
    %c0_13 = arith.constant 0 : index
    %52 = vector.load %arg3[%c0_12, %c0_13] : memref<32x32xf32, #tpu.memory_space<vmem>>, vector<32x32xf32>
    %cst_14 = arith.constant dense<0.000000e+00> : vector<32x4xf32>
    %53 = tpu.matmul %52, %51, %cst_14 {dimension_numbers = #tpu.dot_dimension_numbers<[1], [0], [0], [1], [0, 0, 1, 1], [], []>} : vector<32x32xf32>, vector<32x4xf32>, vector<32x4xf32> -> vector<32x4xf32>
    %c0_15 = arith.constant 0 : index
    %c0_16 = arith.constant 0 : index
    %54 = vector.load %arg4[%c0_15, %c0_16] : memref<32x1xf32, #tpu.memory_space<vmem>>, vector<32x1xf32>
    %c0_17 = arith.constant 0 : index
    %c0_18 = arith.constant 0 : index
    %55 = vector.load %arg5[%c0_17, %c0_18] : memref<32x1xf32, #tpu.memory_space<vmem>>, vector<32x1xf32>
    %c0_19 = arith.constant 0 : index
    %c0_20 = arith.constant 0 : index
    %56 = vector.load %arg7[%c0_19, %c0_20] : memref<16x1xf32, #tpu.memory_space<vmem>>, vector<16x1xf32>
    %c0_i32_21 = arith.constant 0 : i32
    %57 = vector.broadcast %c0_i32_21 : i32 to vector<1x4xi32>
    %58 = arith.cmpi eq, %0, %57 : vector<1x4xi32>
    %cst_22 = arith.constant 0.000000e+00 : f32
    %59 = vector.shape_cast %58 : vector<1x4xi1> to vector<1x4xi1>
    %60 = vector.broadcast %59 : vector<1x4xi1> to vector<32x4xi1>
    %61 = vector.broadcast %cst_22 : f32 to vector<32x4xf32>
    %62 = arith.select %60, %53, %61 : vector<32x4xi1>, vector<32x4xf32>
    %cst_23 = arith.constant dense<0.000000e+00> : vector<32xf32>
    %63 = vector.multi_reduction <add>, %62, %cst_23 [1] : vector<32x4xf32> to vector<32xf32>
    %64 = vector.shape_cast %63 : vector<32xf32> to vector<32x1xf32>
    %c1_i32_24 = arith.constant 1 : i32
    %65 = vector.broadcast %c1_i32_24 : i32 to vector<1x4xi32>
    %66 = arith.cmpi eq, %0, %65 : vector<1x4xi32>
    %cst_25 = arith.constant 0.000000e+00 : f32
    %67 = vector.shape_cast %66 : vector<1x4xi1> to vector<1x4xi1>
    %68 = vector.broadcast %67 : vector<1x4xi1> to vector<32x4xi1>
    %69 = vector.broadcast %cst_25 : f32 to vector<32x4xf32>
    %70 = arith.select %68, %53, %69 : vector<32x4xi1>, vector<32x4xf32>
    %cst_26 = arith.constant dense<0.000000e+00> : vector<32xf32>
    %71 = vector.multi_reduction <add>, %70, %cst_26 [1] : vector<32x4xf32> to vector<32xf32>
    %72 = vector.shape_cast %71 : vector<32xf32> to vector<32x1xf32>
    %73 = arith.mulf %64, %64 : vector<32x1xf32>
    %74 = arith.subf %72, %73 : vector<32x1xf32>
    %cst_27 = arith.constant 0.000000e+00 : f32
    %75 = vector.broadcast %cst_27 : f32 to vector<32x1xf32>
    %76 = arith.maximumf %74, %75 : vector<32x1xf32>
    %cst_28 = arith.constant 9.99999974E-6 : f32
    %77 = vector.broadcast %cst_28 : f32 to vector<32x1xf32>
    %78 = arith.addf %76, %77 : vector<32x1xf32>
    %79 = math.rsqrt %78 : vector<32x1xf32>
    %c0_29 = arith.constant 0 : index
    %c0_30 = arith.constant 0 : index
    %c0_31 = arith.constant 0 : index
    %80 = vector.load %arg1[%c0_29, %c0_30, %c0_31] : memref<2x32x256xf32, #tpu.memory_space<vmem>>, vector<1x32x256xf32>
    %81 = vector.shape_cast %80 : vector<1x32x256xf32> to vector<32x256xf32>
    %82 = vector.broadcast %64 : vector<32x1xf32> to vector<32x256xf32>
    %83 = arith.subf %81, %82 : vector<32x256xf32>
    %84 = arith.mulf %79, %54 : vector<32x1xf32>
    %85 = vector.broadcast %84 : vector<32x1xf32> to vector<32x256xf32>
    %86 = arith.mulf %83, %85 : vector<32x256xf32>
    %87 = vector.broadcast %55 : vector<32x1xf32> to vector<32x256xf32>
    %88 = arith.addf %86, %87 : vector<32x256xf32>
    %cst_32 = arith.constant 0.000000e+00 : f32
    %89 = vector.broadcast %cst_32 : f32 to vector<32x256xf32>
    %90 = arith.subf %89, %88 : vector<32x256xf32>
    %91 = math.exp %90 : vector<32x256xf32>
    %cst_33 = arith.constant 1.000000e+00 : f32
    %92 = vector.broadcast %cst_33 : f32 to vector<32x256xf32>
    %93 = arith.addf %92, %91 : vector<32x256xf32>
    %94 = tpu.reciprocal %93 : vector<32x256xf32> -> vector<32x256xf32>
    %95 = arith.mulf %88, %94 : vector<32x256xf32>
    %c17_i32 = arith.constant 17 : i32
    %96 = tpu.dynamic_rotate %95 by %c17_i32 dim 1 : vector<32x256xf32>, i32 -> vector<32x256xf32>
    %c0_34 = arith.constant 0 : index
    %c0_35 = arith.constant 0 : index
    %97 = vector.load %arg2[%c0_34, %c0_35] : memref<8x256xf32, #tpu.memory_space<vmem>>, vector<1x256xf32>
    %98 = vector.broadcast %97 : vector<1x256xf32> to vector<32x256xf32>
    %99 = arith.mulf %96, %98 : vector<32x256xf32>
    %c0_36 = arith.constant 0 : index
    %c0_37 = arith.constant 0 : index
    %100 = vector.load %arg9[%c0_36, %c0_37] : memref<288x512xf32, #tpu.memory_space<vmem>>, vector<32x256xf32>
    tpu.vector_store %arg9[%c0_36, %c0_37], %99 {strides = array<i32>} : memref<288x512xf32, #tpu.memory_space<vmem>>, vector<32x256xf32>,
    %c16_i32 = arith.constant 16 : i32
    %101 = tpu.dynamic_rotate %95 by %c16_i32 dim 1 : vector<32x256xf32>, i32 -> vector<32x256xf32>
    %c1_38 = arith.constant 1 : index
    %c0_39 = arith.constant 0 : index
    %102 = vector.load %arg2[%c1_38, %c0_39] : memref<8x256xf32, #tpu.memory_space<vmem>>, vector<1x256xf32>
    %103 = vector.broadcast %102 : vector<1x256xf32> to vector<32x256xf32>
    %104 = arith.mulf %101, %103 : vector<32x256xf32>
    %c32 = arith.constant 32 : index
    %c0_40 = arith.constant 0 : index
    %105 = vector.load %arg9[%c32, %c0_40] : memref<288x512xf32, #tpu.memory_space<vmem>>, vector<32x256xf32>
    tpu.vector_store %arg9[%c32, %c0_40], %104 {strides = array<i32>} : memref<288x512xf32, #tpu.memory_space<vmem>>, vector<32x256xf32>,
    %c15_i32 = arith.constant 15 : i32
    %106 = tpu.dynamic_rotate %95 by %c15_i32 dim 1 : vector<32x256xf32>, i32 -> vector<32x256xf32>
    %c2 = arith.constant 2 : index
    %c0_41 = arith.constant 0 : index
    %107 = vector.load %arg2[%c2, %c0_41] : memref<8x256xf32, #tpu.memory_space<vmem>>, vector<1x256xf32>
    %108 = vector.broadcast %107 : vector<1x256xf32> to vector<32x256xf32>
    %109 = arith.mulf %106, %108 : vector<32x256xf32>
    %c64 = arith.constant 64 : index
    %c0_42 = arith.constant 0 : index
    %110 = vector.load %arg9[%c64, %c0_42] : memref<288x512xf32, #tpu.memory_space<vmem>>, vector<32x256xf32>
    tpu.vector_store %arg9[%c64, %c0_42], %109 {strides = array<i32>} : memref<288x512xf32, #tpu.memory_space<vmem>>, vector<32x256xf32>,
    %c1_i32_43 = arith.constant 1 : i32
    %111 = tpu.dynamic_rotate %95 by %c1_i32_43 dim 1 : vector<32x256xf32>, i32 -> vector<32x256xf32>
    %c3 = arith.constant 3 : index
    %c0_44 = arith.constant 0 : index
    %112 = vector.load %arg2[%c3, %c0_44] : memref<8x256xf32, #tpu.memory_space<vmem>>, vector<1x256xf32>
    %113 = vector.broadcast %112 : vector<1x256xf32> to vector<32x256xf32>
    %114 = arith.mulf %111, %113 : vector<32x256xf32>
    %c96 = arith.constant 96 : index
    %c0_45 = arith.constant 0 : index
    %115 = vector.load %arg9[%c96, %c0_45] : memref<288x512xf32, #tpu.memory_space<vmem>>, vector<32x256xf32>
    tpu.vector_store %arg9[%c96, %c0_45], %114 {strides = array<i32>} : memref<288x512xf32, #tpu.memory_space<vmem>>, vector<32x256xf32>,
    %c128 = arith.constant 128 : index
    %c0_46 = arith.constant 0 : index
    %116 = vector.load %arg9[%c128, %c0_46] : memref<288x512xf32, #tpu.memory_space<vmem>>, vector<32x256xf32>
    tpu.vector_store %arg9[%c128, %c0_46], %95 {strides = array<i32>} : memref<288x512xf32, #tpu.memory_space<vmem>>, vector<32x256xf32>,
    %c255_i32 = arith.constant 255 : i32
    %117 = tpu.dynamic_rotate %95 by %c255_i32 dim 1 : vector<32x256xf32>, i32 -> vector<32x256xf32>
    %c4 = arith.constant 4 : index
    %c0_47 = arith.constant 0 : index
    %118 = vector.load %arg2[%c4, %c0_47] : memref<8x256xf32, #tpu.memory_space<vmem>>, vector<1x256xf32>
    %119 = vector.broadcast %118 : vector<1x256xf32> to vector<32x256xf32>
    %120 = arith.mulf %117, %119 : vector<32x256xf32>
    %c160 = arith.constant 160 : index
    %c0_48 = arith.constant 0 : index
    %121 = vector.load %arg9[%c160, %c0_48] : memref<288x512xf32, #tpu.memory_space<vmem>>, vector<32x256xf32>
    tpu.vector_store %arg9[%c160, %c0_48], %120 {strides = array<i32>} : memref<288x512xf32, #tpu.memory_space<vmem>>, vector<32x256xf32>,
    %c241_i32 = arith.constant 241 : i32
    %122 = tpu.dynamic_rotate %95 by %c241_i32 dim 1 : vector<32x256xf32>, i32 -> vector<32x256xf32>
    %c5 = arith.constant 5 : index
    %c0_49 = arith.constant 0 : index
    %123 = vector.load %arg2[%c5, %c0_49] : memref<8x256xf32, #tpu.memory_space<vmem>>, vector<1x256xf32>
    %124 = vector.broadcast %123 : vector<1x256xf32> to vector<32x256xf32>
    %125 = arith.mulf %122, %124 : vector<32x256xf32>
    %c192 = arith.constant 192 : index
    %c0_50 = arith.constant 0 : index
    %126 = vector.load %arg9[%c192, %c0_50] : memref<288x512xf32, #tpu.memory_space<vmem>>, vector<32x256xf32>
    tpu.vector_store %arg9[%c192, %c0_50], %125 {strides = array<i32>} : memref<288x512xf32, #tpu.memory_space<vmem>>, vector<32x256xf32>,
    %c240_i32 = arith.constant 240 : i32
    %127 = tpu.dynamic_rotate %95 by %c240_i32 dim 1 : vector<32x256xf32>, i32 -> vector<32x256xf32>
    %c6 = arith.constant 6 : index
    %c0_51 = arith.constant 0 : index
    %128 = vector.load %arg2[%c6, %c0_51] : memref<8x256xf32, #tpu.memory_space<vmem>>, vector<1x256xf32>
    %129 = vector.broadcast %128 : vector<1x256xf32> to vector<32x256xf32>
    %130 = arith.mulf %127, %129 : vector<32x256xf32>
    %c224 = arith.constant 224 : index
    %c0_52 = arith.constant 0 : index
    %131 = vector.load %arg9[%c224, %c0_52] : memref<288x512xf32, #tpu.memory_space<vmem>>, vector<32x256xf32>
    tpu.vector_store %arg9[%c224, %c0_52], %130 {strides = array<i32>} : memref<288x512xf32, #tpu.memory_space<vmem>>, vector<32x256xf32>,
    %c239_i32 = arith.constant 239 : i32
    %132 = tpu.dynamic_rotate %95 by %c239_i32 dim 1 : vector<32x256xf32>, i32 -> vector<32x256xf32>
    %c7 = arith.constant 7 : index
    %c0_53 = arith.constant 0 : index
    %133 = vector.load %arg2[%c7, %c0_53] : memref<8x256xf32, #tpu.memory_space<vmem>>, vector<1x256xf32>
    %134 = vector.broadcast %133 : vector<1x256xf32> to vector<32x256xf32>
    %135 = arith.mulf %132, %134 : vector<32x256xf32>
    %c256 = arith.constant 256 : index
    %c0_54 = arith.constant 0 : index
    %136 = vector.load %arg9[%c256, %c0_54] : memref<288x512xf32, #tpu.memory_space<vmem>>, vector<32x256xf32>
    tpu.vector_store %arg9[%c256, %c0_54], %135 {strides = array<i32>} : memref<288x512xf32, #tpu.memory_space<vmem>>, vector<32x256xf32>,
    %c2_i32_55 = arith.constant 2 : i32
    %137 = vector.broadcast %c2_i32_55 : i32 to vector<1x4xi32>
    %138 = arith.cmpi eq, %0, %137 : vector<1x4xi32>
    %cst_56 = arith.constant 0.000000e+00 : f32
    %139 = vector.shape_cast %138 : vector<1x4xi1> to vector<1x4xi1>
    %140 = vector.broadcast %139 : vector<1x4xi1> to vector<32x4xi1>
    %141 = vector.broadcast %cst_56 : f32 to vector<32x4xf32>
    %142 = arith.select %140, %53, %141 : vector<32x4xi1>, vector<32x4xf32>
    %cst_57 = arith.constant dense<0.000000e+00> : vector<32xf32>
    %143 = vector.multi_reduction <add>, %142, %cst_57 [1] : vector<32x4xf32> to vector<32xf32>
    %144 = vector.shape_cast %143 : vector<32xf32> to vector<32x1xf32>
    %c3_i32_58 = arith.constant 3 : i32
    %145 = vector.broadcast %c3_i32_58 : i32 to vector<1x4xi32>
    %146 = arith.cmpi eq, %0, %145 : vector<1x4xi32>
    %cst_59 = arith.constant 0.000000e+00 : f32
    %147 = vector.shape_cast %146 : vector<1x4xi1> to vector<1x4xi1>
    %148 = vector.broadcast %147 : vector<1x4xi1> to vector<32x4xi1>
    %149 = vector.broadcast %cst_59 : f32 to vector<32x4xf32>
    %150 = arith.select %148, %53, %149 : vector<32x4xi1>, vector<32x4xf32>
    %cst_60 = arith.constant dense<0.000000e+00> : vector<32xf32>
    %151 = vector.multi_reduction <add>, %150, %cst_60 [1] : vector<32x4xf32> to vector<32xf32>
    %152 = vector.shape_cast %151 : vector<32xf32> to vector<32x1xf32>
    %153 = arith.mulf %144, %144 : vector<32x1xf32>
    %154 = arith.subf %152, %153 : vector<32x1xf32>
    %cst_61 = arith.constant 0.000000e+00 : f32
    %155 = vector.broadcast %cst_61 : f32 to vector<32x1xf32>
    %156 = arith.maximumf %154, %155 : vector<32x1xf32>
    %cst_62 = arith.constant 9.99999974E-6 : f32
    %157 = vector.broadcast %cst_62 : f32 to vector<32x1xf32>
    %158 = arith.addf %156, %157 : vector<32x1xf32>
    %159 = math.rsqrt %158 : vector<32x1xf32>
    %c1_63 = arith.constant 1 : index
    %c0_64 = arith.constant 0 : index
    %c0_65 = arith.constant 0 : index
    %160 = vector.load %arg1[%c1_63, %c0_64, %c0_65] : memref<2x32x256xf32, #tpu.memory_space<vmem>>, vector<1x32x256xf32>
    %161 = vector.shape_cast %160 : vector<1x32x256xf32> to vector<32x256xf32>
    %162 = vector.broadcast %144 : vector<32x1xf32> to vector<32x256xf32>
    %163 = arith.subf %161, %162 : vector<32x256xf32>
    %164 = arith.mulf %159, %54 : vector<32x1xf32>
    %165 = vector.broadcast %164 : vector<32x1xf32> to vector<32x256xf32>
    %166 = arith.mulf %163, %165 : vector<32x256xf32>
    %167 = vector.broadcast %55 : vector<32x1xf32> to vector<32x256xf32>
    %168 = arith.addf %166, %167 : vector<32x256xf32>
    %cst_66 = arith.constant 0.000000e+00 : f32
    %169 = vector.broadcast %cst_66 : f32 to vector<32x256xf32>
    %170 = arith.subf %169, %168 : vector<32x256xf32>
    %171 = math.exp %170 : vector<32x256xf32>
    %cst_67 = arith.constant 1.000000e+00 : f32
    %172 = vector.broadcast %cst_67 : f32 to vector<32x256xf32>
    %173 = arith.addf %172, %171 : vector<32x256xf32>
    %174 = tpu.reciprocal %173 : vector<32x256xf32> -> vector<32x256xf32>
    %175 = arith.mulf %168, %174 : vector<32x256xf32>
    %c17_i32_68 = arith.constant 17 : i32
    %176 = tpu.dynamic_rotate %175 by %c17_i32_68 dim 1 : vector<32x256xf32>, i32 -> vector<32x256xf32>
    %c0_69 = arith.constant 0 : index
    %c0_70 = arith.constant 0 : index
    %177 = vector.load %arg2[%c0_69, %c0_70] : memref<8x256xf32, #tpu.memory_space<vmem>>, vector<1x256xf32>
    %178 = vector.broadcast %177 : vector<1x256xf32> to vector<32x256xf32>
    %179 = arith.mulf %176, %178 : vector<32x256xf32>
    %c0_71 = arith.constant 0 : index
    %c256_72 = arith.constant 256 : index
    %180 = vector.load %arg9[%c0_71, %c256_72] : memref<288x512xf32, #tpu.memory_space<vmem>>, vector<32x256xf32>
    tpu.vector_store %arg9[%c0_71, %c256_72], %179 {strides = array<i32>} : memref<288x512xf32, #tpu.memory_space<vmem>>, vector<32x256xf32>,
    %c16_i32_73 = arith.constant 16 : i32
    %181 = tpu.dynamic_rotate %175 by %c16_i32_73 dim 1 : vector<32x256xf32>, i32 -> vector<32x256xf32>
    %c1_74 = arith.constant 1 : index
    %c0_75 = arith.constant 0 : index
    %182 = vector.load %arg2[%c1_74, %c0_75] : memref<8x256xf32, #tpu.memory_space<vmem>>, vector<1x256xf32>
    %183 = vector.broadcast %182 : vector<1x256xf32> to vector<32x256xf32>
    %184 = arith.mulf %181, %183 : vector<32x256xf32>
    %c32_76 = arith.constant 32 : index
    %c256_77 = arith.constant 256 : index
    %185 = vector.load %arg9[%c32_76, %c256_77] : memref<288x512xf32, #tpu.memory_space<vmem>>, vector<32x256xf32>
    tpu.vector_store %arg9[%c32_76, %c256_77], %184 {strides = array<i32>} : memref<288x512xf32, #tpu.memory_space<vmem>>, vector<32x256xf32>,
    %c15_i32_78 = arith.constant 15 : i32
    %186 = tpu.dynamic_rotate %175 by %c15_i32_78 dim 1 : vector<32x256xf32>, i32 -> vector<32x256xf32>
    %c2_79 = arith.constant 2 : index
    %c0_80 = arith.constant 0 : index
    %187 = vector.load %arg2[%c2_79, %c0_80] : memref<8x256xf32, #tpu.memory_space<vmem>>, vector<1x256xf32>
    %188 = vector.broadcast %187 : vector<1x256xf32> to vector<32x256xf32>
    %189 = arith.mulf %186, %188 : vector<32x256xf32>
    %c64_81 = arith.constant 64 : index
    %c256_82 = arith.constant 256 : index
    %190 = vector.load %arg9[%c64_81, %c256_82] : memref<288x512xf32, #tpu.memory_space<vmem>>, vector<32x256xf32>
    tpu.vector_store %arg9[%c64_81, %c256_82], %189 {strides = array<i32>} : memref<288x512xf32, #tpu.memory_space<vmem>>, vector<32x256xf32>,
    %c1_i32_83 = arith.constant 1 : i32
    %191 = tpu.dynamic_rotate %175 by %c1_i32_83 dim 1 : vector<32x256xf32>, i32 -> vector<32x256xf32>
    %c3_84 = arith.constant 3 : index
    %c0_85 = arith.constant 0 : index
    %192 = vector.load %arg2[%c3_84, %c0_85] : memref<8x256xf32, #tpu.memory_space<vmem>>, vector<1x256xf32>
    %193 = vector.broadcast %192 : vector<1x256xf32> to vector<32x256xf32>
    %194 = arith.mulf %191, %193 : vector<32x256xf32>
    %c96_86 = arith.constant 96 : index
    %c256_87 = arith.constant 256 : index
    %195 = vector.load %arg9[%c96_86, %c256_87] : memref<288x512xf32, #tpu.memory_space<vmem>>, vector<32x256xf32>
    tpu.vector_store %arg9[%c96_86, %c256_87], %194 {strides = array<i32>} : memref<288x512xf32, #tpu.memory_space<vmem>>, vector<32x256xf32>,
    %c128_88 = arith.constant 128 : index
    %c256_89 = arith.constant 256 : index
    %196 = vector.load %arg9[%c128_88, %c256_89] : memref<288x512xf32, #tpu.memory_space<vmem>>, vector<32x256xf32>
    tpu.vector_store %arg9[%c128_88, %c256_89], %175 {strides = array<i32>} : memref<288x512xf32, #tpu.memory_space<vmem>>, vector<32x256xf32>,
    %c255_i32_90 = arith.constant 255 : i32
    %197 = tpu.dynamic_rotate %175 by %c255_i32_90 dim 1 : vector<32x256xf32>, i32 -> vector<32x256xf32>
    %c4_91 = arith.constant 4 : index
    %c0_92 = arith.constant 0 : index
    %198 = vector.load %arg2[%c4_91, %c0_92] : memref<8x256xf32, #tpu.memory_space<vmem>>, vector<1x256xf32>
    %199 = vector.broadcast %198 : vector<1x256xf32> to vector<32x256xf32>
    %200 = arith.mulf %197, %199 : vector<32x256xf32>
    %c160_93 = arith.constant 160 : index
    %c256_94 = arith.constant 256 : index
    %201 = vector.load %arg9[%c160_93, %c256_94] : memref<288x512xf32, #tpu.memory_space<vmem>>, vector<32x256xf32>
    tpu.vector_store %arg9[%c160_93, %c256_94], %200 {strides = array<i32>} : memref<288x512xf32, #tpu.memory_space<vmem>>, vector<32x256xf32>,
    %c241_i32_95 = arith.constant 241 : i32
    %202 = tpu.dynamic_rotate %175 by %c241_i32_95 dim 1 : vector<32x256xf32>, i32 -> vector<32x256xf32>
    %c5_96 = arith.constant 5 : index
    %c0_97 = arith.constant 0 : index
    %203 = vector.load %arg2[%c5_96, %c0_97] : memref<8x256xf32, #tpu.memory_space<vmem>>, vector<1x256xf32>
    %204 = vector.broadcast %203 : vector<1x256xf32> to vector<32x256xf32>
    %205 = arith.mulf %202, %204 : vector<32x256xf32>
    %c192_98 = arith.constant 192 : index
    %c256_99 = arith.constant 256 : index
    %206 = vector.load %arg9[%c192_98, %c256_99] : memref<288x512xf32, #tpu.memory_space<vmem>>, vector<32x256xf32>
    tpu.vector_store %arg9[%c192_98, %c256_99], %205 {strides = array<i32>} : memref<288x512xf32, #tpu.memory_space<vmem>>, vector<32x256xf32>,
    %c240_i32_100 = arith.constant 240 : i32
    %207 = tpu.dynamic_rotate %175 by %c240_i32_100 dim 1 : vector<32x256xf32>, i32 -> vector<32x256xf32>
    %c6_101 = arith.constant 6 : index
    %c0_102 = arith.constant 0 : index
    %208 = vector.load %arg2[%c6_101, %c0_102] : memref<8x256xf32, #tpu.memory_space<vmem>>, vector<1x256xf32>
    %209 = vector.broadcast %208 : vector<1x256xf32> to vector<32x256xf32>
    %210 = arith.mulf %207, %209 : vector<32x256xf32>
    %c224_103 = arith.constant 224 : index
    %c256_104 = arith.constant 256 : index
    %211 = vector.load %arg9[%c224_103, %c256_104] : memref<288x512xf32, #tpu.memory_space<vmem>>, vector<32x256xf32>
    tpu.vector_store %arg9[%c224_103, %c256_104], %210 {strides = array<i32>} : memref<288x512xf32, #tpu.memory_space<vmem>>, vector<32x256xf32>,
    %c239_i32_105 = arith.constant 239 : i32
    %212 = tpu.dynamic_rotate %175 by %c239_i32_105 dim 1 : vector<32x256xf32>, i32 -> vector<32x256xf32>
    %c7_106 = arith.constant 7 : index
    %c0_107 = arith.constant 0 : index
    %213 = vector.load %arg2[%c7_106, %c0_107] : memref<8x256xf32, #tpu.memory_space<vmem>>, vector<1x256xf32>
    %214 = vector.broadcast %213 : vector<1x256xf32> to vector<32x256xf32>
    %215 = arith.mulf %212, %214 : vector<32x256xf32>
    %c256_108 = arith.constant 256 : index
    %c256_109 = arith.constant 256 : index
    %216 = vector.load %arg9[%c256_108, %c256_109] : memref<288x512xf32, #tpu.memory_space<vmem>>, vector<32x256xf32>
    tpu.vector_store %arg9[%c256_108, %c256_109], %215 {strides = array<i32>} : memref<288x512xf32, #tpu.memory_space<vmem>>, vector<32x256xf32>,
    %c0_110 = arith.constant 0 : index
    %c0_111 = arith.constant 0 : index
    %217 = vector.load %arg6[%c0_110, %c0_111] : memref<16x288xf32, #tpu.memory_space<vmem>>, vector<16x288xf32>
    %c0_112 = arith.constant 0 : index
    %c0_113 = arith.constant 0 : index
    %218 = vector.load %arg9[%c0_112, %c0_113] : memref<288x512xf32, #tpu.memory_space<vmem>>, vector<288x512xf32>
    %cst_114 = arith.constant dense<0.000000e+00> : vector<16x512xf32>
    %219 = tpu.matmul %217, %218, %cst_114 {dimension_numbers = #tpu.dot_dimension_numbers<[1], [0], [0], [1], [0, 0, 1, 1], [], []>} : vector<16x288xf32>, vector<288x512xf32>, vector<16x512xf32> -> vector<16x512xf32>
    %220 = vector.broadcast %56 : vector<16x1xf32> to vector<16x512xf32>
    %221 = arith.addf %219, %220 : vector<16x512xf32>
    %222 = vector.extract_strided_slice %221 {offsets = [0, 0], sizes = [16, 256], strides = [1, 1]} : vector<16x512xf32> to vector<16x256xf32>
    %c0_115 = arith.constant 0 : index
    %c0_116 = arith.constant 0 : index
    %c0_117 = arith.constant 0 : index
    %223 = vector.load %arg8[%c0_115, %c0_116, %c0_117] : memref<2x16x256xf32, #tpu.memory_space<vmem>>, vector<1x16x256xf32>
    %224 = vector.shape_cast %223 : vector<1x16x256xf32> to vector<16x256xf32>
    %225 = vector.shape_cast %222 : vector<16x256xf32> to vector<1x16x256xf32>
    tpu.vector_store %arg8[%c0_115, %c0_116, %c0_117], %225 {strides = array<i32>} : memref<2x16x256xf32, #tpu.memory_space<vmem>>, vector<1x16x256xf32>,
    %226 = vector.extract_strided_slice %221 {offsets = [0, 256], sizes = [16, 256], strides = [1, 1]} : vector<16x512xf32> to vector<16x256xf32>
    %c1_118 = arith.constant 1 : index
    %c0_119 = arith.constant 0 : index
    %c0_120 = arith.constant 0 : index
    %227 = vector.load %arg8[%c1_118, %c0_119, %c0_120] : memref<2x16x256xf32, #tpu.memory_space<vmem>>, vector<1x16x256xf32>
    %228 = vector.shape_cast %227 : vector<1x16x256xf32> to vector<16x256xf32>
    %229 = vector.shape_cast %226 : vector<16x256xf32> to vector<1x16x256xf32>
    tpu.vector_store %arg8[%c1_118, %c0_119, %c0_120], %229 {strides = array<i32>} : memref<2x16x256xf32, #tpu.memory_space<vmem>>, vector<1x16x256xf32>,
    return
  }
  func.func @transform_0(%arg0: i32) -> (i32, i32, i32) {
    %c0_i32 = arith.constant 0 : i32
    %c0_i32_0 = arith.constant 0 : i32
    %c0_i32_1 = arith.constant 0 : i32
    return %arg0, %c0_i32, %c0_i32_0 : i32, i32, i32
  }
  func.func @transform_1(%arg0: i32) -> (i32, i32) {
    %c0_i32 = arith.constant 0 : i32
    %c0_i32_0 = arith.constant 0 : i32
    %c0_i32_1 = arith.constant 0 : i32
    return %c0_i32, %c0_i32_0 : i32, i32
  }
  func.func @transform_2(%arg0: i32) -> (i32, i32) {
    %c0_i32 = arith.constant 0 : i32
    %c0_i32_0 = arith.constant 0 : i32
    %c0_i32_1 = arith.constant 0 : i32
    return %c0_i32, %c0_i32_0 : i32, i32
  }
  func.func @transform_3(%arg0: i32) -> (i32, i32) {
    %c0_i32 = arith.constant 0 : i32
    %c0_i32_0 = arith.constant 0 : i32
    %c0_i32_1 = arith.constant 0 : i32
    return %c0_i32, %c0_i32_0 : i32, i32
  }
  func.func @transform_4(%arg0: i32) -> (i32, i32) {
    %c0_i32 = arith.constant 0 : i32
    %c0_i32_0 = arith.constant 0 : i32
    %c0_i32_1 = arith.constant 0 : i32
    return %c0_i32, %c0_i32_0 : i32, i32
  }
  func.func @transform_5(%arg0: i32) -> (i32, i32) {
    %c0_i32 = arith.constant 0 : i32
    %c0_i32_0 = arith.constant 0 : i32
    %c0_i32_1 = arith.constant 0 : i32
    return %c0_i32, %c0_i32_0 : i32, i32
  }
  func.func @transform_6(%arg0: i32) -> (i32, i32) {
    %c0_i32 = arith.constant 0 : i32
    %c0_i32_0 = arith.constant 0 : i32
    %c0_i32_1 = arith.constant 0 : i32
    return %c0_i32, %c0_i32_0 : i32, i32
  }
  func.func @transform_7(%arg0: i32) -> (i32, i32, i32) {
    %c0_i32 = arith.constant 0 : i32
    %c0_i32_0 = arith.constant 0 : i32
    %c0_i32_1 = arith.constant 0 : i32
    return %arg0, %c0_i32, %c0_i32_0 : i32, i32, i32
  }
}

module attributes {stable_mosaic.version = 11 : i64} {
  func.func @_norm_act_conv_kernel(%arg0: i32, %arg1: memref<2x32x256xf32, #tpu.memory_space<vmem>>, %arg2: memref<8x256xf32, #tpu.memory_space<vmem>>, %arg3: memref<32x32xf32, #tpu.memory_space<vmem>>, %arg4: memref<32x1xf32, #tpu.memory_space<vmem>>, %arg5: memref<32x1xf32, #tpu.memory_space<vmem>>, %arg6: memref<16x288xf32, #tpu.memory_space<vmem>>, %arg7: memref<16x1xf32, #tpu.memory_space<vmem>>, %arg8: memref<2x16x256xf32, #tpu.memory_space<vmem>>, %arg9: memref<288x512xf32, #tpu.memory_space<vmem>>) attributes {dimension_semantics = [#tpu.dimension_semantics<parallel>], iteration_bounds = array<i64: 1>, scalar_prefetch = 0 : i64, scratch_operands = 1 : i64, tpu.core_type = #tpu.core_type<tc>, window_params = [{transform_indices = @transform_0, window_bounds = array<i64: 2, 32, 256>}, {pipeline_mode = #tpu.pipeline_mode<synchronous>, transform_indices = @transform_1, window_bounds = array<i64: 8, 256>}, {pipeline_mode = #tpu.pipeline_mode<synchronous>, transform_indices = @transform_2, window_bounds = array<i64: 32, 32>}, {pipeline_mode = #tpu.pipeline_mode<synchronous>, transform_indices = @transform_3, window_bounds = array<i64: 32, 1>}, {pipeline_mode = #tpu.pipeline_mode<synchronous>, transform_indices = @transform_4, window_bounds = array<i64: 32, 1>}, {pipeline_mode = #tpu.pipeline_mode<synchronous>, transform_indices = @transform_5, window_bounds = array<i64: 16, 288>}, {pipeline_mode = #tpu.pipeline_mode<synchronous>, transform_indices = @transform_6, window_bounds = array<i64: 16, 1>}, {transform_indices = @transform_7, window_bounds = array<i64: 2, 16, 256>}]} {
    %0 = tpu.iota {dimensions = array<i32: 1>} : vector<1x4xi32>
    %cst = arith.constant 0.000000e+00 : f32
    %1 = vector.broadcast %cst : f32 to vector<32x4xf32>
    %c0 = arith.constant 0 : index
    %c0_0 = arith.constant 0 : index
    %c0_1 = arith.constant 0 : index
    %2 = vector.load %arg1[%c0, %c0_0, %c0_1] : memref<2x32x256xf32, #tpu.memory_space<vmem>>, vector<1x32x256xf32>
    %3 = vector.shape_cast %2 : vector<1x32x256xf32> to vector<32x256xf32>
    %cst_2 = arith.constant dense<0.000000e+00> : vector<32xf32>
    %4 = vector.multi_reduction <add>, %3, %cst_2 [1] : vector<32x256xf32> to vector<32xf32>
    %5 = vector.shape_cast %4 : vector<32xf32> to vector<32x1xf32>
    %6 = arith.mulf %3, %3 : vector<32x256xf32>
    %cst_3 = arith.constant dense<0.000000e+00> : vector<32xf32>
    %7 = vector.multi_reduction <add>, %6, %cst_3 [1] : vector<32x256xf32> to vector<32xf32>
    %8 = vector.shape_cast %7 : vector<32xf32> to vector<32x1xf32>
    %c0_i32 = arith.constant 0 : i32
    %9 = vector.broadcast %c0_i32 : i32 to vector<1x4xi32>
    %10 = arith.cmpi eq, %0, %9 : vector<1x4xi32>
    %cst_4 = arith.constant 0.000000e+00 : f32
    %11 = vector.shape_cast %10 : vector<1x4xi1> to vector<1x4xi1>
    %12 = vector.broadcast %11 : vector<1x4xi1> to vector<32x4xi1>
    %13 = vector.shape_cast %5 : vector<32x1xf32> to vector<32x1xf32>
    %14 = vector.broadcast %13 : vector<32x1xf32> to vector<32x4xf32>
    %15 = vector.broadcast %cst_4 : f32 to vector<32x4xf32>
    %16 = arith.select %12, %14, %15 : vector<32x4xi1>, vector<32x4xf32>
    %17 = arith.addf %1, %16 : vector<32x4xf32>
    %c1_i32 = arith.constant 1 : i32
    %18 = vector.broadcast %c1_i32 : i32 to vector<1x4xi32>
    %19 = arith.cmpi eq, %0, %18 : vector<1x4xi32>
    %cst_5 = arith.constant 0.000000e+00 : f32
    %20 = vector.shape_cast %19 : vector<1x4xi1> to vector<1x4xi1>
    %21 = vector.broadcast %20 : vector<1x4xi1> to vector<32x4xi1>
    %22 = vector.shape_cast %8 : vector<32x1xf32> to vector<32x1xf32>
    %23 = vector.broadcast %22 : vector<32x1xf32> to vector<32x4xf32>
    %24 = vector.broadcast %cst_5 : f32 to vector<32x4xf32>
    %25 = arith.select %21, %23, %24 : vector<32x4xi1>, vector<32x4xf32>
    %26 = arith.addf %17, %25 : vector<32x4xf32>
    %c1 = arith.constant 1 : index
    %c0_6 = arith.constant 0 : index
    %c0_7 = arith.constant 0 : index
    %27 = vector.load %arg1[%c1, %c0_6, %c0_7] : memref<2x32x256xf32, #tpu.memory_space<vmem>>, vector<1x32x256xf32>
    %28 = vector.shape_cast %27 : vector<1x32x256xf32> to vector<32x256xf32>
    %cst_8 = arith.constant dense<0.000000e+00> : vector<32xf32>
    %29 = vector.multi_reduction <add>, %28, %cst_8 [1] : vector<32x256xf32> to vector<32xf32>
    %30 = vector.shape_cast %29 : vector<32xf32> to vector<32x1xf32>
    %31 = arith.mulf %28, %28 : vector<32x256xf32>
    %cst_9 = arith.constant dense<0.000000e+00> : vector<32xf32>
    %32 = vector.multi_reduction <add>, %31, %cst_9 [1] : vector<32x256xf32> to vector<32xf32>
    %33 = vector.shape_cast %32 : vector<32xf32> to vector<32x1xf32>
    %c2_i32 = arith.constant 2 : i32
    %34 = vector.broadcast %c2_i32 : i32 to vector<1x4xi32>
    %35 = arith.cmpi eq, %0, %34 : vector<1x4xi32>
    %cst_10 = arith.constant 0.000000e+00 : f32
    %36 = vector.shape_cast %35 : vector<1x4xi1> to vector<1x4xi1>
    %37 = vector.broadcast %36 : vector<1x4xi1> to vector<32x4xi1>
    %38 = vector.shape_cast %30 : vector<32x1xf32> to vector<32x1xf32>
    %39 = vector.broadcast %38 : vector<32x1xf32> to vector<32x4xf32>
    %40 = vector.broadcast %cst_10 : f32 to vector<32x4xf32>
    %41 = arith.select %37, %39, %40 : vector<32x4xi1>, vector<32x4xf32>
    %42 = arith.addf %26, %41 : vector<32x4xf32>
    %c3_i32 = arith.constant 3 : i32
    %43 = vector.broadcast %c3_i32 : i32 to vector<1x4xi32>
    %44 = arith.cmpi eq, %0, %43 : vector<1x4xi32>
    %cst_11 = arith.constant 0.000000e+00 : f32
    %45 = vector.shape_cast %44 : vector<1x4xi1> to vector<1x4xi1>
    %46 = vector.broadcast %45 : vector<1x4xi1> to vector<32x4xi1>
    %47 = vector.shape_cast %33 : vector<32x1xf32> to vector<32x1xf32>
    %48 = vector.broadcast %47 : vector<32x1xf32> to vector<32x4xf32>
    %49 = vector.broadcast %cst_11 : f32 to vector<32x4xf32>
    %50 = arith.select %46, %48, %49 : vector<32x4xi1>, vector<32x4xf32>
    %51 = arith.addf %42, %50 : vector<32x4xf32>
    %c0_12 = arith.constant 0 : index
    %c0_13 = arith.constant 0 : index
    %52 = vector.load %arg3[%c0_12, %c0_13] : memref<32x32xf32, #tpu.memory_space<vmem>>, vector<32x32xf32>
    %cst_14 = arith.constant dense<0.000000e+00> : vector<32x4xf32>
    %53 = tpu.matmul %52, %51, %cst_14 {dimension_numbers = #tpu.dot_dimension_numbers<[1], [0], [0], [1], [0, 0, 1, 1], [], []>} : vector<32x32xf32>, vector<32x4xf32>, vector<32x4xf32> -> vector<32x4xf32>
    %c0_15 = arith.constant 0 : index
    %c0_16 = arith.constant 0 : index
    %54 = vector.load %arg4[%c0_15, %c0_16] : memref<32x1xf32, #tpu.memory_space<vmem>>, vector<32x1xf32>
    %c0_17 = arith.constant 0 : index
    %c0_18 = arith.constant 0 : index
    %55 = vector.load %arg5[%c0_17, %c0_18] : memref<32x1xf32, #tpu.memory_space<vmem>>, vector<32x1xf32>
    %c0_19 = arith.constant 0 : index
    %c0_20 = arith.constant 0 : index
    %56 = vector.load %arg7[%c0_19, %c0_20] : memref<16x1xf32, #tpu.memory_space<vmem>>, vector<16x1xf32>
    %c0_i32_21 = arith.constant 0 : i32
    %57 = vector.broadcast %c0_i32_21 : i32 to vector<1x4xi32>
    %58 = arith.cmpi eq, %0, %57 : vector<1x4xi32>
    %cst_22 = arith.constant 0.000000e+00 : f32
    %59 = vector.shape_cast %58 : vector<1x4xi1> to vector<1x4xi1>
    %60 = vector.broadcast %59 : vector<1x4xi1> to vector<32x4xi1>
    %61 = vector.broadcast %cst_22 : f32 to vector<32x4xf32>
    %62 = arith.select %60, %53, %61 : vector<32x4xi1>, vector<32x4xf32>
    %cst_23 = arith.constant dense<0.000000e+00> : vector<32xf32>
    %63 = vector.multi_reduction <add>, %62, %cst_23 [1] : vector<32x4xf32> to vector<32xf32>
    %64 = vector.shape_cast %63 : vector<32xf32> to vector<32x1xf32>
    %c1_i32_24 = arith.constant 1 : i32
    %65 = vector.broadcast %c1_i32_24 : i32 to vector<1x4xi32>
    %66 = arith.cmpi eq, %0, %65 : vector<1x4xi32>
    %cst_25 = arith.constant 0.000000e+00 : f32
    %67 = vector.shape_cast %66 : vector<1x4xi1> to vector<1x4xi1>
    %68 = vector.broadcast %67 : vector<1x4xi1> to vector<32x4xi1>
    %69 = vector.broadcast %cst_25 : f32 to vector<32x4xf32>
    %70 = arith.select %68, %53, %69 : vector<32x4xi1>, vector<32x4xf32>
    %cst_26 = arith.constant dense<0.000000e+00> : vector<32xf32>
    %71 = vector.multi_reduction <add>, %70, %cst_26 [1] : vector<32x4xf32> to vector<32xf32>
    %72 = vector.shape_cast %71 : vector<32xf32> to vector<32x1xf32>
    %73 = arith.mulf %64, %64 : vector<32x1xf32>
    %74 = arith.subf %72, %73 : vector<32x1xf32>
    %cst_27 = arith.constant 0.000000e+00 : f32
    %75 = vector.broadcast %cst_27 : f32 to vector<32x1xf32>
    %76 = arith.maximumf %74, %75 : vector<32x1xf32>
    %cst_28 = arith.constant 9.99999974E-6 : f32
    %77 = vector.broadcast %cst_28 : f32 to vector<32x1xf32>
    %78 = arith.addf %76, %77 : vector<32x1xf32>
    %79 = math.rsqrt %78 : vector<32x1xf32>
    %c0_29 = arith.constant 0 : index
    %c0_30 = arith.constant 0 : index
    %c0_31 = arith.constant 0 : index
    %80 = vector.load %arg1[%c0_29, %c0_30, %c0_31] : memref<2x32x256xf32, #tpu.memory_space<vmem>>, vector<1x32x256xf32>
    %81 = vector.shape_cast %80 : vector<1x32x256xf32> to vector<32x256xf32>
    %82 = vector.broadcast %64 : vector<32x1xf32> to vector<32x256xf32>
    %83 = arith.subf %81, %82 : vector<32x256xf32>
    %84 = arith.mulf %79, %54 : vector<32x1xf32>
    %85 = vector.broadcast %84 : vector<32x1xf32> to vector<32x256xf32>
    %86 = arith.mulf %83, %85 : vector<32x256xf32>
    %87 = vector.broadcast %55 : vector<32x1xf32> to vector<32x256xf32>
    %88 = arith.addf %86, %87 : vector<32x256xf32>
    %cst_32 = arith.constant 0.000000e+00 : f32
    %89 = vector.broadcast %cst_32 : f32 to vector<32x256xf32>
    %90 = arith.subf %89, %88 : vector<32x256xf32>
    %91 = math.exp %90 : vector<32x256xf32>
    %cst_33 = arith.constant 1.000000e+00 : f32
    %92 = vector.broadcast %cst_33 : f32 to vector<32x256xf32>
    %93 = arith.addf %92, %91 : vector<32x256xf32>
    %94 = tpu.reciprocal %93 : vector<32x256xf32> -> vector<32x256xf32>
    %95 = arith.mulf %88, %94 : vector<32x256xf32>
    %c17_i32 = arith.constant 17 : i32
    %96 = tpu.dynamic_rotate %95 by %c17_i32 dim 1 : vector<32x256xf32>, i32 -> vector<32x256xf32>
    %c0_34 = arith.constant 0 : index
    %c0_35 = arith.constant 0 : index
    %97 = vector.load %arg2[%c0_34, %c0_35] : memref<8x256xf32, #tpu.memory_space<vmem>>, vector<1x256xf32>
    %98 = vector.broadcast %97 : vector<1x256xf32> to vector<32x256xf32>
    %99 = arith.mulf %96, %98 : vector<32x256xf32>
    %c0_36 = arith.constant 0 : index
    %c0_37 = arith.constant 0 : index
    %100 = vector.load %arg9[%c0_36, %c0_37] : memref<288x512xf32, #tpu.memory_space<vmem>>, vector<32x256xf32>
    tpu.vector_store %arg9[%c0_36, %c0_37], %99 {strides = array<i32>} : memref<288x512xf32, #tpu.memory_space<vmem>>, vector<32x256xf32>,
    %c16_i32 = arith.constant 16 : i32
    %101 = tpu.dynamic_rotate %95 by %c16_i32 dim 1 : vector<32x256xf32>, i32 -> vector<32x256xf32>
    %c1_38 = arith.constant 1 : index
    %c0_39 = arith.constant 0 : index
    %102 = vector.load %arg2[%c1_38, %c0_39] : memref<8x256xf32, #tpu.memory_space<vmem>>, vector<1x256xf32>
    %103 = vector.broadcast %102 : vector<1x256xf32> to vector<32x256xf32>
    %104 = arith.mulf %101, %103 : vector<32x256xf32>
    %c32 = arith.constant 32 : index
    %c0_40 = arith.constant 0 : index
    %105 = vector.load %arg9[%c32, %c0_40] : memref<288x512xf32, #tpu.memory_space<vmem>>, vector<32x256xf32>
    tpu.vector_store %arg9[%c32, %c0_40], %104 {strides = array<i32>} : memref<288x512xf32, #tpu.memory_space<vmem>>, vector<32x256xf32>,
    %c15_i32 = arith.constant 15 : i32
    %106 = tpu.dynamic_rotate %95 by %c15_i32 dim 1 : vector<32x256xf32>, i32 -> vector<32x256xf32>
    %c2 = arith.constant 2 : index
    %c0_41 = arith.constant 0 : index
    %107 = vector.load %arg2[%c2, %c0_41] : memref<8x256xf32, #tpu.memory_space<vmem>>, vector<1x256xf32>
    %108 = vector.broadcast %107 : vector<1x256xf32> to vector<32x256xf32>
    %109 = arith.mulf %106, %108 : vector<32x256xf32>
    %c64 = arith.constant 64 : index
    %c0_42 = arith.constant 0 : index
    %110 = vector.load %arg9[%c64, %c0_42] : memref<288x512xf32, #tpu.memory_space<vmem>>, vector<32x256xf32>
    tpu.vector_store %arg9[%c64, %c0_42], %109 {strides = array<i32>} : memref<288x512xf32, #tpu.memory_space<vmem>>, vector<32x256xf32>,
    %c1_i32_43 = arith.constant 1 : i32
    %111 = tpu.dynamic_rotate %95 by %c1_i32_43 dim 1 : vector<32x256xf32>, i32 -> vector<32x256xf32>
    %c3 = arith.constant 3 : index
    %c0_44 = arith.constant 0 : index
    %112 = vector.load %arg2[%c3, %c0_44] : memref<8x256xf32, #tpu.memory_space<vmem>>, vector<1x256xf32>
    %113 = vector.broadcast %112 : vector<1x256xf32> to vector<32x256xf32>
    %114 = arith.mulf %111, %113 : vector<32x256xf32>
    %c96 = arith.constant 96 : index
    %c0_45 = arith.constant 0 : index
    %115 = vector.load %arg9[%c96, %c0_45] : memref<288x512xf32, #tpu.memory_space<vmem>>, vector<32x256xf32>
    tpu.vector_store %arg9[%c96, %c0_45], %114 {strides = array<i32>} : memref<288x512xf32, #tpu.memory_space<vmem>>, vector<32x256xf32>,
    %c128 = arith.constant 128 : index
    %c0_46 = arith.constant 0 : index
    %116 = vector.load %arg9[%c128, %c0_46] : memref<288x512xf32, #tpu.memory_space<vmem>>, vector<32x256xf32>
    tpu.vector_store %arg9[%c128, %c0_46], %95 {strides = array<i32>} : memref<288x512xf32, #tpu.memory_space<vmem>>, vector<32x256xf32>,
    %c255_i32 = arith.constant 255 : i32
    %117 = tpu.dynamic_rotate %95 by %c255_i32 dim 1 : vector<32x256xf32>, i32 -> vector<32x256xf32>
    %c4 = arith.constant 4 : index
    %c0_47 = arith.constant 0 : index
    %118 = vector.load %arg2[%c4, %c0_47] : memref<8x256xf32, #tpu.memory_space<vmem>>, vector<1x256xf32>
    %119 = vector.broadcast %118 : vector<1x256xf32> to vector<32x256xf32>
    %120 = arith.mulf %117, %119 : vector<32x256xf32>
    %c160 = arith.constant 160 : index
    %c0_48 = arith.constant 0 : index
    %121 = vector.load %arg9[%c160, %c0_48] : memref<288x512xf32, #tpu.memory_space<vmem>>, vector<32x256xf32>
    tpu.vector_store %arg9[%c160, %c0_48], %120 {strides = array<i32>} : memref<288x512xf32, #tpu.memory_space<vmem>>, vector<32x256xf32>,
    %c241_i32 = arith.constant 241 : i32
    %122 = tpu.dynamic_rotate %95 by %c241_i32 dim 1 : vector<32x256xf32>, i32 -> vector<32x256xf32>
    %c5 = arith.constant 5 : index
    %c0_49 = arith.constant 0 : index
    %123 = vector.load %arg2[%c5, %c0_49] : memref<8x256xf32, #tpu.memory_space<vmem>>, vector<1x256xf32>
    %124 = vector.broadcast %123 : vector<1x256xf32> to vector<32x256xf32>
    %125 = arith.mulf %122, %124 : vector<32x256xf32>
    %c192 = arith.constant 192 : index
    %c0_50 = arith.constant 0 : index
    %126 = vector.load %arg9[%c192, %c0_50] : memref<288x512xf32, #tpu.memory_space<vmem>>, vector<32x256xf32>
    tpu.vector_store %arg9[%c192, %c0_50], %125 {strides = array<i32>} : memref<288x512xf32, #tpu.memory_space<vmem>>, vector<32x256xf32>,
    %c240_i32 = arith.constant 240 : i32
    %127 = tpu.dynamic_rotate %95 by %c240_i32 dim 1 : vector<32x256xf32>, i32 -> vector<32x256xf32>
    %c6 = arith.constant 6 : index
    %c0_51 = arith.constant 0 : index
    %128 = vector.load %arg2[%c6, %c0_51] : memref<8x256xf32, #tpu.memory_space<vmem>>, vector<1x256xf32>
    %129 = vector.broadcast %128 : vector<1x256xf32> to vector<32x256xf32>
    %130 = arith.mulf %127, %129 : vector<32x256xf32>
    %c224 = arith.constant 224 : index
    %c0_52 = arith.constant 0 : index
    %131 = vector.load %arg9[%c224, %c0_52] : memref<288x512xf32, #tpu.memory_space<vmem>>, vector<32x256xf32>
    tpu.vector_store %arg9[%c224, %c0_52], %130 {strides = array<i32>} : memref<288x512xf32, #tpu.memory_space<vmem>>, vector<32x256xf32>,
    %c239_i32 = arith.constant 239 : i32
    %132 = tpu.dynamic_rotate %95 by %c239_i32 dim 1 : vector<32x256xf32>, i32 -> vector<32x256xf32>
    %c7 = arith.constant 7 : index
    %c0_53 = arith.constant 0 : index
    %133 = vector.load %arg2[%c7, %c0_53] : memref<8x256xf32, #tpu.memory_space<vmem>>, vector<1x256xf32>
    %134 = vector.broadcast %133 : vector<1x256xf32> to vector<32x256xf32>
    %135 = arith.mulf %132, %134 : vector<32x256xf32>
    %c256 = arith.constant 256 : index
    %c0_54 = arith.constant 0 : index
    %136 = vector.load %arg9[%c256, %c0_54] : memref<288x512xf32, #tpu.memory_space<vmem>>, vector<32x256xf32>
    tpu.vector_store %arg9[%c256, %c0_54], %135 {strides = array<i32>} : memref<288x512xf32, #tpu.memory_space<vmem>>, vector<32x256xf32>,
    %c2_i32_55 = arith.constant 2 : i32
    %137 = vector.broadcast %c2_i32_55 : i32 to vector<1x4xi32>
    %138 = arith.cmpi eq, %0, %137 : vector<1x4xi32>
    %cst_56 = arith.constant 0.000000e+00 : f32
    %139 = vector.shape_cast %138 : vector<1x4xi1> to vector<1x4xi1>
    %140 = vector.broadcast %139 : vector<1x4xi1> to vector<32x4xi1>
    %141 = vector.broadcast %cst_56 : f32 to vector<32x4xf32>
    %142 = arith.select %140, %53, %141 : vector<32x4xi1>, vector<32x4xf32>
    %cst_57 = arith.constant dense<0.000000e+00> : vector<32xf32>
    %143 = vector.multi_reduction <add>, %142, %cst_57 [1] : vector<32x4xf32> to vector<32xf32>
    %144 = vector.shape_cast %143 : vector<32xf32> to vector<32x1xf32>
    %c3_i32_58 = arith.constant 3 : i32
    %145 = vector.broadcast %c3_i32_58 : i32 to vector<1x4xi32>
    %146 = arith.cmpi eq, %0, %145 : vector<1x4xi32>
    %cst_59 = arith.constant 0.000000e+00 : f32
    %147 = vector.shape_cast %146 : vector<1x4xi1> to vector<1x4xi1>
    %148 = vector.broadcast %147 : vector<1x4xi1> to vector<32x4xi1>
    %149 = vector.broadcast %cst_59 : f32 to vector<32x4xf32>
    %150 = arith.select %148, %53, %149 : vector<32x4xi1>, vector<32x4xf32>
    %cst_60 = arith.constant dense<0.000000e+00> : vector<32xf32>
    %151 = vector.multi_reduction <add>, %150, %cst_60 [1] : vector<32x4xf32> to vector<32xf32>
    %152 = vector.shape_cast %151 : vector<32xf32> to vector<32x1xf32>
    %153 = arith.mulf %144, %144 : vector<32x1xf32>
    %154 = arith.subf %152, %153 : vector<32x1xf32>
    %cst_61 = arith.constant 0.000000e+00 : f32
    %155 = vector.broadcast %cst_61 : f32 to vector<32x1xf32>
    %156 = arith.maximumf %154, %155 : vector<32x1xf32>
    %cst_62 = arith.constant 9.99999974E-6 : f32
    %157 = vector.broadcast %cst_62 : f32 to vector<32x1xf32>
    %158 = arith.addf %156, %157 : vector<32x1xf32>
    %159 = math.rsqrt %158 : vector<32x1xf32>
    %c1_63 = arith.constant 1 : index
    %c0_64 = arith.constant 0 : index
    %c0_65 = arith.constant 0 : index
    %160 = vector.load %arg1[%c1_63, %c0_64, %c0_65] : memref<2x32x256xf32, #tpu.memory_space<vmem>>, vector<1x32x256xf32>
    %161 = vector.shape_cast %160 : vector<1x32x256xf32> to vector<32x256xf32>
    %162 = vector.broadcast %144 : vector<32x1xf32> to vector<32x256xf32>
    %163 = arith.subf %161, %162 : vector<32x256xf32>
    %164 = arith.mulf %159, %54 : vector<32x1xf32>
    %165 = vector.broadcast %164 : vector<32x1xf32> to vector<32x256xf32>
    %166 = arith.mulf %163, %165 : vector<32x256xf32>
    %167 = vector.broadcast %55 : vector<32x1xf32> to vector<32x256xf32>
    %168 = arith.addf %166, %167 : vector<32x256xf32>
    %cst_66 = arith.constant 0.000000e+00 : f32
    %169 = vector.broadcast %cst_66 : f32 to vector<32x256xf32>
    %170 = arith.subf %169, %168 : vector<32x256xf32>
    %171 = math.exp %170 : vector<32x256xf32>
    %cst_67 = arith.constant 1.000000e+00 : f32
    %172 = vector.broadcast %cst_67 : f32 to vector<32x256xf32>
    %173 = arith.addf %172, %171 : vector<32x256xf32>
    %174 = tpu.reciprocal %173 : vector<32x256xf32> -> vector<32x256xf32>
    %175 = arith.mulf %168, %174 : vector<32x256xf32>
    %c17_i32_68 = arith.constant 17 : i32
    %176 = tpu.dynamic_rotate %175 by %c17_i32_68 dim 1 : vector<32x256xf32>, i32 -> vector<32x256xf32>
    %c0_69 = arith.constant 0 : index
    %c0_70 = arith.constant 0 : index
    %177 = vector.load %arg2[%c0_69, %c0_70] : memref<8x256xf32, #tpu.memory_space<vmem>>, vector<1x256xf32>
    %178 = vector.broadcast %177 : vector<1x256xf32> to vector<32x256xf32>
    %179 = arith.mulf %176, %178 : vector<32x256xf32>
    %c0_71 = arith.constant 0 : index
    %c256_72 = arith.constant 256 : index
    %180 = vector.load %arg9[%c0_71, %c256_72] : memref<288x512xf32, #tpu.memory_space<vmem>>, vector<32x256xf32>
    tpu.vector_store %arg9[%c0_71, %c256_72], %179 {strides = array<i32>} : memref<288x512xf32, #tpu.memory_space<vmem>>, vector<32x256xf32>,
    %c16_i32_73 = arith.constant 16 : i32
    %181 = tpu.dynamic_rotate %175 by %c16_i32_73 dim 1 : vector<32x256xf32>, i32 -> vector<32x256xf32>
    %c1_74 = arith.constant 1 : index
    %c0_75 = arith.constant 0 : index
    %182 = vector.load %arg2[%c1_74, %c0_75] : memref<8x256xf32, #tpu.memory_space<vmem>>, vector<1x256xf32>
    %183 = vector.broadcast %182 : vector<1x256xf32> to vector<32x256xf32>
    %184 = arith.mulf %181, %183 : vector<32x256xf32>
    %c32_76 = arith.constant 32 : index
    %c256_77 = arith.constant 256 : index
    %185 = vector.load %arg9[%c32_76, %c256_77] : memref<288x512xf32, #tpu.memory_space<vmem>>, vector<32x256xf32>
    tpu.vector_store %arg9[%c32_76, %c256_77], %184 {strides = array<i32>} : memref<288x512xf32, #tpu.memory_space<vmem>>, vector<32x256xf32>,
    %c15_i32_78 = arith.constant 15 : i32
    %186 = tpu.dynamic_rotate %175 by %c15_i32_78 dim 1 : vector<32x256xf32>, i32 -> vector<32x256xf32>
    %c2_79 = arith.constant 2 : index
    %c0_80 = arith.constant 0 : index
    %187 = vector.load %arg2[%c2_79, %c0_80] : memref<8x256xf32, #tpu.memory_space<vmem>>, vector<1x256xf32>
    %188 = vector.broadcast %187 : vector<1x256xf32> to vector<32x256xf32>
    %189 = arith.mulf %186, %188 : vector<32x256xf32>
    %c64_81 = arith.constant 64 : index
    %c256_82 = arith.constant 256 : index
    %190 = vector.load %arg9[%c64_81, %c256_82] : memref<288x512xf32, #tpu.memory_space<vmem>>, vector<32x256xf32>
    tpu.vector_store %arg9[%c64_81, %c256_82], %189 {strides = array<i32>} : memref<288x512xf32, #tpu.memory_space<vmem>>, vector<32x256xf32>,
    %c1_i32_83 = arith.constant 1 : i32
    %191 = tpu.dynamic_rotate %175 by %c1_i32_83 dim 1 : vector<32x256xf32>, i32 -> vector<32x256xf32>
    %c3_84 = arith.constant 3 : index
    %c0_85 = arith.constant 0 : index
    %192 = vector.load %arg2[%c3_84, %c0_85] : memref<8x256xf32, #tpu.memory_space<vmem>>, vector<1x256xf32>
    %193 = vector.broadcast %192 : vector<1x256xf32> to vector<32x256xf32>
    %194 = arith.mulf %191, %193 : vector<32x256xf32>
    %c96_86 = arith.constant 96 : index
    %c256_87 = arith.constant 256 : index
    %195 = vector.load %arg9[%c96_86, %c256_87] : memref<288x512xf32, #tpu.memory_space<vmem>>, vector<32x256xf32>
    tpu.vector_store %arg9[%c96_86, %c256_87], %194 {strides = array<i32>} : memref<288x512xf32, #tpu.memory_space<vmem>>, vector<32x256xf32>,
    %c128_88 = arith.constant 128 : index
    %c256_89 = arith.constant 256 : index
    %196 = vector.load %arg9[%c128_88, %c256_89] : memref<288x512xf32, #tpu.memory_space<vmem>>, vector<32x256xf32>
    tpu.vector_store %arg9[%c128_88, %c256_89], %175 {strides = array<i32>} : memref<288x512xf32, #tpu.memory_space<vmem>>, vector<32x256xf32>,
    %c255_i32_90 = arith.constant 255 : i32
    %197 = tpu.dynamic_rotate %175 by %c255_i32_90 dim 1 : vector<32x256xf32>, i32 -> vector<32x256xf32>
    %c4_91 = arith.constant 4 : index
    %c0_92 = arith.constant 0 : index
    %198 = vector.load %arg2[%c4_91, %c0_92] : memref<8x256xf32, #tpu.memory_space<vmem>>, vector<1x256xf32>
    %199 = vector.broadcast %198 : vector<1x256xf32> to vector<32x256xf32>
    %200 = arith.mulf %197, %199 : vector<32x256xf32>
    %c160_93 = arith.constant 160 : index
    %c256_94 = arith.constant 256 : index
    %201 = vector.load %arg9[%c160_93, %c256_94] : memref<288x512xf32, #tpu.memory_space<vmem>>, vector<32x256xf32>
    tpu.vector_store %arg9[%c160_93, %c256_94], %200 {strides = array<i32>} : memref<288x512xf32, #tpu.memory_space<vmem>>, vector<32x256xf32>,
    %c241_i32_95 = arith.constant 241 : i32
    %202 = tpu.dynamic_rotate %175 by %c241_i32_95 dim 1 : vector<32x256xf32>, i32 -> vector<32x256xf32>
    %c5_96 = arith.constant 5 : index
    %c0_97 = arith.constant 0 : index
    %203 = vector.load %arg2[%c5_96, %c0_97] : memref<8x256xf32, #tpu.memory_space<vmem>>, vector<1x256xf32>
    %204 = vector.broadcast %203 : vector<1x256xf32> to vector<32x256xf32>
    %205 = arith.mulf %202, %204 : vector<32x256xf32>
    %c192_98 = arith.constant 192 : index
    %c256_99 = arith.constant 256 : index
    %206 = vector.load %arg9[%c192_98, %c256_99] : memref<288x512xf32, #tpu.memory_space<vmem>>, vector<32x256xf32>
    tpu.vector_store %arg9[%c192_98, %c256_99], %205 {strides = array<i32>} : memref<288x512xf32, #tpu.memory_space<vmem>>, vector<32x256xf32>,
    %c240_i32_100 = arith.constant 240 : i32
    %207 = tpu.dynamic_rotate %175 by %c240_i32_100 dim 1 : vector<32x256xf32>, i32 -> vector<32x256xf32>
    %c6_101 = arith.constant 6 : index
    %c0_102 = arith.constant 0 : index
    %208 = vector.load %arg2[%c6_101, %c0_102] : memref<8x256xf32, #tpu.memory_space<vmem>>, vector<1x256xf32>
    %209 = vector.broadcast %208 : vector<1x256xf32> to vector<32x256xf32>
    %210 = arith.mulf %207, %209 : vector<32x256xf32>
    %c224_103 = arith.constant 224 : index
    %c256_104 = arith.constant 256 : index
    %211 = vector.load %arg9[%c224_103, %c256_104] : memref<288x512xf32, #tpu.memory_space<vmem>>, vector<32x256xf32>
    tpu.vector_store %arg9[%c224_103, %c256_104], %210 {strides = array<i32>} : memref<288x512xf32, #tpu.memory_space<vmem>>, vector<32x256xf32>,
    %c239_i32_105 = arith.constant 239 : i32
    %212 = tpu.dynamic_rotate %175 by %c239_i32_105 dim 1 : vector<32x256xf32>, i32 -> vector<32x256xf32>
    %c7_106 = arith.constant 7 : index
    %c0_107 = arith.constant 0 : index
    %213 = vector.load %arg2[%c7_106, %c0_107] : memref<8x256xf32, #tpu.memory_space<vmem>>, vector<1x256xf32>
    %214 = vector.broadcast %213 : vector<1x256xf32> to vector<32x256xf32>
    %215 = arith.mulf %212, %214 : vector<32x256xf32>
    %c256_108 = arith.constant 256 : index
    %c256_109 = arith.constant 256 : index
    %216 = vector.load %arg9[%c256_108, %c256_109] : memref<288x512xf32, #tpu.memory_space<vmem>>, vector<32x256xf32>
    tpu.vector_store %arg9[%c256_108, %c256_109], %215 {strides = array<i32>} : memref<288x512xf32, #tpu.memory_space<vmem>>, vector<32x256xf32>,
    %c0_110 = arith.constant 0 : index
    %c0_111 = arith.constant 0 : index
    %217 = vector.load %arg6[%c0_110, %c0_111] : memref<16x288xf32, #tpu.memory_space<vmem>>, vector<16x288xf32>
    %c0_112 = arith.constant 0 : index
    %c0_113 = arith.constant 0 : index
    %218 = vector.load %arg9[%c0_112, %c0_113] : memref<288x512xf32, #tpu.memory_space<vmem>>, vector<288x512xf32>
    %cst_114 = arith.constant dense<0.000000e+00> : vector<16x512xf32>
    %219 = tpu.matmul %217, %218, %cst_114 {dimension_numbers = #tpu.dot_dimension_numbers<[1], [0], [0], [1], [0, 0, 1, 1], [], []>} : vector<16x288xf32>, vector<288x512xf32>, vector<16x512xf32> -> vector<16x512xf32>
    %220 = vector.broadcast %56 : vector<16x1xf32> to vector<16x512xf32>
    %221 = arith.addf %219, %220 : vector<16x512xf32>
    %222 = vector.extract_strided_slice %221 {offsets = [0, 0], sizes = [16, 256], strides = [1, 1]} : vector<16x512xf32> to vector<16x256xf32>
    %c0_115 = arith.constant 0 : index
    %c0_116 = arith.constant 0 : index
    %c0_117 = arith.constant 0 : index
    %223 = vector.load %arg8[%c0_115, %c0_116, %c0_117] : memref<2x16x256xf32, #tpu.memory_space<vmem>>, vector<1x16x256xf32>
    %224 = vector.shape_cast %223 : vector<1x16x256xf32> to vector<16x256xf32>
    %225 = vector.shape_cast %222 : vector<16x256xf32> to vector<1x16x256xf32>
    tpu.vector_store %arg8[%c0_115, %c0_116, %c0_117], %225 {strides = array<i32>} : memref<2x16x256xf32, #tpu.memory_space<vmem>>, vector<1x16x256xf32>,
    %226 = vector.extract_strided_slice %221 {offsets = [0, 256], sizes = [16, 256], strides = [1, 1]} : vector<16x512xf32> to vector<16x256xf32>
    %c1_118 = arith.constant 1 : index
    %c0_119 = arith.constant 0 : index
    %c0_120 = arith.constant 0 : index
    %227 = vector.load %arg8[%c1_118, %c0_119, %c0_120] : memref<2x16x256xf32, #tpu.memory_space<vmem>>, vector<1x16x256xf32>
    %228 = vector.shape_cast %227 : vector<1x16x256xf32> to vector<16x256xf32>
    %229 = vector.shape_cast %226 : vector<16x256xf32> to vector<1x16x256xf32>
    tpu.vector_store %arg8[%c1_118, %c0_119, %c0_120], %229 {strides = array<i32>} : memref<2x16x256xf32, #tpu.memory_space<vmem>>, vector<1x16x256xf32>,
    return
  }
  func.func @transform_0(%arg0: i32) -> (i32, i32, i32) {
    %c0_i32 = arith.constant 0 : i32
    %c0_i32_0 = arith.constant 0 : i32
    %c0_i32_1 = arith.constant 0 : i32
    return %arg0, %c0_i32, %c0_i32_0 : i32, i32, i32
  }
  func.func @transform_1(%arg0: i32) -> (i32, i32) {
    %c0_i32 = arith.constant 0 : i32
    %c0_i32_0 = arith.constant 0 : i32
    %c0_i32_1 = arith.constant 0 : i32
    return %c0_i32, %c0_i32_0 : i32, i32
  }
  func.func @transform_2(%arg0: i32) -> (i32, i32) {
    %c0_i32 = arith.constant 0 : i32
    %c0_i32_0 = arith.constant 0 : i32
    %c0_i32_1 = arith.constant 0 : i32
    return %c0_i32, %c0_i32_0 : i32, i32
  }
  func.func @transform_3(%arg0: i32) -> (i32, i32) {
    %c0_i32 = arith.constant 0 : i32
    %c0_i32_0 = arith.constant 0 : i32
    %c0_i32_1 = arith.constant 0 : i32
    return %c0_i32, %c0_i32_0 : i32, i32
  }
  func.func @transform_4(%arg0: i32) -> (i32, i32) {
    %c0_i32 = arith.constant 0 : i32
    %c0_i32_0 = arith.constant 0 : i32
    %c0_i32_1 = arith.constant 0 : i32
    return %c0_i32, %c0_i32_0 : i32, i32
  }
  func.func @transform_5(%arg0: i32) -> (i32, i32) {
    %c0_i32 = arith.constant 0 : i32
    %c0_i32_0 = arith.constant 0 : i32
    %c0_i32_1 = arith.constant 0 : i32
    return %c0_i32, %c0_i32_0 : i32, i32
  }
  func.func @transform_6(%arg0: i32) -> (i32, i32) {
    %c0_i32 = arith.constant 0 : i32
    %c0_i32_0 = arith.constant 0 : i32
    %c0_i32_1 = arith.constant 0 : i32
    return %c0_i32, %c0_i32_0 : i32, i32
  }
  func.func @transform_7(%arg0: i32) -> (i32, i32, i32) {
    %c0_i32 = arith.constant 0 : i32
    %c0_i32_0 = arith.constant 0 : i32
    %c0_i32_1 = arith.constant 0 : i32
    return %arg0, %c0_i32, %c0_i32_0 : i32, i32, i32
  }
}

</mosaic_0001>

<bundles_post_ra>
// kernel: tpu_custom_call.1
= control target key start
LH: loop header
LB: loop body
LE: loop exit
PB: predicated region body
PF: predicated region fallthrough
CT: control target
= control target key end

     0   :  { %12 = vsyncpa [#allocation4], 0  ;;  %s3868_s0 = inlined_call_operand.hbm [shape: f32[2,32,256], index: 0, kind: input, shape index: {}]   ;;  %s3869_s1 = inlined_call_operand.hbm [shape: f32[8,256], index: 1, kind: input, shape index: {}]   ;;  %s3870_s2 = inlined_call_operand.vmem [shape: f32[32,32], index: 2, kind: input, shape index: {}]   ;;  %s3871_s3 = inlined_call_operand.vmem [shape: f32[32,1], index: 3, kind: input, shape index: {}]   ;;  %s3872_s4 = inlined_call_operand.vmem [shape: f32[32,1], index: 4, kind: input, shape index: {}]   ;;  %s3873_s5 = inlined_call_operand.vmem [shape: f32[16,288], index: 5, kind: input, shape index: {}]   ;;  %s3874_s6 = inlined_call_operand.vmem [shape: f32[16,1], index: 6, kind: input, shape index: {}]   ;;  %s3875_s7 = inlined_call_operand.hbm [shape: f32[2,16,256], index: 7, kind: output, shape index: {}]  }
   0x1   :  { %13 = vsyncpa [#allocation7], 0 }
   0x2   :  { %14 = vsyncpa [#allocation5], 0  ;;  %s19_s26 = sshll.u32 %s3868_s0, 4  ;;  %s2275_s27 = smov [#allocation3]   ;;  %s20_s26 = int_to_ptr.hbm [resolvable:$true] %s19_s26 }
   0x3   :  { %s21_s28 = sshll.u32 %s2275_s27, 4  ;;  %s33_s8 = sshll.u32 %s3869_s1, 4  ;;  %s22_s28 = int_to_ptr.vmem [resolvable:$true] %s21_s28  ;;  %s34_s8 = int_to_ptr.hbm [resolvable:$true] %s33_s8 }
   0x4   :  { %s2276_s9 = smov 256   ;;  %s2277_s10 = smov 16  }
   0x5   :  { %27 = dma.hbm_to_vmem [thread:$0]  %s20_s26, 2048, %s22_s28, [#allocation4], %s2276_s9, %s2276_s9, %s2277_s10  }
   0x6   :  { %s2278_s11 = smov [#allocation6]  }
   0x7   :  { %s35_s12 = sshll.u32 %s2278_s11, 4  ;;  %s36_s12 = int_to_ptr.vmem [resolvable:$true] %s35_s12 }
   0x8   :  { %38 = dma.hbm_to_vmem [thread:$0]  %s34_s8, 256, %s36_s12, [#allocation7]  }
   0x9   :  { %2269 = dma.done.wait [#allocation4], 2048  }
   0xa   :  { %2270 = vsyncadd [#allocation4], 4294965248 }
   0xb   :  { %2271 = dma.done.wait [#allocation7], 256  }
   0xc   :  { %2272 = vsyncadd [#allocation7], 4294967040  ;;  %v128_v0 = vld [vmem:[#allocation3 + $0x70] sm:$0xff]  ;;  %v129_v1 = vld [vmem:[#allocation3 + $0x78] sm:$0xff]  ;;  %v57_v48 = vlaneseq  ;;  %vm188_vm4 = vcmask 261120   ;;  %vm244_vm5 = vcmask 31744  }
   0xd   :  { %v65_v2 = vld [vmem:[#allocation3 + $0x30] sm:$0xff]  ;;  %v139_v3 = vadd.f32 %v129_v1, %v128_v0  ;;  %v66_v4 = vld [vmem:[#allocation3 + $0x38] sm:$0xff]  ;;  %v63_v5 = vld [vmem:[#allocation3 + $0x20] sm:$0xff]  ;;  %v148_v18 = vmul.f32 %v128_v0, %v128_v0  ;;  %v149_v19 = vmul.f32 %v129_v1, %v129_v1  ;;  %s2281_s12 = smov 15   ;;  %s2282_s0 = smov 127  }
   0xe   :  { %v64_v6 = vld [vmem:[#allocation3 + $0x28] sm:$0xff]  ;;  %v76_v7 = vadd.f32 %v66_v4, %v65_v2  ;;  %v85_v9 = vmul.f32 %v65_v2, %v65_v2  ;;  %v86_v10 = vmul.f32 %v66_v4, %v66_v4  ;;  %v83_v11 = vmul.f32 %v63_v5, %v63_v5  ;;  %v2337_v13 = vld [vmem:[#allocation3 + $0x10] sm:$0xff]  ;;  %v2339_v14 = vld [vmem:[#allocation3 + $0x18] sm:$0xff]  ;;  %s2283_s1 = smov 1   ;;  %s2284_s13 = smov 113  }
   0xf   :  { %v73_v8 = vadd.f32 %v64_v6, %v63_v5  ;;  %140 = vadd.xlane.f32.xlu2 %v139_v3  ;;  %v84_v12 = vmul.f32 %v64_v6, %v64_v6  ;;  %v70_v15 = vadd.f32 %v2339_v14, %v2337_v13  ;;  %v81_v20 = vmul.f32 %v2337_v13, %v2337_v13  ;;  %v2347_v22 = vld [vmem:[#allocation3 + $0x60] sm:$0xff]  ;;  %v2349_v23 = vld [vmem:[#allocation3 + $0x68] sm:$0xff]  ;;  %v124_v29 = vld [vmem:[#allocation3 + $0x50] sm:$0xff]  ;;  %s2285_s14 = smov 112   ;;  %s2286_s15 = smov 111  }
  0x10   :  { %77 = vadd.xlane.f32.xlu0 %v76_v7  ;;  %v96_v16 = vadd.f32 %v86_v10, %v85_v9  ;;  %v82_v21 = vmul.f32 %v2339_v14, %v2339_v14  ;;  %v159_v24 = vadd.f32 %v149_v19, %v148_v18  ;;  %v136_v25 = vadd.f32 %v2349_v23, %v2347_v22  ;;  %v2353_v27 = vld [vmem:[#allocation3] sm:$0xff]  ;;  %v2355_v28 = vld [vmem:[#allocation3 + $0x8] sm:$0xff]  ;;  %v125_v30 = vld [vmem:[#allocation3 + $0x58] sm:$0xff]  ;;  %s2069_s11 = sshll.u32 %s3875_s7, 4  ;;  %s2070_s11 = int_to_ptr.hbm [resolvable:$true] %s2069_s11 }
  0x11   :  { %74 = vadd.xlane.f32.xlu1 %v73_v8  ;;  %v93_v17 = vadd.f32 %v84_v12, %v83_v11  ;;  %v79_v31 = vmul.f32 %v2353_v27, %v2353_v27  ;;  %v80_v32 = vmul.f32 %v2355_v28, %v2355_v28  ;;  %v133_v33 = vadd.f32 %v125_v30, %v124_v29  ;;  %v2367_v40 = vld [vmem:[#allocation3 + $0x40] sm:$0xff]  ;;  %v2369_v41 = vld [vmem:[#allocation3 + $0x48] sm:$0xff] }
  0x12   :  { %v90_v26 = vadd.f32 %v82_v21, %v81_v20  ;;  %v67_v35 = vadd.f32 %v2355_v28, %v2353_v27  ;;  %v144_v36 = vmul.f32 %v124_v29, %v124_v29  ;;  %v145_v37 = vmul.f32 %v125_v30, %v125_v30 }
  0x13   :  { %v87_v34 = vadd.f32 %v80_v32, %v79_v31  ;;  %v146_v38 = vmul.f32 %v2347_v22, %v2347_v22  ;;  %v147_v39 = vmul.f32 %v2349_v23, %v2349_v23  ;;  %v130_v43 = vadd.f32 %v2369_v41, %v2367_v40  ;;  %v234_v31 = vld [vmem:[%s3872_s4] sm:$0xff]  ;;  %v235_v32 = vld [vmem:[%s3872_s4 + $0x8] sm:$0xff] }
  0x14   :  { %v153_v42 = vadd.f32 %v145_v37, %v144_v36  ;;  %v142_v45 = vmul.f32 %v2367_v40, %v2367_v40  ;;  %v143_v46 = vmul.f32 %v2369_v41, %v2369_v41  ;;  %v2377_v52 = vand.u32 127, %v57_v48 }
  0x15   :  { %v156_v44 = vadd.f32 %v147_v39, %v146_v38 }
  0x16   :  { %v150_v47 = vadd.f32 %v143_v46, %v142_v45  ;;  %vm110_vm0 = vcmp.eq.s32.totalorder %v2377_v52, 1  ;;  %vm99_vm1 = vcmp.eq.s32.totalorder %v2377_v52, 0  ;;  %vm162_vm2 = vcmp.eq.s32.totalorder %v2377_v52, 2  ;;  %v186_v45 = vld [vmem:[%s3870_s2 + $0x10] sm:$0xff]  ;;  %v187_v46 = vld [vmem:[%s3870_s2 + $0x18] sm:$0xff] }
  0x17   :  { %71 = vadd.xlane.f32.xlu2 %v70_v15  ;;  %vm173_vm3 = vcmp.eq.s32.totalorder %v2377_v52, 3 }
  0x18   :  { %97 = vadd.xlane.f32.xlu0 %v96_v16 }
  0x19   :  { %94 = vadd.xlane.f32.xlu1 %v93_v17 }
  0x1f   :  { %160 = vadd.xlane.f32.xlu2 %v159_v24 }
  0x20   :  { %91 = vadd.xlane.f32.xlu0 %v90_v26 }
  0x21   :  { %137 = vadd.xlane.f32.xlu1 %v136_v25 }
  0x27   :  { %134 = vadd.xlane.f32.xlu2 %v133_v33 }
  0x28   :  { %68 = vadd.xlane.f32.xlu0 %v67_v35  ;;  %v237_v35 = vld [vmem:[%s3872_s4 + $0x18] sm:$0xff] }
  0x29   :  { %88 = vadd.xlane.f32.xlu1 %v87_v34  ;;  %v2279_v34 = vmov 0  }
  0x2a   :  { %2108 = vset.pattern.permute.xlu1 %v2279_v34  ;;  %2109 = vset.pattern.permute.xlu2 %v2279_v34 }
  0x2b   :  { %2110 = vset.pattern.permute.xlu0 %v2279_v34 }
  0x2f   :  { %154 = vadd.xlane.f32.xlu2 %v153_v42  ;;  %v184_v42 = vld [vmem:[%s3870_s2] sm:$0xff] }
  0x30   :  { %157 = vadd.xlane.f32.xlu0 %v156_v44  ;;  %v185_v44 = vld [vmem:[%s3870_s2 + $0x8] sm:$0xff] }
  0x31   :  { %131 = vadd.xlane.f32.xlu1 %v130_v43  ;;  %v236_v43 = vld [vmem:[%s3872_s4 + $0x10] sm:$0xff] }
  0x38   :  { %151 = vadd.xlane.f32.xlu0 %v150_v47 }
  0x47   :  { %376 = vperm.xlu2 %2109, %v235_v32  }
  0x4a   :  { %371 = vperm.xlu1 %2108, %v234_v31  }
  0x4c   :  { %386 = vperm.xlu0 %2110, %v237_v35  }
  0x52   :  { %381 = vperm.xlu1 %2108, %v236_v43  }
  0x82   :  { %v141_v49 = vpop.xlane.xlu2 %140 }
  0x83   :  { %v78_v50 = vpop.xlane.xlu0 %77  ;;  %v168_v59 = vsel %vm162_vm2, %v141_v49, 0.0 }
  0x84   :  { %v75_v51 = vpop.xlane.xlu1 %74  ;;  %v105_v57 = vsel %vm99_vm1, %v78_v50, 0.0 }
  0x85   :  { %v104_v6 = vsel %vm99_vm1, %v75_v51, 0.0 }
  0x8a   :  { %v72_v53 = vpop.xlane.xlu2 %71 }
  0x8b   :  { %v98_v54 = vpop.xlane.xlu0 %97  ;;  %v103_v10 = vsel %vm99_vm1, %v72_v53, 0.0 }
  0x8c   :  { %v95_v55 = vpop.xlane.xlu1 %94  ;;  %v116_v56 = vsel %vm110_vm0, %v98_v54, 0.0 }
  0x8d   :  { %v120_v58 = vadd.f32 %v116_v56, %v105_v57  ;;  %v115_v5 = vsel %vm110_vm0, %v95_v55, 0.0 }
  0x8e   :  { %v119_v9 = vadd.f32 %v115_v5, %v104_v6 }
  0x8f   :  { %v172_v61 = vadd.f32 %v168_v59, %v120_v58 }
  0x92   :  { %v161_v60 = vpop.xlane.xlu2 %160 }
  0x93   :  { %v92_v63 = vpop.xlane.xlu0 %91  ;;  %v179_v0 = vsel %vm173_vm3, %v161_v60, 0.0 }
  0x94   :  { %v138_v62 = vpop.xlane.xlu1 %137  ;;  %v183_v1 = vadd.f32 %v179_v0, %v172_v61  ;;  %v114_v8 = vsel %vm110_vm0, %v92_v63, 0.0 }
  0x95   :  { %v167_v7 = vsel %vm162_vm2, %v138_v62, 0.0  ;;  %v118_v16 = vadd.f32 %v114_v8, %v103_v10 }
  0x96   :  { %213 = vmatpush.msra.mxu0 %v183_v1  ;;  %v171_v15 = vadd.f32 %v167_v7, %v119_v9 }
  0x9a   :  { %v135_v2 = vpop.xlane.xlu2 %134 }
  0x9b   :  { %v69_v4 = vpop.xlane.xlu0 %68  ;;  %v166_v11 = vsel %vm162_vm2, %v135_v2, 0.0 }
  0x9c   :  { %v89_v3 = vpop.xlane.xlu1 %88  ;;  %v170_v20 = vadd.f32 %v166_v11, %v118_v16  ;;  %v102_v26 = vsel %vm99_vm1, %v69_v4, 0.0 }
  0x9d   :  { %v113_v25 = vsel %vm110_vm0, %v89_v3, 0.0 }
  0x9e   :  { %v117_v33 = vadd.f32 %v113_v25, %v102_v26 }
  0xa2   :  { %v155_v12 = vpop.xlane.xlu2 %154 }
  0xa3   :  { %v158_v17 = vpop.xlane.xlu0 %157  ;;  %v177_v18 = vsel %vm173_vm3, %v155_v12, 0.0 }
  0xa4   :  { %v178_v19 = vsel %vm173_vm3, %v158_v17, 0.0  ;;  %v132_v21 = vpop.xlane.xlu1 %131  ;;  %v181_v29 = vadd.f32 %v177_v18, %v170_v20 }
  0xa5   :  { %v182_v24 = vadd.f32 %v178_v19, %v171_v15  ;;  %v165_v30 = vsel %vm162_vm2, %v132_v21, 0.0 }
  0xa6   :  { %v169_v36 = vadd.f32 %v165_v30, %v117_v33 }
  0xa7   :  { %214 = vmatpush.msra.mxu0 %v182_v24 }
  0xa9   :  { %215 = vmatpush.msra.mxu0 %v181_v29 }
  0xaa   :  { %v2493_v25 = vpop.permute.xlu2 %376 }
  0xab   :  { %v152_v37 = vpop.xlane.xlu0 %151 }
  0xac   :  { %v176_v38 = vsel %vm173_vm3, %v152_v37, 0.0 }
  0xad   :  { %v180_v39 = vadd.f32 %v176_v38, %v169_v36 }
  0xaf   :  { %216 = vmatpush.msra.mxu0 %v180_v39 }
  0xb0   :  { %2083 = vmatmul.msk.f32.vlgmr.msra.gmra.mxu0 %vm188_vm4, %v184_v42 }
  0xb8   :  { %2084 = vmatmul.msk.f32.gmra.mxu0 %vm188_vm4, %v185_v44 }
  0xbc   :  { %v2491_v24 = vpop.permute.xlu1 %371 }
  0xbe   :  { %v2497_v29 = vpop.permute.xlu0 %386 }
  0xc0   :  { %2085 = vmatmul.msk.f32.gmra.mxu0 %vm188_vm4, %v186_v45 }
  0xc4   :  { %v2495_v26 = vpop.permute.xlu1 %381 }
  0xc8   :  { %2086 = vmatmul.msk.f32.gmra.mxu0 %vm188_vm4, %v187_v46 }
 0x12d   :  { %v218_v47 = vpop.f32.mrf.mxu0 }
 0x12e   :  { %v257_v48 = vsel %vm110_vm0, %v218_v47, 0.0  ;;  %v240_v49 = vsel %vm99_vm1, %v218_v47, 0.0  ;;  %v940_v53 = vsel %vm162_vm2, %v218_v47, 0.0  ;;  %v956_v54 = vsel %vm173_vm3, %v218_v47, 0.0 }
 0x12f   :  { %v261_v50 = vsel %vm244_vm5, %v257_v48, 0.0  ;;  %v245_v51 = vsel %vm244_vm5, %v240_v49, 0.0  ;;  %v944_v57 = vsel %vm244_vm5, %v940_v53, 0.0  ;;  %v960_v58 = vsel %vm244_vm5, %v956_v54, 0.0 }
 0x130   :  { %262 = vadd.xlane.f32.xlu2 %v261_v50  ;;  %246 = vadd.xlane.f32.xlu1 %v245_v51 }
 0x135   :  { %v221_v55 = vpop.f32.mrf.mxu0 }
 0x136   :  { %v258_v56 = vsel %vm110_vm0, %v221_v55, 0.0  ;;  %v241_v60 = vsel %vm99_vm1, %v221_v55, 0.0  ;;  %v957_v61 = vsel %vm173_vm3, %v221_v55, 0.0  ;;  %v941_v3 = vsel %vm162_vm2, %v221_v55, 0.0 }
 0x137   :  { %v264_v59 = vsel %vm244_vm5, %v258_v56, 0.0  ;;  %v248_v63 = vsel %vm244_vm5, %v241_v60, 0.0  ;;  %v963_v0 = vsel %vm244_vm5, %v957_v61, 0.0  ;;  %v947_v6 = vsel %vm244_vm5, %v941_v3, 0.0 }
 0x138   :  { %945 = vadd.xlane.f32.xlu2 %v944_v57  ;;  %961 = vadd.xlane.f32.xlu1 %v960_v58 }
 0x139   :  { %265 = vadd.xlane.f32.xlu0 %v264_v59 }
 0x13d   :  { %v224_v62 = vpop.f32.mrf.mxu0 }
 0x13e   :  { %v259_v1 = vsel %vm110_vm0, %v224_v62, 0.0  ;;  %v942_v4 = vsel %vm162_vm2, %v224_v62, 0.0  ;;  %v242_v5 = vsel %vm99_vm1, %v224_v62, 0.0  ;;  %v958_v10 = vsel %vm173_vm3, %v224_v62, 0.0 }
 0x13f   :  { %v267_v2 = vsel %vm244_vm5, %v259_v1, 0.0  ;;  %v950_v7 = vsel %vm244_vm5, %v942_v4, 0.0  ;;  %v251_v8 = vsel %vm244_vm5, %v242_v5, 0.0  ;;  %v966_v15 = vsel %vm244_vm5, %v958_v10, 0.0  ;;  %v230_v1 = vld [vmem:[%s3871_s3] sm:$0xff] }
 0x140   :  { %249 = vadd.xlane.f32.xlu2 %v248_v63  ;;  %268 = vadd.xlane.f32.xlu1 %v267_v2 }
 0x141   :  { %964 = vadd.xlane.f32.xlu0 %v963_v0 }
 0x145   :  { %v227_v9 = vpop.f32.mrf.mxu0 }
 0x146   :  { %v260_v11 = vsel %vm110_vm0, %v227_v9, 0.0  ;;  %v959_v12 = vsel %vm173_vm3, %v227_v9, 0.0  ;;  %v943_v18 = vsel %vm162_vm2, %v227_v9, 0.0  ;;  %v243_v19 = vsel %vm99_vm1, %v227_v9, 0.0 }
 0x147   :  { %v270_v16 = vsel %vm244_vm5, %v260_v11, 0.0  ;;  %v969_v17 = vsel %vm244_vm5, %v959_v12, 0.0  ;;  %v953_v20 = vsel %vm244_vm5, %v943_v18, 0.0  ;;  %v254_v21 = vsel %vm244_vm5, %v243_v19, 0.0 }
 0x148   :  { %948 = vadd.xlane.f32.xlu2 %v947_v6  ;;  %951 = vadd.xlane.f32.xlu1 %v950_v7 }
 0x149   :  { %252 = vadd.xlane.f32.xlu0 %v251_v8 }
 0x150   :  { %967 = vadd.xlane.f32.xlu1 %v966_v15  ;;  %271 = vadd.xlane.f32.xlu2 %v270_v16 }
 0x151   :  { %970 = vadd.xlane.f32.xlu0 %v969_v17 }
 0x158   :  { %954 = vadd.xlane.f32.xlu2 %v953_v20  ;;  %255 = vadd.xlane.f32.xlu1 %v254_v21 }
 0x1a3   :  { %v263_v30 = vpop.xlane.xlu2 %262  ;;  %v2499_v31 = vpop.xlane.xlu1 %246 }
 0x1a4   :  { %v273_v32 = vmul.f32 %v2499_v31, %v2499_v31 }
 0x1a6   :  { %v277_v33 = vsub.f32 %v263_v30, %v273_v32 }
 0x1a8   :  { %v281_v34 = vmax.f32 %v277_v33, 0.0 }
 0x1aa   :  { %v285_v35 = vadd.f32 1e-05, %v281_v34 }
 0x1ab   :  { %v2503_v36 = vpop.xlane.xlu2 %945  ;;  %v962_v37 = vpop.xlane.xlu1 %961 }
 0x1ac   :  { %2111 = vrsqrt.f32 %v285_v35  ;;  %v972_v38 = vmul.f32 %v2503_v36, %v2503_v36  ;;  %v266_v39 = vpop.xlane.xlu0 %265  ;;  %vm295_vm7 = vweird.f32 %v285_v35 }
 0x1ae   :  { %v976_v42 = vsub.f32 %v962_v37, %v972_v38 }
 0x1b0   :  { %v980_v43 = vmax.f32 %v976_v42, 0.0 }
 0x1b2   :  { %v2112_v44 = vpop.eup %2111  ;;  %v984_v45 = vadd.f32 1e-05, %v980_v43 }
 0x1b3   :  { %v290_v46 = vmul.f32 %v2112_v44, %v285_v35  ;;  %v2507_v47 = vpop.xlane.xlu2 %249  ;;  %v269_v48 = vpop.xlane.xlu1 %268  ;;  %vm296_vm6 = vweird.f32 %v2112_v44 }
 0x1b4   :  { %2113 = vrsqrt.f32 %v984_v45  ;;  %v274_v49 = vmul.f32 %v2507_v47, %v2507_v47  ;;  %v965_v50 = vpop.xlane.xlu0 %964  ;;  %vm297_vm8 = vmor %vm295_vm7, %vm296_vm6  ;;  %vm994_vm10 = vweird.f32 %v984_v45 }
 0x1b5   :  { %v291_v51 = vmul.f32 %v2112_v44, %v290_v46 }
 0x1b6   :  { %v278_v53 = vsub.f32 %v266_v39, %v274_v49 }
 0x1b7   :  { %v292_v54 = vmul.f32 0.5, %v291_v51 }
 0x1b8   :  { %v282_v55 = vmax.f32 %v278_v53, 0.0 }
 0x1b9   :  { %v293_v56 = vsub.f32 1.5, %v292_v54 }
 0x1ba   :  { %v2114_v57 = vpop.eup %2113  ;;  %v286_v58 = vadd.f32 1e-05, %v282_v55 }
 0x1bb   :  { %v989_v59 = vmul.f32 %v2114_v57, %v984_v45  ;;  %v2511_v60 = vpop.xlane.xlu2 %948  ;;  %v2513_v61 = vpop.xlane.xlu1 %951  ;;  %v294_v62 = vmul.f32 %v2112_v44, %v293_v56  ;;  %vm995_vm9 = vweird.f32 %v2114_v57 }
 0x1bc   :  { %2115 = vrsqrt.f32 %v286_v58  ;;  %v973_v63 = vmul.f32 %v2511_v60, %v2511_v60  ;;  %v2517_v0 = vpop.xlane.xlu0 %252  ;;  %v974_v10 = vmul.f32 %v2513_v61, %v2513_v61  ;;  %vm996_vm11 = vmor %vm994_vm10, %vm995_vm9  ;;  %vm305_vm12 = vweird.f32 %v286_v58 }
 0x1bd   :  { %v990_v2 = vmul.f32 %v2114_v57, %v989_v59  ;;  %v275_v3 = vmul.f32 %v2517_v0, %v2517_v0  ;;  %v298_v5 = vsel %vm297_vm8, %v2112_v44, %v294_v62 }
 0x1be   :  { %v977_v4 = vsub.f32 %v965_v50, %v973_v63  ;;  %v337_v8 = vmul.f32 %v298_v5, %v230_v1 }
 0x1bf   :  { %v991_v6 = vmul.f32 0.5, %v990_v2  ;;  %v279_v7 = vsub.f32 %v269_v48, %v275_v3  ;;  %v231_v48 = vld [vmem:[%s3871_s3 + $0x8] sm:$0xff] }
 0x1c0   :  { %v981_v9 = vmax.f32 %v977_v4, 0.0  ;;  %343 = vperm.xlu0 %2110, %v337_v8   ;;  %v1040_v8 = vsub.f32 %v2347_v22, %v2513_v61  ;;  %v1037_v22 = vsub.f32 %v2369_v41, %v2503_v36 }
 0x1c1   :  { %v992_v11 = vsub.f32 1.5, %v991_v6  ;;  %v283_v12 = vmax.f32 %v279_v7, 0.0 }
 0x1c2   :  { %v2116_v15 = vpop.eup %2115  ;;  %v985_v16 = vadd.f32 1e-05, %v981_v9 }
 0x1c3   :  { %v300_v17 = vmul.f32 %v2116_v15, %v286_v58  ;;  %v287_v18 = vadd.f32 1e-05, %v283_v12  ;;  %v968_v19 = vpop.xlane.xlu1 %967  ;;  %v272_v20 = vpop.xlane.xlu2 %271  ;;  %v993_v21 = vmul.f32 %v2114_v57, %v992_v11  ;;  %vm306_vm13 = vweird.f32 %v2116_v15 }
 0x1c4   :  { %2117 = vrsqrt.f32 %v985_v16  ;;  %v978_v30 = vsub.f32 %v968_v19, %v974_v10  ;;  %vm307_vm14 = vmor %vm305_vm12, %vm306_vm13  ;;  %v971_v53 = vpop.xlane.xlu0 %970  ;;  %vm1004_vm15 = vweird.f32 %v985_v16 }
 0x1c5   :  { %2119 = vrsqrt.f32 %v287_v18  ;;  %v997_v32 = vsel %vm996_vm11, %v2114_v57, %v993_v21  ;;  %v301_v33 = vmul.f32 %v2116_v15, %v300_v17  ;;  %vm315_vm1 = vweird.f32 %v287_v18 }
 0x1c6   :  { %v982_v34 = vmax.f32 %v978_v30, 0.0  ;;  %v1044_v35 = vmul.f32 %v997_v32, %v230_v1 }
 0x1c7   :  { %v302_v37 = vmul.f32 0.5, %v301_v33 }
 0x1c8   :  { %v986_v38 = vadd.f32 1e-05, %v982_v34  ;;  %1050 = vperm.xlu0 %2110, %v1044_v35  }
 0x1c9   :  { %v303_v39 = vsub.f32 1.5, %v302_v37 }
 0x1ca   :  { %v2118_v42 = vpop.eup %2117  ;;  %2121 = vrsqrt.f32 %v986_v38  ;;  %vm1014_vm6 = vweird.f32 %v986_v38 }
 0x1cb   :  { %v2120_v43 = vpop.eup %2119  ;;  %v999_v44 = vmul.f32 %v2118_v42, %v985_v16  ;;  %v2526_v45 = vpop.xlane.xlu2 %954  ;;  %v304_v49 = vmul.f32 %v2116_v15, %v303_v39  ;;  %vm1005_vm0 = vweird.f32 %v2118_v42 }
 0x1cc   :  { %v2528_v46 = vpop.xlane.xlu1 %255  ;;  %v310_v50 = vmul.f32 %v2120_v43, %v287_v18  ;;  %v975_v54 = vmul.f32 %v2526_v45, %v2526_v45  ;;  %vm316_vm2 = vweird.f32 %v2120_v43  ;;  %vm2537_vm3 = vmor %vm1004_vm15, %vm1005_vm0 }
 0x1cd   :  { %v276_v51 = vmul.f32 %v2528_v46, %v2528_v46  ;;  %v308_v55 = vsel %vm307_vm14, %v2116_v15, %v304_v49  ;;  %v1000_v58 = vmul.f32 %v2118_v42, %v999_v44  ;;  %vm317_vm5 = vmor %vm315_vm1, %vm316_vm2  ;;  %v232_v15 = vld [vmem:[%s3871_s3 + $0x10] sm:$0xff] }
 0x1ce   :  { %v338_v57 = vmul.f32 %v308_v55, %v231_v48  ;;  %v311_v59 = vmul.f32 %v2120_v43, %v310_v50  ;;  %v979_v62 = vsub.f32 %v971_v53, %v975_v54 }
 0x1cf   :  { %v280_v56 = vsub.f32 %v272_v20, %v276_v51  ;;  %v1001_v2 = vmul.f32 0.5, %v1000_v58  ;;  %v233_v51 = vld [vmem:[%s3871_s3 + $0x18] sm:$0xff]  ;;  %s2280_s3 = smov 17  }
 0x1d0   :  { %v2122_v63 = vpop.eup %2121  ;;  %348 = vperm.xlu1 %2108, %v338_v57   ;;  %v312_v3 = vmul.f32 0.5, %v311_v59  ;;  %v983_v5 = vmax.f32 %v979_v62, 0.0  ;;  %v329_v59 = vsub.f32 %v2353_v27, %v2499_v31  ;;  %v330_v62 = vsub.f32 %v2355_v28, %v2499_v31 }
 0x1d1   :  { %v284_v1 = vmax.f32 %v280_v56, 0.0  ;;  %v1009_v4 = vmul.f32 %v2122_v63, %v986_v38  ;;  %v1002_v7 = vsub.f32 1.5, %v1001_v2  ;;  %vm1015_vm7 = vweird.f32 %v2122_v63 }
 0x1d2   :  { %v313_v9 = vsub.f32 1.5, %v312_v3  ;;  %v987_v11 = vadd.f32 1e-05, %v983_v5  ;;  %vm1016_vm8 = vmor %vm1014_vm6, %vm1015_vm7  ;;  %v1041_v27 = vsub.f32 %v2349_v23, %v2513_v61 }
 0x1d3   :  { %v288_v6 = vadd.f32 1e-05, %v284_v1  ;;  %v1010_v10 = vmul.f32 %v2122_v63, %v1009_v4  ;;  %v1003_v12 = vmul.f32 %v2118_v42, %v1002_v7 }
 0x1d4   :  { %v314_v16 = vmul.f32 %v2120_v43, %v313_v9  ;;  %vm1024_vm11 = vweird.f32 %v987_v11 }
 0x1d5   :  { %2123 = vrsqrt.f32 %v288_v6  ;;  %v1011_v17 = vmul.f32 0.5, %v1010_v10  ;;  %v1007_v19 = vsel %vm2537_vm3, %v2118_v42, %v1003_v12  ;;  %vm325_vm9 = vweird.f32 %v288_v6 }
 0x1d6   :  { %2125 = vrsqrt.f32 %v987_v11  ;;  %v318_v20 = vsel %vm317_vm5, %v2120_v43, %v314_v16  ;;  %v1045_v30 = vmul.f32 %v1007_v19, %v231_v48 }
 0x1d7   :  { %v1012_v21 = vsub.f32 1.5, %v1011_v17  ;;  %v339_v32 = vmul.f32 %v318_v20, %v232_v15 }
 0x1d8   :  { %1055 = vperm.xlu1 %2108, %v1045_v30  }
 0x1d9   :  { %353 = vperm.xlu2 %2109, %v339_v32   ;;  %v1013_v18 = vmul.f32 %v2122_v63, %v1012_v21 }
 0x1db   :  { %v2124_v33 = vpop.eup %2123  ;;  %v1017_v37 = vsel %vm1016_vm8, %v2122_v63, %v1013_v18 }
 0x1dc   :  { %v2126_v34 = vpop.eup %2125  ;;  %v320_v35 = vmul.f32 %v2124_v33, %v288_v6  ;;  %v1046_v44 = vmul.f32 %v1017_v37, %v232_v15  ;;  %vm326_vm10 = vweird.f32 %v2124_v33  ;;  %v1036_v15 = vsub.f32 %v2367_v40, %v2503_v36 }
 0x1dd   :  { %v1019_v39 = vmul.f32 %v2126_v34, %v987_v11  ;;  %vm1025_vm12 = vweird.f32 %v2126_v34  ;;  %vm327_vm13 = vmor %vm325_vm9, %vm326_vm10 }
 0x1de   :  { %v321_v38 = vmul.f32 %v2124_v33, %v320_v35  ;;  %vm1026_vm14 = vmor %vm1024_vm11, %vm1025_vm12 }
 0x1df   :  { %v1020_v49 = vmul.f32 %v2126_v34, %v1019_v39 }
 0x1e0   :  { %v322_v50 = vmul.f32 0.5, %v321_v38 }
 0x1e1   :  { %v1021_v42 = vmul.f32 0.5, %v1020_v49  ;;  %1060 = vperm.xlu2 %2109, %v1046_v44  }
 0x1e2   :  { %v323_v43 = vsub.f32 1.5, %v322_v50 }
 0x1e3   :  { %v1022_v48 = vsub.f32 1.5, %v1021_v42 }
 0x1e4   :  { %v324_v53 = vmul.f32 %v2124_v33, %v323_v43 }
 0x1e5   :  { %v1023_v54 = vmul.f32 %v2126_v34, %v1022_v48 }
 0x1e6   :  { %v328_v55 = vsel %vm327_vm13, %v2124_v33, %v324_v53 }
 0x1e7   :  { %v340_v56 = vmul.f32 %v328_v55, %v233_v51  ;;  %v1027_v57 = vsel %vm1026_vm14, %v2126_v34, %v1023_v54 }
 0x1e8   :  { %v1047_v58 = vmul.f32 %v1027_v57, %v233_v51 }
 0x1e9   :  { %358 = vperm.xlu2 %2109, %v340_v56  }
 0x1ea   :  { %1065 = vperm.xlu0 %2110, %v1047_v58  }
 0x232   :  { %v344_v1 = vpop.permute.xlu0 %343 }
 0x233   :  { %v2554_v63 = vpop.permute.xlu2 %353  ;;  %v361_v2 = vmul.f32 %v344_v1, %v329_v59  ;;  %v362_v3 = vmul.f32 %v344_v1, %v330_v62 }
 0x235   :  { %v389_v4 = vadd.f32 %v2491_v24, %v361_v2  ;;  %v390_v5 = vadd.f32 %v2491_v24, %v362_v3 }
 0x237   :  { %v397_v6 = vsub.f32 0.0, %v389_v4  ;;  %v398_v7 = vsub.f32 0.0, %v390_v5 }
 0x239   :  { %v405_v9 = vmul.f32 1.442695, %v397_v6  ;;  %v407_v10 = vmul.f32 1.442695, %v398_v7 }
 0x23a   :  { %v1051_v12 = vpop.permute.xlu0 %1050 }
 0x23b   :  { %v1061_v28 = vpop.permute.xlu2 %1060  ;;  %2127 = vpow2.f32 %v405_v9  ;;  %v1068_v19 = vmul.f32 %v1051_v12, %v1036_v15  ;;  %v1069_v23 = vmul.f32 %v1051_v12, %v1037_v22 }
 0x23c   :  { %v2562_v31 = vmul.f32 %v1061_v28, %v1040_v8  ;;  %v2564_v11 = vmul.f32 %v1061_v28, %v1041_v27  ;;  %2129 = vpow2.f32 %v407_v10 }
 0x23d   :  { %v2571_v21 = vadd.f32 %v1068_v19, %v2491_v24  ;;  %v2574_v30 = vadd.f32 %v1069_v23, %v2491_v24 }
 0x23f   :  { %v1084_v32 = vsub.f32 0.0, %v2571_v21  ;;  %v1085_v40 = vsub.f32 0.0, %v2574_v30 }
 0x241   :  { %v2128_v16 = vpop.eup %2127  ;;  %v1092_v34 = vmul.f32 1.442695, %v1084_v32  ;;  %v1094_v37 = vmul.f32 1.442695, %v1085_v40 }
 0x242   :  { %v2130_v17 = vpop.eup %2129  ;;  %v421_v61 = vadd.f32 1.0, %v2128_v16 }
 0x243   :  { %v422_v20 = vadd.f32 1.0, %v2130_v17 }
 0x244   :  { %2131 = vrcp.f32 %v421_v61  ;;  %v440_v39 = vand.u32 2147483648, %v421_v61  ;;  %v438_v49 = vand.u32 2147483647, %v421_v61  ;;  %vm434_vm1 = vweird.f32 %v421_v61 }
 0x245   :  { %2133 = vrcp.f32 %v422_v20  ;;  %v454_v50 = vand.u32 2147483648, %v422_v20  ;;  %v452_v24 = vand.u32 2147483647, %v422_v20  ;;  %vm448_vm3 = vweird.f32 %v422_v20 }
 0x246   :  { %2135 = vpow2.f32 %v1092_v34  ;;  %v441_v48 = vor.u32 1.1754944e-38, %v440_v39  ;;  %vm439_vm5 = vcmp.eq.f32.partialorder %v438_v49, 8.507059e+37 }
 0x247   :  { %2137 = vpow2.f32 %v1094_v37  ;;  %v455_v54 = vor.u32 1.1754944e-38, %v454_v50  ;;  %vm453_vm7 = vcmp.eq.f32.partialorder %v452_v24, 8.507059e+37 }
 0x24a   :  { %v2132_v18 = vpop.eup %2131 }
 0x24b   :  { %v2134_v33 = vpop.eup %2133  ;;  %v430_v41 = vmul.f32 %v2132_v18, %v421_v61  ;;  %vm435_vm15 = vweird.f32 %v2132_v18 }
 0x24c   :  { %v444_v36 = vmul.f32 %v2134_v33, %v422_v20  ;;  %vm449_vm0 = vweird.f32 %v2134_v33  ;;  %vm436_vm2 = vmor %vm434_vm1, %vm435_vm15  ;;  %v2136_v59 = vpop.eup %2135 }
 0x24d   :  { %v431_v35 = vsub.f32 1.0, %v430_v41  ;;  %vm450_vm6 = vmor %vm448_vm3, %vm449_vm0  ;;  %v2138_v1 = vpop.eup %2137  ;;  %v1108_v2 = vadd.f32 1.0, %v2136_v59 }
 0x24e   :  { %v445_v44 = vsub.f32 1.0, %v444_v36  ;;  %v1109_v3 = vadd.f32 1.0, %v2138_v1 }
 0x24f   :  { %v432_v38 = vmul.f32 %v2132_v18, %v431_v35  ;;  %2139 = vrcp.f32 %v1108_v2  ;;  %vm1121_vm10 = vweird.f32 %v1108_v2  ;;  %v1127_v20 = vand.u32 2147483648, %v1108_v2 }
 0x250   :  { %v446_v42 = vmul.f32 %v2134_v33, %v445_v44  ;;  %2141 = vrcp.f32 %v1109_v3  ;;  %v1141_v32 = vand.u32 2147483648, %v1109_v3  ;;  %vm1135_vm12 = vweird.f32 %v1109_v3 }
 0x251   :  { %v433_v43 = vadd.f32 %v2132_v18, %v432_v38  ;;  %v1128_v37 = vor.u32 1.1754944e-38, %v1127_v20 }
 0x252   :  { %v447_v51 = vadd.f32 %v2134_v33, %v446_v42  ;;  %v1142_v39 = vor.u32 1.1754944e-38, %v1141_v32 }
 0x253   :  { %v437_v53 = vsel %vm436_vm2, %v2132_v18, %v433_v43  ;;  %v1125_v18 = vand.u32 2147483647, %v1108_v2 }
 0x254   :  { %v442_v55 = vsel %vm439_vm5, %v441_v48, %v437_v53  ;;  %v451_v56 = vsel %vm450_vm6, %v2134_v33, %v447_v51  ;;  %v1139_v33 = vand.u32 2147483647, %v1109_v3 }
 0x255   :  { %v456_v57 = vsel %vm453_vm7, %v455_v54, %v451_v56  ;;  %v2578_v58 = vmul.f32 %v442_v55, %v389_v4  ;;  %v349_v4 = vpop.permute.xlu1 %348  ;;  %v2140_v7 = vpop.eup %2139  ;;  %vm1126_vm14 = vcmp.eq.f32.partialorder %v1125_v18, 8.507059e+37  ;;  %v1031_v54 = vld [vmem:[#allocation3 + $0x58] sm:$0xff] }
 0x256   :  { %v2580_v62 = vmul.f32 %v456_v57, %v390_v5  ;;  %v331_v5 = vsub.f32 %v2337_v13, %v2507_v47  ;;  %v2142_v8 = vpop.eup %2141  ;;  %v1117_v9 = vmul.f32 %v2140_v7, %v1108_v2  ;;  %v332_v13 = vsub.f32 %v2339_v14, %v2507_v47  ;;  %v2688_v18 = vpop.permute.xlu2 %358 }
 0x257   :  { %3894 = vst [vmem:[#allocation12_spill] sm:$0xff] %v2578_v58  ;;  %596 = vrot.lane.b32.xlu0 %v2578_v58, %s2277_s10  ;;  %549 = vrot.lane.b32.xlu2 %v2578_v58, %s2280_s3  ;;  %v1131_v10 = vmul.f32 %v2142_v8, %v1109_v3  ;;  %vm1122_vm8 = vweird.f32 %v2140_v7  ;;  %vm1136_vm9 = vweird.f32 %v2142_v8  ;;  %vm1140_vm15 = vcmp.eq.f32.partialorder %v1139_v33, 8.507059e+37 }
 0x258   :  { %3895 = vst [vmem:[#allocation13_spill] sm:$0xff] %v2580_v62  ;;  %557 = vrot.lane.b32.xlu1 %v2580_v62, %s2280_s3  ;;  %v363_v6 = vmul.f32 %v349_v4, %v331_v5  ;;  %v364_v28 = vmul.f32 %v349_v4, %v332_v13  ;;  %v1118_v15 = vsub.f32 1.0, %v1117_v9  ;;  %vm2618_vm11 = vmor %vm1121_vm10, %vm1122_vm8  ;;  %v1039_v1 = vsub.f32 %v1031_v54, %v2511_v60 }
 0x259   :  { %v1132_v16 = vsub.f32 1.0, %v1131_v10  ;;  %vm1137_vm13 = vmor %vm1135_vm12, %vm1136_vm9 }
 0x25a   :  { %v2597_v27 = vadd.f32 %v2493_v25, %v363_v6  ;;  %v2609_v22 = vadd.f32 %v2493_v25, %v364_v28  ;;  %v1119_v47 = vmul.f32 %v2140_v7, %v1118_v15 }
 0x25b   :  { %v1133_v17 = vmul.f32 %v2142_v8, %v1132_v16 }
 0x25c   :  { %v399_v12 = vsub.f32 0.0, %v2597_v27  ;;  %v400_v19 = vsub.f32 0.0, %v2609_v22  ;;  %v1120_v23 = vadd.f32 %v2140_v7, %v1119_v47 }
 0x25d   :  { %v1134_v61 = vadd.f32 %v2142_v8, %v1133_v17  ;;  %v1056_v55 = vpop.permute.xlu1 %1055 }
 0x25e   :  { %v409_v14 = vmul.f32 1.442695, %v399_v12  ;;  %v411_v41 = vmul.f32 1.442695, %v400_v19  ;;  %v1124_v34 = vsel %vm2618_vm11, %v2140_v7, %v1120_v23  ;;  %v1071_v3 = vmul.f32 %v1056_v55, %v1039_v1 }
 0x25f   :  { %652 = vrot.lane.b32.xlu0 %v2580_v62, %s2281_s12  ;;  %604 = vrot.lane.b32.xlu2 %v2580_v62, %s2277_s10  ;;  %v1138_v35 = vsel %vm1137_vm13, %v2142_v8, %v1134_v61  ;;  %v1129_v44 = vsel %vm1126_vm14, %v1128_v37, %v1124_v34 }
 0x260   :  { %644 = vrot.lane.b32.xlu1 %v2578_v58, %s2281_s12  ;;  %2143 = vpow2.f32 %v409_v14  ;;  %v1143_v38 = vsel %vm1140_vm15, %v1142_v39, %v1138_v35  ;;  %v2631_v50 = vmul.f32 %v1129_v44, %v2571_v21  ;;  %v2660_v8 = vadd.f32 %v1071_v3, %v2493_v25 }
 0x261   :  { %2145 = vpow2.f32 %v411_v41  ;;  %v2634_v42 = vmul.f32 %v1143_v38, %v2574_v30  ;;  %v1030_v30 = vld [vmem:[#allocation3 + $0x50] sm:$0xff]  ;;  %v2192_v38 = vld [vmem:[#allocation3 + $0x20] sm:$0xff]  ;;  %vm612_vm15 = vcmp.lt.s32.totalorder %v2377_v52, 16 }
 0x262   :  { %3898 = vst [vmem:[#allocation14_spill] sm:$0xff] %v2631_v50  ;;  %v1038_v56 = vsub.f32 %v1030_v30, %v2511_v60  ;;  %v1087_v12 = vsub.f32 0.0, %v2660_v8 }
 0x263   :  { %3899 = vst [vmem:[#allocation15_spill] sm:$0xff] %v2634_v42 }
 0x264   :  { %v1070_v2 = vmul.f32 %v1056_v55, %v1038_v56  ;;  %v1098_v19 = vmul.f32 1.442695, %v1087_v12 }
 0x266   :  { %v2144_v36 = vpop.eup %2143  ;;  %v2657_v7 = vadd.f32 %v1070_v2, %v2493_v25 }
 0x267   :  { %756 = vrot.lane.b32.xlu0 %v2580_v62, %s2282_s0  ;;  %692 = vrot.lane.b32.xlu2 %v2578_v58, %s2283_s1  ;;  %v423_v49 = vadd.f32 1.0, %v2144_v36  ;;  %v2146_v24 = vpop.eup %2145  ;;  %v2191_v36 = vld [vmem:[#allocation3 + $0x28] sm:$0xff] }
 0x268   :  { %700 = vrot.lane.b32.xlu1 %v2580_v62, %s2283_s1  ;;  %v424_v43 = vadd.f32 1.0, %v2146_v24  ;;  %v1086_v28 = vsub.f32 0.0, %v2657_v7 }
 0x269   :  { %2147 = vrcp.f32 %v423_v49  ;;  %v468_v6 = vand.u32 2147483648, %v423_v49  ;;  %vm462_vm1 = vweird.f32 %v423_v49  ;;  %v466_v60 = vand.u32 2147483647, %v423_v49 }
 0x26a   :  { %2149 = vrcp.f32 %v424_v43  ;;  %v482_v16 = vand.u32 2147483648, %v424_v43  ;;  %v1096_v14 = vmul.f32 1.442695, %v1086_v28  ;;  %vm476_vm6 = vweird.f32 %v424_v43 }
 0x26b   :  { %v469_v13 = vor.u32 1.1754944e-38, %v468_v6  ;;  %vm467_vm3 = vcmp.eq.f32.partialorder %v466_v60, 8.507059e+37  ;;  %v480_v47 = vand.u32 2147483647, %v424_v43 }
 0x26c   :  { %v483_v61 = vor.u32 1.1754944e-38, %v482_v16  ;;  %2151 = vpow2.f32 %v1096_v14 }
 0x26d   :  { %vm481_vm8 = vcmp.eq.f32.partialorder %v480_v47, 8.507059e+37  ;;  %2153 = vpow2.f32 %v1098_v19 }
 0x26f   :  { %804 = vrot.lane.b32.xlu0 %v2580_v62, %s2284_s13  ;;  %844 = vrot.lane.b32.xlu2 %v2578_v58, %s2285_s14  ;;  %v2148_v48 = vpop.eup %2147 }
 0x270   :  { %748 = vrot.lane.b32.xlu1 %v2578_v58, %s2282_s0  ;;  %v458_v51 = vmul.f32 %v2148_v48, %v423_v49  ;;  %v2150_v53 = vpop.eup %2149  ;;  %vm463_vm0 = vweird.f32 %v2148_v48  ;;  %v333_v49 = vsub.f32 %v2192_v38, %v2517_v0 }
 0x271   :  { %v472_v59 = vmul.f32 %v2150_v53, %v424_v43  ;;  %vm464_vm2 = vmor %vm462_vm1, %vm463_vm0  ;;  %vm477_vm5 = vweird.f32 %v2150_v53  ;;  %vm565_vm0 = vcmp.lt.s32.totalorder %v2377_v52, 17 }
 0x272   :  { %v459_v21 = vsub.f32 1.0, %v458_v51  ;;  %vm478_vm7 = vmor %vm476_vm6, %vm477_vm5  ;;  %v2152_v32 = vpop.eup %2151  ;;  %v365_v51 = vmul.f32 %v2554_v63, %v333_v49  ;;  %vm708_vm5 = vcmp.lt.s32.totalorder %v2377_v52, 1  ;;  %vm764_vm6 = vcmp.lt.s32.totalorder %v2377_v52, 127 }
 0x273   :  { %v473_v5 = vsub.f32 1.0, %v472_v59  ;;  %v2154_v40 = vpop.eup %2153  ;;  %v1110_v33 = vadd.f32 1.0, %v2152_v32 }
 0x274   :  { %v460_v57 = vmul.f32 %v2148_v48, %v459_v21  ;;  %v1111_v41 = vadd.f32 1.0, %v2154_v40 }
 0x275   :  { %v474_v10 = vmul.f32 %v2150_v53, %v473_v5  ;;  %2155 = vrcp.f32 %v1110_v33  ;;  %vm1149_vm11 = vweird.f32 %v1110_v33  ;;  %v1155_v3 = vand.u32 2147483648, %v1110_v33 }
 0x276   :  { %v461_v4 = vadd.f32 %v2148_v48, %v460_v57  ;;  %2157 = vrcp.f32 %v1111_v41  ;;  %v2722_v57 = vpop.permute.xlu0 %1065  ;;  %v1153_v60 = vand.u32 2147483647, %v1110_v33  ;;  %vm1163_vm13 = vweird.f32 %v1111_v41 }
 0x277   :  { %892 = vrot.lane.b32.xlu0 %v2578_v58, %s2286_s15  ;;  %900 = vrot.lane.b32.xlu2 %v2580_v62, %s2286_s15  ;;  %v475_v15 = vadd.f32 %v2150_v53, %v474_v10 }
 0x278   :  { %796 = vrot.lane.b32.xlu1 %v2578_v58, %s2284_s13  ;;  %v465_v9 = vsel %vm464_vm2, %v2148_v48, %v461_v4  ;;  %v1169_v4 = vand.u32 2147483648, %v1111_v41  ;;  %vm1154_vm1 = vcmp.eq.f32.partialorder %v1153_v60, 8.507059e+37 }
 0x279   :  { %v470_v25 = vsel %vm467_vm3, %v469_v13, %v465_v9  ;;  %v479_v23 = vsel %vm478_vm7, %v2150_v53, %v475_v15  ;;  %v1167_v9 = vand.u32 2147483647, %v1111_v41  ;;  %vm660_vm3 = vcmp.lt.s32.totalorder %v2377_v52, 15 }
 0x27a   :  { %v2671_v17 = vmul.f32 %v470_v25, %v2597_v27  ;;  %v484_v20 = vsel %vm481_vm8, %v483_v61, %v479_v23  ;;  %v1156_v25 = vor.u32 1.1754944e-38, %v1155_v3  ;;  %v1170_v15 = vor.u32 1.1754944e-38, %v1169_v4 }
 0x27b   :  { %v2680_v27 = vmul.f32 %v484_v20, %v2609_v22  ;;  %v334_v22 = vsub.f32 %v2191_v36, %v2517_v0  ;;  %v2156_v37 = vpop.eup %2155  ;;  %v2713_v0 = vadd.f32 %v2495_v26, %v365_v51  ;;  %vm1168_vm2 = vcmp.eq.f32.partialorder %v1167_v9, 8.507059e+37 }
 0x27c   :  { %3900 = vst [vmem:[#allocation16_spill] sm:$0xff] %v2671_v17  ;;  %v2158_v39 = vpop.eup %2157  ;;  %v1145_v24 = vmul.f32 %v2156_v37, %v1110_v33  ;;  %vm1150_vm9 = vweird.f32 %v2156_v37  ;;  %v2844_v9 = vadd.f32 %v2564_v11, %v2495_v26 }
 0x27d   :  { %3901 = vst [vmem:[#allocation17_spill] sm:$0xff] %v2680_v27  ;;  %v366_v34 = vmul.f32 %v2554_v63, %v334_v22  ;;  %v1159_v43 = vmul.f32 %v2158_v39, %v1111_v41  ;;  %v401_v63 = vsub.f32 0.0, %v2713_v0  ;;  %vm1164_vm10 = vweird.f32 %v2158_v39  ;;  %vm2726_vm12 = vmor %vm1149_vm11, %vm1150_vm9 }
 0x27e   :  { %v1146_v30 = vsub.f32 1.0, %v1145_v24  ;;  %vm2730_vm14 = vmor %vm1163_vm13, %vm1164_vm10  ;;  %vm908_vm10 = vcmp.lt.s32.totalorder %v2377_v52, 111  ;;  %vm812_vm11 = vcmp.lt.s32.totalorder %v2377_v52, 113 }
 0x27f   :  { %1382 = vrot.lane.b32.xlu0 %v2634_v42, %s2283_s1  ;;  %1328 = vrot.lane.b32.xlu2 %v2631_v50, %s2281_s12  ;;  %v2701_v44 = vadd.f32 %v2495_v26, %v366_v34  ;;  %v1160_v53 = vsub.f32 1.0, %v1159_v43  ;;  %v413_v5 = vmul.f32 1.442695, %v401_v63 }
 0x280   :  { %852 = vrot.lane.b32.xlu1 %v2580_v62, %s2285_s14  ;;  %v1147_v55 = vmul.f32 %v2156_v37, %v1146_v30 }
 0x281   :  { %v402_v48 = vsub.f32 0.0, %v2701_v44  ;;  %v1161_v56 = vmul.f32 %v2158_v39, %v1160_v53 }
 0x282   :  { %v1148_v1 = vadd.f32 %v2156_v37, %v1147_v55 }
 0x283   :  { %v415_v54 = vmul.f32 1.442695, %v402_v48  ;;  %v1162_v2 = vadd.f32 %v2158_v39, %v1161_v56 }
 0x284   :  { %v1152_v28 = vsel %vm2726_vm12, %v2156_v37, %v1148_v1 }
 0x285   :  { %2159 = vpow2.f32 %v415_v54  ;;  %v1166_v12 = vsel %vm2730_vm14, %v2158_v39, %v1162_v2  ;;  %v1157_v19 = vsel %vm1154_vm1, %v1156_v25, %v1152_v28  ;;  %v2817_v54 = vadd.f32 %v2562_v31, %v2495_v26 }
 0x286   :  { %2161 = vpow2.f32 %v413_v5  ;;  %v1171_v23 = vsel %vm1168_vm2, %v1170_v15, %v1166_v12  ;;  %v2769_v41 = vmul.f32 %v1157_v19, %v2657_v7  ;;  %v1089_v26 = vsub.f32 0.0, %v2844_v9 }
 0x287   :  { %1520 = vrot.lane.b32.xlu0 %v2631_v50, %s2285_s14  ;;  %1528 = vrot.lane.b32.xlu2 %v2634_v42, %s2285_s14  ;;  %v2772_v36 = vmul.f32 %v1171_v23, %v2660_v8  ;;  %v1088_v63 = vsub.f32 0.0, %v2817_v54  ;;  %vm860_vm2 = vcmp.lt.s32.totalorder %v2377_v52, 112 }
 0x288   :  { %1374 = vrot.lane.b32.xlu1 %v2631_v50, %s2283_s1  ;;  %3906 = vst [vmem:[#allocation18_spill] sm:$0xff] %v2769_v41 }
 0x289   :  { %3907 = vst [vmem:[#allocation19_spill] sm:$0xff] %v2772_v36 }
 0x28b   :  { %v2160_v10 = vpop.eup %2159 }
 0x28c   :  { %v2746_v16 = vadd.f32 1.0, %v2160_v10  ;;  %v2162_v22 = vpop.eup %2161  ;;  %v1100_v10 = vmul.f32 1.442695, %v1088_v63 }
 0x28e   :  { %2163 = vrcp.f32 %v2746_v16  ;;  %v510_v6 = vand.u32 2147483648, %v2746_v16  ;;  %vm504_vm8 = vweird.f32 %v2746_v16  ;;  %v508_v60 = vand.u32 2147483647, %v2746_v16 }
 0x28f   :  { %1290 = vrot.lane.b32.xlu0 %v2634_v42, %s2277_s10  ;;  %1474 = vrot.lane.b32.xlu2 %v2631_v50, %s2284_s13 }
 0x290   :  { %1336 = vrot.lane.b32.xlu1 %v2634_v42, %s2281_s12  ;;  %v511_v12 = vor.u32 1.1754944e-38, %v510_v6  ;;  %vm509_vm12 = vcmp.eq.f32.partialorder %v508_v60, 8.507059e+37 }
 0x294   :  { %v2164_v38 = vpop.eup %2163 }
 0x295   :  { %v500_v49 = vmul.f32 %v2164_v38, %v2746_v16  ;;  %vm505_vm7 = vweird.f32 %v2164_v38 }
 0x296   :  { %vm506_vm9 = vmor %vm504_vm8, %vm505_vm7 }
 0x297   :  { %1566 = vrot.lane.b32.xlu0 %v2631_v50, %s2286_s15  ;;  %1574 = vrot.lane.b32.xlu2 %v2634_v42, %s2286_s15  ;;  %v501_v51 = vsub.f32 1.0, %v500_v49 }
 0x298   :  { %1282 = vrot.lane.b32.xlu1 %v2631_v50, %s2277_s10 }
 0x299   :  { %v502_v56 = vmul.f32 %v2164_v38, %v501_v51 }
 0x29b   :  { %v503_v3 = vadd.f32 %v2164_v38, %v502_v56 }
 0x29d   :  { %v507_v28 = vsel %vm506_vm9, %v2164_v38, %v503_v3  ;;  %v1102_v38 = vmul.f32 1.442695, %v1089_v26 }
 0x29e   :  { %v512_v15 = vsel %vm509_vm12, %v511_v12, %v507_v28  ;;  %v2193_v12 = vld [vmem:[#allocation3 + $0x30] sm:$0xff] }
 0x29f   :  { %1244 = vrot.lane.b32.xlu0 %v2634_v42, %s2280_s3  ;;  %598 = vrot.lane.b32.xlu2 %v2671_v17, %s2277_s10  ;;  %v335_v26 = vsub.f32 %v2193_v12, %v2528_v46 }
 0x2a0   :  { %1482 = vrot.lane.b32.xlu1 %v2634_v42, %s2284_s13 }
 0x2a7   :  { %559 = vrot.lane.b32.xlu0 %v2680_v27, %s2280_s3  ;;  %654 = vrot.lane.b32.xlu2 %v2680_v27, %s2281_s12 }
 0x2a8   :  { %1236 = vrot.lane.b32.xlu1 %v2631_v50, %s2280_s3 }
 0x2af   :  { %646 = vrot.lane.b32.xlu0 %v2671_v17, %s2281_s12  ;;  %758 = vrot.lane.b32.xlu2 %v2680_v27, %s2282_s0 }
 0x2b0   :  { %551 = vrot.lane.b32.xlu1 %v2671_v17, %s2280_s3 }
 0x2b1   :  { %v2698_v35 = vpop.permute.xlu2 %549 }
 0x2b7   :  { %702 = vrot.lane.b32.xlu0 %v2680_v27, %s2283_s1  ;;  %806 = vrot.lane.b32.xlu2 %v2680_v27, %s2284_s13 }
 0x2b8   :  { %606 = vrot.lane.b32.xlu1 %v2680_v27, %s2277_s10 }
 0x2b9   :  { %v605_v21 = vpop.permute.xlu2 %604 }
 0x2bf   :  { %750 = vrot.lane.b32.xlu0 %v2671_v17, %s2282_s0  ;;  %854 = vrot.lane.b32.xlu2 %v2680_v27, %s2285_s14 }
 0x2c0   :  { %694 = vrot.lane.b32.xlu1 %v2671_v17, %s2283_s1 }
 0x2c1   :  { %v2724_v59 = vpop.permute.xlu2 %692 }
 0x2c7   :  { %798 = vrot.lane.b32.xlu0 %v2671_v17, %s2284_s13  ;;  %894 = vrot.lane.b32.xlu2 %v2671_v17, %s2286_s15 }
 0x2c8   :  { %846 = vrot.lane.b32.xlu1 %v2671_v17, %s2285_s14 }
 0x2c9   :  { %v2748_v14 = vpop.permute.xlu2 %844  ;;  %v597_v47 = vpop.permute.xlu0 %596 }
 0x2ca   :  { %v558_v61 = vpop.permute.xlu1 %557  ;;  %v2752_v20 = vsel %vm612_vm15, %v597_v47, %v605_v21  ;;  %v2756_v32 = vsel %vm612_vm15, %v605_v21, %v597_v47 }
 0x2cb   :  { %v2761_v40 = vsel %vm565_vm0, %v2698_v35, %v558_v61  ;;  %v2766_v33 = vsel %vm565_vm0, %v558_v61, %v2698_v35  ;;  %v2782_v35 = vadd.f32 1.0, %v2162_v22 }
 0x2cd   :  { %2165 = vrcp.f32 %v2782_v35  ;;  %vm490_vm14 = vweird.f32 %v2782_v35 }
 0x2ce   :  { %2167 = vpow2.f32 %v1100_v10 }
 0x2cf   :  { %1376 = vrot.lane.b32.xlu0 %v2769_v41, %s2283_s1  ;;  %1384 = vrot.lane.b32.xlu2 %v2772_v36, %s2283_s1  ;;  %2169 = vpow2.f32 %v1102_v38 }
 0x2d0   :  { %902 = vrot.lane.b32.xlu1 %v2680_v27, %s2286_s15 }
 0x2d1   :  { %v901_v34 = vpop.permute.xlu2 %900  ;;  %v653_v7 = vpop.permute.xlu0 %652 }
 0x2d2   :  { %v645_v8 = vpop.permute.xlu1 %644 }
 0x2d3   :  { %v2786_v37 = vsel %vm660_vm3, %v645_v8, %v653_v7  ;;  %v2790_v39 = vsel %vm660_vm3, %v653_v7, %v645_v8  ;;  %v2813_v53 = vpop.eup %2165  ;;  %v496_v7 = vand.u32 2147483648, %v2782_v35  ;;  %v494_v8 = vand.u32 2147483647, %v2782_v35 }
 0x2d4   :  { %v486_v55 = vmul.f32 %v2813_v53, %v2782_v35  ;;  %vm491_vm13 = vweird.f32 %v2813_v53  ;;  %v2168_v49 = vpop.eup %2167 }
 0x2d5   :  { %vm492_vm1 = vmor %vm490_vm14, %vm491_vm13  ;;  %vm495_vm7 = vcmp.eq.f32.partialorder %v494_v8, 8.507059e+37 }
 0x2d6   :  { %v487_v2 = vsub.f32 1.0, %v486_v55  ;;  %v2890_v55 = vadd.f32 1.0, %v2168_v49 }
 0x2d7   :  { %1338 = vrot.lane.b32.xlu0 %v2772_v36, %s2281_s12  ;;  %1284 = vrot.lane.b32.xlu2 %v2769_v41, %s2277_s10 }
 0x2d8   :  { %1330 = vrot.lane.b32.xlu1 %v2769_v41, %s2281_s12  ;;  %v488_v13 = vmul.f32 %v2813_v53, %v487_v2  ;;  %2171 = vrcp.f32 %v2890_v55  ;;  %vm1177_vm9 = vweird.f32 %v2890_v55 }
 0x2d9   :  { %v2801_v24 = vpop.permute.xlu2 %1328  ;;  %v757_v43 = vpop.permute.xlu0 %756 }
 0x2da   :  { %v701_v48 = vpop.permute.xlu1 %700  ;;  %v489_v23 = vadd.f32 %v2813_v53, %v488_v13 }
 0x2db   :  { %v2806_v21 = vsel %vm708_vm5, %v2724_v59, %v701_v48  ;;  %v2811_v30 = vsel %vm708_vm5, %v701_v48, %v2724_v59  ;;  %v497_v48 = vor.u32 1.1754944e-38, %v496_v7 }
 0x2df   :  { %1530 = vrot.lane.b32.xlu0 %v2772_v36, %s2285_s14  ;;  %1476 = vrot.lane.b32.xlu2 %v2769_v41, %s2284_s13 }
 0x2e0   :  { %1522 = vrot.lane.b32.xlu1 %v2769_v41, %s2285_s14 }
 0x2e1   :  { %v2829_v59 = vpop.permute.xlu2 %1528  ;;  %v805_v31 = vpop.permute.xlu0 %804 }
 0x2e2   :  { %v749_v1 = vpop.permute.xlu1 %748 }
 0x2e3   :  { %v2833_v4 = vsel %vm764_vm6, %v749_v1, %v757_v43  ;;  %v2837_v5 = vsel %vm764_vm6, %v757_v43, %v749_v1  ;;  %v493_v43 = vsel %vm492_vm1, %v2813_v53, %v489_v23  ;;  %v2170_v1 = vpop.eup %2169 }
 0x2e4   :  { %3908 = vst [vmem:[#allocation20_spill] sm:$0xff] %v2837_v5  ;;  %v498_v51 = vsel %vm495_vm7, %v497_v48, %v493_v43  ;;  %v2172_v28 = vpop.eup %2171  ;;  %v2194_v48 = vld [vmem:[#allocation3 + $0x38] sm:$0xff] }
 0x2e5   :  { %vm1178_vm8 = vweird.f32 %v2172_v28 }
 0x2e6   :  { %vm1179_vm12 = vmor %vm1177_vm9, %vm1178_vm8 }
 0x2e7   :  { %1568 = vrot.lane.b32.xlu0 %v2769_v41, %s2286_s15  ;;  %1576 = vrot.lane.b32.xlu2 %v2772_v36, %s2286_s15 }
 0x2e8   :  { %1292 = vrot.lane.b32.xlu1 %v2772_v36, %s2277_s10 }
 0x2e9   :  { %v2856_v11 = vpop.permute.xlu2 %1474  ;;  %v893_v25 = vpop.permute.xlu0 %892 }
 0x2ea   :  { %v797_v16 = vpop.permute.xlu1 %796  ;;  %v2860_v47 = vsel %vm908_vm10, %v893_v25, %v901_v34  ;;  %v2864_v19 = vsel %vm908_vm10, %v901_v34, %v893_v25  ;;  %v2880_v34 = vmul.f32 %v512_v15, %v2701_v44  ;;  %v1173_v25 = vmul.f32 %v2172_v28, %v2890_v55 }
 0x2eb   :  { %v2870_v61 = vsel %vm812_vm11, %v797_v16, %v805_v31  ;;  %v2874_v22 = vsel %vm812_vm11, %v805_v31, %v797_v16  ;;  %v2903_v31 = vmul.f32 %v498_v51, %v2713_v0 }
 0x2ec   :  { %3909 = vst [vmem:[#allocation21_spill] sm:$0xff] %v2874_v22  ;;  %v1174_v7 = vsub.f32 1.0, %v1173_v25 }
 0x2ed   :  { %3910 = vst [vmem:[#allocation22_spill] sm:$0xff] %v2880_v34 }
 0x2ee   :  { %3911 = vst [vmem:[#allocation23_spill] sm:$0xff] %v2903_v31  ;;  %v1175_v51 = vmul.f32 %v2172_v28, %v1174_v7  ;;  %v1183_v7 = vand.u32 2147483648, %v2890_v55 }
 0x2ef   :  { %1246 = vrot.lane.b32.xlu0 %v2772_v36, %s2280_s3  ;;  %561 = vrot.lane.b32.xlu2 %v2880_v34, %s2280_s3 }
 0x2f0   :  { %1484 = vrot.lane.b32.xlu1 %v2772_v36, %s2284_s13  ;;  %v1176_v25 = vadd.f32 %v2172_v28, %v1175_v51 }
 0x2f1   :  { %v1575_v44 = vpop.permute.xlu2 %1574  ;;  %v1383_v35 = vpop.permute.xlu0 %1382 }
 0x2f2   :  { %v853_v53 = vpop.permute.xlu1 %852  ;;  %v1180_v51 = vsel %vm1179_vm12, %v2172_v28, %v1176_v25 }
 0x2f3   :  { %v2895_v56 = vsel %vm860_vm2, %v2748_v14, %v853_v53  ;;  %v2900_v63 = vsel %vm860_vm2, %v853_v53, %v2748_v14  ;;  %v2914_v14 = vadd.f32 1.0, %v2170_v1 }
 0x2f5   :  { %2173 = vrcp.f32 %v2914_v14  ;;  %vm1191_vm1 = vweird.f32 %v2914_v14 }
 0x2f7   :  { %553 = vrot.lane.b32.xlu0 %v2903_v31, %s2280_s3  ;;  %648 = vrot.lane.b32.xlu2 %v2903_v31, %s2281_s12 }
 0x2f8   :  { %1238 = vrot.lane.b32.xlu1 %v2769_v41, %s2280_s3 }
 0x2f9   :  { %v2912_v2 = vpop.permute.xlu2 %598  ;;  %v1521_v3 = vpop.permute.xlu0 %1520 }
 0x2fa   :  { %v1375_v6 = vpop.permute.xlu1 %1374  ;;  %v2919_v0 = vsel %vm860_vm2, %v1521_v3, %v2829_v59  ;;  %v2924_v60 = vsel %vm860_vm2, %v2829_v59, %v1521_v3  ;;  %v367_v59 = vmul.f32 %v2688_v18, %v335_v26 }
 0x2fb   :  { %3912 = vst [vmem:[#allocation24_spill] sm:$0xff] %v2919_v0  ;;  %v2928_v10 = vsel %vm708_vm5, %v1375_v6, %v1383_v35  ;;  %v2932_v13 = vsel %vm708_vm5, %v1383_v35, %v1375_v6  ;;  %v2174_v49 = vpop.eup %2173  ;;  %v336_v35 = vsub.f32 %v2194_v48, %v2528_v46  ;;  %v1181_v48 = vand.u32 2147483647, %v2890_v55 }
 0x2fc   :  { %3913 = vst [vmem:[#allocation25_spill] sm:$0xff] %v2924_v60  ;;  %v2957_v43 = vadd.f32 %v2497_v29, %v367_v59  ;;  %v1187_v53 = vmul.f32 %v2174_v49, %v2914_v14  ;;  %vm1192_vm14 = vweird.f32 %v2174_v49 }
 0x2fd   :  { %3914 = vst [vmem:[#allocation26_spill] sm:$0xff] %v2928_v10  ;;  %vm1182_vm13 = vcmp.eq.f32.partialorder %v1181_v48, 8.507059e+37  ;;  %v1195_v48 = vand.u32 2147483647, %v2914_v14  ;;  %vm1193_vm7 = vmor %vm1191_vm1, %vm1192_vm14 }
 0x2fe   :  { %3915 = vst [vmem:[#allocation27_spill] sm:$0xff] %v2932_v13  ;;  %v403_v1 = vsub.f32 0.0, %v2957_v43  ;;  %v1188_v59 = vsub.f32 1.0, %v1187_v53 }
 0x2ff   :  { %608 = vrot.lane.b32.xlu0 %v2880_v34, %s2277_s10  ;;  %704 = vrot.lane.b32.xlu2 %v2880_v34, %s2283_s1  ;;  %vm1196_vm8 = vcmp.eq.f32.partialorder %v1195_v48, 8.507059e+37 }
 0x300   :  { %600 = vrot.lane.b32.xlu1 %v2903_v31, %s2277_s10  ;;  %v1189_v53 = vmul.f32 %v2174_v49, %v1188_v59 }
 0x301   :  { %v2944_v15 = vpop.permute.xlu2 %654  ;;  %v1291_v16 = vpop.permute.xlu0 %1290 }
 0x302   :  { %v1337_v23 = vpop.permute.xlu1 %1336 }
 0x303   :  { %v2949_v8 = vsel %vm660_vm3, %v2801_v24, %v1337_v23  ;;  %v2954_v38 = vsel %vm660_vm3, %v1337_v23, %v2801_v24  ;;  %v368_v24 = vmul.f32 %v2688_v18, %v336_v35 }
 0x304   :  { %3916 = vst [vmem:[#allocation28_spill] sm:$0xff] %v2949_v8 }
 0x305   :  { %3917 = vst [vmem:[#allocation29_spill] sm:$0xff] %v2954_v38  ;;  %v2991_v35 = vadd.f32 %v2497_v29, %v368_v24 }
 0x307   :  { %696 = vrot.lane.b32.xlu0 %v2903_v31, %s2283_s1  ;;  %752 = vrot.lane.b32.xlu2 %v2903_v31, %s2282_s0  ;;  %v404_v55 = vsub.f32 0.0, %v2991_v35 }
 0x308   :  { %656 = vrot.lane.b32.xlu1 %v2880_v34, %s2281_s12 }
 0x309   :  { %v2969_v3 = vpop.permute.xlu2 %758  ;;  %v1567_v6 = vpop.permute.xlu0 %1566 }
 0x30a   :  { %v1283_v46 = vpop.permute.xlu1 %1282  ;;  %v2973_v12 = vsel %vm908_vm10, %v1567_v6, %v1575_v44  ;;  %v2977_v26 = vsel %vm908_vm10, %v1575_v44, %v1567_v6  ;;  %v417_v44 = vmul.f32 1.442695, %v403_v1 }
 0x30b   :  { %3918 = vst [vmem:[#allocation30_spill] sm:$0xff] %v2973_v12  ;;  %v2981_v18 = vsel %vm612_vm15, %v1283_v46, %v1291_v16  ;;  %v2985_v23 = vsel %vm612_vm15, %v1291_v16, %v1283_v46  ;;  %v1184_v16 = vor.u32 1.1754944e-38, %v1183_v7  ;;  %v1190_v46 = vadd.f32 %v2174_v49, %v1189_v53 }
 0x30c   :  { %3919 = vst [vmem:[#allocation31_spill] sm:$0xff] %v2977_v26  ;;  %2175 = vpow2.f32 %v417_v44  ;;  %v1197_v7 = vand.u32 2147483648, %v2914_v14 }
 0x30d   :  { %3920 = vst [vmem:[#allocation32_spill] sm:$0xff] %v2981_v18  ;;  %v1185_v6 = vsel %vm1182_vm13, %v1184_v16, %v1180_v51  ;;  %v419_v51 = vmul.f32 1.442695, %v404_v55  ;;  %v1194_v16 = vsel %vm1193_vm7, %v2174_v49, %v1190_v46 }
 0x30e   :  { %3921 = vst [vmem:[#allocation33_spill] sm:$0xff] %v2985_v23  ;;  %v3016_v44 = vmul.f32 %v1185_v6, %v2817_v54 }
 0x30f   :  { %856 = vrot.lane.b32.xlu0 %v2880_v34, %s2285_s14  ;;  %800 = vrot.lane.b32.xlu2 %v2903_v31, %s2284_s13  ;;  %2177 = vpow2.f32 %v419_v51 }
 0x310   :  { %760 = vrot.lane.b32.xlu1 %v2880_v34, %s2282_s0  ;;  %3924 = vst [vmem:[#allocation36_spill] sm:$0xff] %v3016_v44 }
 0x311   :  { %v3000_v24 = vpop.permute.xlu2 %806  ;;  %v1245_v1 = vpop.permute.xlu0 %1244 }
 0x312   :  { %v1483_v28 = vpop.permute.xlu1 %1482  ;;  %v2176_v53 = vpop.eup %2175 }
 0x313   :  { %v3005_v25 = vsel %vm812_vm11, %v2856_v11, %v1483_v28  ;;  %v3010_v59 = vsel %vm812_vm11, %v1483_v28, %v2856_v11  ;;  %v1198_v11 = vor.u32 1.1754944e-38, %v1197_v7  ;;  %v3026_v55 = vadd.f32 1.0, %v2176_v53 }
 0x314   :  { %3922 = vst [vmem:[#allocation34_spill] sm:$0xff] %v3005_v25 }
 0x315   :  { %3923 = vst [vmem:[#allocation35_spill] sm:$0xff] %v3010_v59  ;;  %v1199_v6 = vsel %vm1196_vm8, %v1198_v11, %v1194_v16  ;;  %2179 = vrcp.f32 %v3026_v55  ;;  %v2178_v48 = vpop.eup %2177  ;;  %vm518_vm12 = vweird.f32 %v3026_v55  ;;  %v522_v18 = vand.u32 2147483647, %v3026_v55 }
 0x316   :  { %v3037_v7 = vmul.f32 %v1199_v6, %v2844_v9 }
 0x317   :  { %904 = vrot.lane.b32.xlu0 %v2880_v34, %s2286_s15  ;;  %1378 = vrot.lane.b32.xlu2 %v3016_v44, %s2283_s1  ;;  %vm523_vm14 = vcmp.eq.f32.partialorder %v522_v18, 8.507059e+37 }
 0x318   :  { %808 = vrot.lane.b32.xlu1 %v2880_v34, %s2284_s13  ;;  %3927 = vst [vmem:[#allocation39_spill] sm:$0xff] %v3037_v7 }
 0x319   :  { %v3024_v14 = vpop.permute.xlu2 %854  ;;  %v560_v54 = vpop.permute.xlu0 %559 }
 0x31a   :  { %v1237_v28 = vpop.permute.xlu1 %1236 }
 0x31b   :  { %v3030_v49 = vsel %vm565_vm0, %v1237_v28, %v1245_v1  ;;  %v3034_v46 = vsel %vm565_vm0, %v1245_v1, %v1237_v28  ;;  %v3048_v1 = vadd.f32 1.0, %v2178_v48  ;;  %v2180_v48 = vpop.eup %2179 }
 0x31c   :  { %3925 = vst [vmem:[#allocation37_spill] sm:$0xff] %v3030_v49  ;;  %v514_v26 = vmul.f32 %v2180_v48, %v3026_v55  ;;  %v2195_v49 = vld [vmem:[#allocation3 + $0x78] sm:$0xff]  ;;  %vm519_vm9 = vweird.f32 %v2180_v48 }
 0x31d   :  { %3926 = vst [vmem:[#allocation38_spill] sm:$0xff] %v3034_v46  ;;  %2181 = vrcp.f32 %v3048_v1  ;;  %v1043_v23 = vsub.f32 %v2195_v49, %v2526_v45  ;;  %vm520_vm13 = vmor %vm518_vm12, %vm519_vm9  ;;  %vm532_vm7 = vweird.f32 %v3048_v1 }
 0x31f   :  { %1332 = vrot.lane.b32.xlu0 %v3016_v44, %s2281_s12  ;;  %1340 = vrot.lane.b32.xlu2 %v3037_v7, %s2281_s12  ;;  %v4025_v52 = vld [vmem:[#allocation39_spill] sm:$0xff] }
 0x320   :  { %848 = vrot.lane.b32.xlu1 %v2903_v31, %s2285_s14 }
 0x321   :  { %v3046_v51 = vpop.permute.xlu2 %894  ;;  %v647_v53 = vpop.permute.xlu0 %646 }
 0x322   :  { %v552_v16 = vpop.permute.xlu1 %551  ;;  %v3053_v9 = vsel %vm660_vm3, %v647_v53, %v2944_v15  ;;  %v3058_v11 = vsel %vm660_vm3, %v2944_v15, %v647_v53 }
 0x323   :  { %v3062_v6 = vsel %vm565_vm0, %v552_v16, %v560_v54  ;;  %v3066_v28 = vsel %vm565_vm0, %v560_v54, %v552_v16  ;;  %v515_v54 = vsub.f32 1.0, %v514_v26  ;;  %v3088_v60 = vpop.eup %2181  ;;  %v2196_v26 = vld [vmem:[#allocation3 + $0x70] sm:$0xff] }
 0x324   :  { %v528_v62 = vmul.f32 %v3088_v60, %v3048_v1  ;;  %v1042_v38 = vsub.f32 %v2196_v26, %v2526_v45  ;;  %vm533_vm1 = vweird.f32 %v3088_v60 }
 0x325   :  { %v516_v12 = vmul.f32 %v2180_v48, %v515_v54  ;;  %vm534_vm8 = vmor %vm532_vm7, %vm533_vm1 }
 0x326   :  { %v1074_v54 = vmul.f32 %v2722_v57, %v1042_v38  ;;  %v529_v34 = vsub.f32 1.0, %v528_v62  ;;  %v524_v38 = vand.u32 2147483648, %v3026_v55 }
 0x327   :  { %1286 = vrot.lane.b32.xlu0 %v3016_v44, %s2277_s10  ;;  %1524 = vrot.lane.b32.xlu2 %v3016_v44, %s2285_s14  ;;  %v517_v26 = vadd.f32 %v2180_v48, %v516_v12 }
 0x328   :  { %896 = vrot.lane.b32.xlu1 %v2903_v31, %s2286_s15  ;;  %v3129_v62 = vadd.f32 %v1074_v54, %v2497_v29  ;;  %v530_v12 = vmul.f32 %v3088_v60, %v529_v34 }
 0x329   :  { %v3076_v15 = vpop.permute.xlu2 %1384  ;;  %v703_v53 = vpop.permute.xlu0 %702 }
 0x32a   :  { %v607_v59 = vpop.permute.xlu1 %606  ;;  %v531_v18 = vadd.f32 %v3088_v60, %v530_v12 }
 0x32b   :  { %v3081_v16 = vsel %vm612_vm15, %v2912_v2, %v607_v59  ;;  %v3086_v46 = vsel %vm612_vm15, %v607_v59, %v2912_v2  ;;  %v1075_v2 = vmul.f32 %v2722_v57, %v1043_v23 }
 0x32c   :  { %v535_v5 = vsel %vm534_vm8, %v3088_v60, %v531_v18 }
 0x32d   :  { %v3126_v13 = vadd.f32 %v1075_v2, %v2497_v29 }
 0x32f   :  { %1570 = vrot.lane.b32.xlu0 %v3016_v44, %s2286_s15  ;;  %1294 = vrot.lane.b32.xlu2 %v3037_v7, %s2277_s10  ;;  %v1091_v55 = vsub.f32 0.0, %v3126_v13 }
 0x330   :  { %1386 = vrot.lane.b32.xlu1 %v3037_v7, %s2283_s1 }
 0x331   :  { %v3101_v59 = vpop.permute.xlu2 %1284  ;;  %v751_v49 = vpop.permute.xlu0 %750 }
 0x332   :  { %v695_v27 = vpop.permute.xlu1 %694  ;;  %v3107_v25 = vsel %vm764_vm6, %v751_v49, %v2969_v3  ;;  %v3112_v45 = vsel %vm764_vm6, %v2969_v3, %v751_v49  ;;  %v521_v3 = vsel %vm520_vm13, %v2180_v48, %v517_v26  ;;  %v1090_v48 = vsub.f32 0.0, %v3129_v62 }
 0x333   :  { %3928 = vst [vmem:[#allocation40_spill] sm:$0xff] %v3112_v45  ;;  %v3116_v23 = vsel %vm708_vm5, %v695_v27, %v703_v53  ;;  %v3120_v57 = vsel %vm708_vm5, %v703_v53, %v695_v27  ;;  %v525_v27 = vor.u32 1.1754944e-38, %v524_v38 }
 0x335   :  { %v526_v2 = vsel %vm523_vm14, %v525_v27, %v521_v3  ;;  %v538_v3 = vand.u32 2147483648, %v3048_v1  ;;  %v1106_v27 = vmul.f32 1.442695, %v1091_v55 }
 0x336   :  { %v3168_v12 = vmul.f32 %v526_v2, %v2957_v43 }
 0x337   :  { %1248 = vrot.lane.b32.xlu0 %v3037_v7, %s2280_s3  ;;  %1478 = vrot.lane.b32.xlu2 %v3016_v44, %s2284_s13  ;;  %2183 = vpow2.f32 %v1106_v27 }
 0x338   :  { %1532 = vrot.lane.b32.xlu1 %v3037_v7, %s2285_s14  ;;  %3930 = vst [vmem:[#allocation42_spill] sm:$0xff] %v3168_v12 }
 0x339   :  { %v3139_v53 = vpop.permute.xlu2 %1476  ;;  %v799_v29 = vpop.permute.xlu0 %798 }
 0x33a   :  { %v847_v34 = vpop.permute.xlu1 %846  ;;  %v3145_v49 = vsel %vm812_vm11, %v799_v29, %v3000_v24  ;;  %v3150_v54 = vsel %vm812_vm11, %v3000_v24, %v799_v29  ;;  %v536_v24 = vand.u32 2147483647, %v3048_v1  ;;  %v1104_v29 = vmul.f32 1.442695, %v1090_v48 }
 0x33b   :  { %3929 = vst [vmem:[#allocation41_spill] sm:$0xff] %v3150_v54  ;;  %v3157_v26 = vsel %vm860_vm2, %v847_v34, %v3024_v14  ;;  %v3162_v38 = vsel %vm860_vm2, %v3024_v14, %v847_v34  ;;  %v539_v14 = vor.u32 1.1754944e-38, %v538_v3 }
 0x33c   :  { %vm537_vm9 = vcmp.eq.f32.partialorder %v536_v24, 8.507059e+37  ;;  %2185 = vpow2.f32 %v1104_v29 }
 0x33d   :  { %v540_v2 = vsel %vm537_vm9, %v539_v14, %v535_v5  ;;  %v2184_v3 = vpop.eup %2183 }
 0x33e   :  { %v3198_v18 = vmul.f32 %v540_v2, %v2991_v35  ;;  %v1115_v29 = vadd.f32 1.0, %v2184_v3 }
 0x33f   :  { %602 = vrot.lane.b32.xlu0 %v3168_v12, %s2277_s10  ;;  %1578 = vrot.lane.b32.xlu2 %v3037_v7, %s2286_s15 }
 0x340   :  { %1486 = vrot.lane.b32.xlu1 %v3037_v7, %s2284_s13  ;;  %3933 = vst [vmem:[#allocation45_spill] sm:$0xff] %v3198_v18  ;;  %2187 = vrcp.f32 %v1115_v29  ;;  %vm1219_vm14 = vweird.f32 %v1115_v29 }
 0x341   :  { %v1577_v1 = vpop.permute.xlu2 %1576  ;;  %v1377_v43 = vpop.permute.xlu0 %1376 }
 0x342   :  { %v903_v55 = vpop.permute.xlu1 %902  ;;  %v3180_v60 = vsel %vm708_vm5, %v1377_v43, %v3076_v15  ;;  %v3185_v48 = vsel %vm708_vm5, %v3076_v15, %v1377_v43  ;;  %v2186_v15 = vpop.eup %2185 }
 0x343   :  { %3931 = vst [vmem:[#allocation43_spill] sm:$0xff] %v3180_v60  ;;  %v3190_v34 = vsel %vm908_vm10, %v3046_v51, %v903_v55  ;;  %v3195_v5 = vsel %vm908_vm10, %v903_v55, %v3046_v51  ;;  %v1114_v14 = vadd.f32 1.0, %v2186_v15 }
 0x344   :  { %3932 = vst [vmem:[#allocation44_spill] sm:$0xff] %v3185_v48 }
 0x345   :  { %2189 = vrcp.f32 %v1114_v14  ;;  %vm1205_vm1 = vweird.f32 %v1114_v14 }
 0x347   :  { %658 = vrot.lane.b32.xlu0 %v3198_v18, %s2281_s12  ;;  %555 = vrot.lane.b32.xlu2 %v3168_v12, %s2280_s3 }
 0x348   :  { %1240 = vrot.lane.b32.xlu1 %v3016_v44, %s2280_s3 }
 0x349   :  { %v3206_v24 = vpop.permute.xlu2 %561  ;;  %v1339_v27 = vpop.permute.xlu0 %1338 }
 0x34a   :  { %v1331_v51 = vpop.permute.xlu1 %1330 }
 0x34b   :  { %v3210_v35 = vsel %vm660_vm3, %v1331_v51, %v1339_v27  ;;  %v3214_v43 = vsel %vm660_vm3, %v1339_v27, %v1331_v51  ;;  %v2188_v51 = vpop.eup %2187 }
 0x34c   :  { %3934 = vst [vmem:[#allocation46_spill] sm:$0xff] %v3210_v35  ;;  %v1215_v48 = vmul.f32 %v2188_v51, %v1115_v29  ;;  %vm1220_vm12 = vweird.f32 %v2188_v51 }
 0x34d   :  { %3935 = vst [vmem:[#allocation47_spill] sm:$0xff] %v3214_v43  ;;  %v2190_v43 = vpop.eup %2189  ;;  %vm1221_vm7 = vmor %vm1219_vm14, %vm1220_vm12 }
 0x34e   :  { %v1201_v45 = vmul.f32 %v2190_v43, %v1114_v14  ;;  %vm1206_vm13 = vweird.f32 %v2190_v43 }
 0x34f   :  { %706 = vrot.lane.b32.xlu0 %v3198_v18, %s2283_s1  ;;  %610 = vrot.lane.b32.xlu2 %v3198_v18, %s2277_s10  ;;  %vm3276_vm8 = vmor %vm1205_vm1, %vm1206_vm13 }
 0x350   :  { %563 = vrot.lane.b32.xlu1 %v3198_v18, %s2280_s3  ;;  %v1202_v22 = vsub.f32 1.0, %v1201_v45  ;;  %v1225_v45 = vand.u32 2147483648, %v1115_v29 }
 0x351   :  { %v3222_v2 = vpop.permute.xlu2 %648  ;;  %v1531_v55 = vpop.permute.xlu0 %1530 }
 0x352   :  { %v1523_v3 = vpop.permute.xlu1 %1522 }
 0x353   :  { %v3226_v15 = vsel %vm860_vm2, %v1523_v3, %v1531_v55  ;;  %v3230_v27 = vsel %vm860_vm2, %v1531_v55, %v1523_v3 }
 0x354   :  { %3936 = vst [vmem:[#allocation48_spill] sm:$0xff] %v3226_v15 }
 0x355   :  { %3937 = vst [vmem:[#allocation49_spill] sm:$0xff] %v3230_v27  ;;  %v1216_v27 = vsub.f32 1.0, %v1215_v48 }
 0x357   :  { %810 = vrot.lane.b32.xlu0 %v3198_v18, %s2284_s13  ;;  %698 = vrot.lane.b32.xlu2 %v3168_v12, %s2283_s1  ;;  %v1217_v10 = vmul.f32 %v2188_v51, %v1216_v27  ;;  %v1211_v27 = vand.u32 2147483648, %v1114_v14 }
 0x358   :  { %650 = vrot.lane.b32.xlu1 %v3168_v12, %s2281_s12 }
 0x359   :  { %v3238_v8 = vpop.permute.xlu2 %704  ;;  %v1569_v35 = vpop.permute.xlu0 %1568 }
 0x35a   :  { %v1293_v58 = vpop.permute.xlu1 %1292  ;;  %v3242_v55 = vsel %vm908_vm10, %v1569_v35, %v1577_v1  ;;  %v3246_v3 = vsel %vm908_vm10, %v1577_v1, %v1569_v35  ;;  %v1203_v1 = vmul.f32 %v2190_v43, %v1202_v22 }
 0x35b   :  { %3938 = vst [vmem:[#allocation50_spill] sm:$0xff] %v3242_v55  ;;  %v3251_v0 = vsel %vm612_vm15, %v3101_v59, %v1293_v58  ;;  %v3256_v17 = vsel %vm612_vm15, %v1293_v58, %v3101_v59  ;;  %v1218_v55 = vadd.f32 %v2188_v51, %v1217_v10 }
 0x35c   :  { %3939 = vst [vmem:[#allocation51_spill] sm:$0xff] %v3246_v3  ;;  %v1204_v22 = vadd.f32 %v2190_v43, %v1203_v1 }
 0x35d   :  { %3940 = vst [vmem:[#allocation52_spill] sm:$0xff] %v3251_v0  ;;  %v1209_v0 = vand.u32 2147483647, %v1114_v14  ;;  %v1222_v31 = vsel %vm1221_vm7, %v2188_v51, %v1218_v55 }
 0x35e   :  { %3941 = vst [vmem:[#allocation53_spill] sm:$0xff] %v3256_v17  ;;  %v1223_v17 = vand.u32 2147483647, %v1115_v29  ;;  %v1212_v29 = vor.u32 1.1754944e-38, %v1211_v27 }
 0x35f   :  { %850 = vrot.lane.b32.xlu0 %v3168_v12, %s2285_s14  ;;  %762 = vrot.lane.b32.xlu2 %v3198_v18, %s2282_s0  ;;  %vm1210_vm12 = vcmp.eq.f32.partialorder %v1209_v0, 8.507059e+37 }
 0x360   :  { %754 = vrot.lane.b32.xlu1 %v3168_v12, %s2282_s0  ;;  %vm1224_vm9 = vcmp.eq.f32.partialorder %v1223_v17, 8.507059e+37 }
 0x361   :  { %v3264_v48 = vpop.permute.xlu2 %752  ;;  %v1247_v35 = vpop.permute.xlu0 %1246 }
 0x362   :  { %v1485_v3 = vpop.permute.xlu1 %1484 }
 0x363   :  { %v3269_v58 = vsel %vm812_vm11, %v3139_v53, %v1485_v3  ;;  %v3274_v59 = vsel %vm812_vm11, %v1485_v3, %v3139_v53  ;;  %v1208_v53 = vsel %vm3276_vm8, %v2190_v43, %v1204_v22  ;;  %v1226_v3 = vor.u32 1.1754944e-38, %v1225_v45 }
 0x364   :  { %3942 = vst [vmem:[#allocation54_spill] sm:$0xff] %v3269_v58  ;;  %v1213_v22 = vsel %vm1210_vm12, %v1212_v29, %v1208_v53 }
 0x365   :  { %3943 = vst [vmem:[#allocation55_spill] sm:$0xff] %v3274_v59  ;;  %v1227_v59 = vsel %vm1224_vm9, %v1226_v3, %v1222_v31  ;;  %v3310_v0 = vmul.f32 %v1213_v22, %v3129_v62 }
 0x366   :  { %v3307_v31 = vmul.f32 %v1227_v59, %v3126_v13 }
 0x367   :  { %898 = vrot.lane.b32.xlu0 %v3168_v12, %s2286_s15  ;;  %858 = vrot.lane.b32.xlu2 %v3198_v18, %s2285_s14  ;;  %3949 = vst [vmem:[#allocation59_spill] sm:$0xff] %v3310_v0 }
 0x368   :  { %802 = vrot.lane.b32.xlu1 %v3168_v12, %s2284_s13  ;;  %3948 = vst [vmem:[#allocation58_spill] sm:$0xff] %v3307_v31 }
 0x369   :  { %v801_v14 = vpop.permute.xlu2 %800  ;;  %v554_v1 = vpop.permute.xlu0 %553 }
 0x36a   :  { %v1239_v51 = vpop.permute.xlu1 %1238  ;;  %v3291_v55 = vsel %vm565_vm0, %v554_v1, %v3206_v24  ;;  %v3296_v43 = vsel %vm565_vm0, %v3206_v24, %v554_v1 }
 0x36b   :  { %v3300_v45 = vsel %vm565_vm0, %v1239_v51, %v1247_v35  ;;  %v3304_v17 = vsel %vm565_vm0, %v1247_v35, %v1239_v51 }
 0x36c   :  { %3946 = vst [vmem:[#allocation56_spill] sm:$0xff] %v3300_v45 }
 0x36d   :  { %3947 = vst [vmem:[#allocation57_spill] sm:$0xff] %v3304_v17 }
 0x36f   :  { %906 = vrot.lane.b32.xlu2 %v3198_v18, %s2286_s15  ;;  %1388 = vrot.lane.b32.xlu0 %v3307_v31, %s2283_s1 }
 0x370   :  { %1380 = vrot.lane.b32.xlu1 %v3310_v0, %s2283_s1 }
 0x371   :  { %v1379_v24 = vpop.permute.xlu2 %1378  ;;  %v609_v27 = vpop.permute.xlu0 %608 }
 0x372   :  { %v601_v10 = vpop.permute.xlu1 %600 }
 0x373   :  { %v3320_v35 = vsel %vm612_vm15, %v601_v10, %v609_v27  ;;  %v3324_v13 = vsel %vm612_vm15, %v609_v27, %v601_v10 }
 0x377   :  { %1526 = vrot.lane.b32.xlu0 %v3310_v0, %s2285_s14  ;;  %1334 = vrot.lane.b32.xlu2 %v3310_v0, %s2281_s12 }
 0x378   :  { %1342 = vrot.lane.b32.xlu1 %v3307_v31, %s2281_s12 }
 0x379   :  { %v1341_v62 = vpop.permute.xlu2 %1340  ;;  %v697_v59 = vpop.permute.xlu0 %696 }
 0x37a   :  { %v657_v53 = vpop.permute.xlu1 %656  ;;  %v3335_v3 = vsel %vm708_vm5, %v697_v59, %v3238_v8  ;;  %v3340_v29 = vsel %vm708_vm5, %v3238_v8, %v697_v59 }
 0x37b   :  { %v3345_v1 = vsel %vm660_vm3, %v3222_v2, %v657_v53  ;;  %v3350_v51 = vsel %vm660_vm3, %v657_v53, %v3222_v2 }
 0x37f   :  { %1296 = vrot.lane.b32.xlu0 %v3307_v31, %s2277_s10  ;;  %1534 = vrot.lane.b32.xlu2 %v3307_v31, %s2285_s14 }
 0x380   :  { %1288 = vrot.lane.b32.xlu1 %v3310_v0, %s2277_s10 }
 0x381   :  { %v1525_v8 = vpop.permute.xlu2 %1524  ;;  %v857_v22 = vpop.permute.xlu0 %856 }
 0x382   :  { %v761_v27 = vpop.permute.xlu1 %760 }
 0x383   :  { %v3361_v10 = vsel %vm764_vm6, %v3264_v48, %v761_v27  ;;  %v3366_v2 = vsel %vm764_vm6, %v761_v27, %v3264_v48 }
 0x384   :  { %3950 = vst [vmem:[#allocation60_spill] sm:$0xff] %v3366_v2 }
 0x387   :  { %1572 = vrot.lane.b32.xlu0 %v3310_v0, %s2286_s15  ;;  %1480 = vrot.lane.b32.xlu2 %v3310_v0, %s2284_s13 }
 0x388   :  { %1488 = vrot.lane.b32.xlu1 %v3307_v31, %s2284_s13 }
 0x389   :  { %v1295_v59 = vpop.permute.xlu2 %1294  ;;  %v905_v53 = vpop.permute.xlu0 %904 }
 0x38a   :  { %v809_v17 = vpop.permute.xlu1 %808 }
 0x38b   :  { %v3376_v45 = vsel %vm812_vm11, %v801_v14, %v809_v17  ;;  %v3380_v48 = vsel %vm812_vm11, %v809_v17, %v801_v14 }
 0x38c   :  { %3951 = vst [vmem:[#allocation61_spill] sm:$0xff] %v3380_v48 }
 0x38f   :  { %1250 = vrot.lane.b32.xlu0 %v3307_v31, %s2280_s3  ;;  %1580 = vrot.lane.b32.xlu2 %v3307_v31, %s2286_s15 }
 0x390   :  { %1242 = vrot.lane.b32.xlu1 %v3310_v0, %s2280_s3 }
 0x391   :  { %v1479_v27 = vpop.permute.xlu2 %1478  ;;  %v1333_v58 = vpop.permute.xlu0 %1332 }
 0x392   :  { %v849_v18 = vpop.permute.xlu1 %848  ;;  %v3390_v2 = vsel %vm660_vm3, %v1333_v58, %v1341_v62  ;;  %v3394_v14 = vsel %vm660_vm3, %v1341_v62, %v1333_v58 }
 0x393   :  { %3952 = vst [vmem:[#allocation62_spill] sm:$0xff] %v3390_v2  ;;  %v3398_v17 = vsel %vm860_vm2, %v849_v18, %v857_v22  ;;  %v3402_v15 = vsel %vm860_vm2, %v857_v22, %v849_v18 }
 0x394   :  { %3953 = vst [vmem:[#allocation63_spill] sm:$0xff] %v3394_v14 }
 0x397   :  { %1432 = vrot.lane.b32.xlu0 %v3016_v44, %s2282_s0  ;;  %1440 = vrot.lane.b32.xlu2 %v3037_v7, %s2282_s0 }
 0x398   :  { %1430 = vrot.lane.b32.xlu1 %v2769_v41, %s2282_s0 }
 0x399   :  { %v1579_v2 = vpop.permute.xlu2 %1578  ;;  %v1287_v58 = vpop.permute.xlu0 %1286 }
 0x39a   :  { %v897_v62 = vpop.permute.xlu1 %896  ;;  %v3412_v14 = vsel %vm612_vm15, %v1287_v58, %v1295_v59  ;;  %v3416_v18 = vsel %vm612_vm15, %v1295_v59, %v1287_v58 }
 0x39b   :  { %3954 = vst [vmem:[#allocation64_spill] sm:$0xff] %v3412_v14  ;;  %v3420_v22 = vsel %vm908_vm10, %v897_v62, %v905_v53  ;;  %v3424_v7 = vsel %vm908_vm10, %v905_v53, %v897_v62 }
 0x39c   :  { %3955 = vst [vmem:[#allocation65_spill] sm:$0xff] %v3416_v18 }
 0x39f   :  { %1438 = vrot.lane.b32.xlu0 %v2772_v36, %s2282_s0  ;;  %1434 = vrot.lane.b32.xlu2 %v3310_v0, %s2282_s0 }
 0x3a0   :  { %1442 = vrot.lane.b32.xlu1 %v3307_v31, %s2282_s0  ;;  %v238_v31 = vld [vmem:[%s3874_s6] sm:$0xff] }
 0x3a1   :  { %v1571_v41 = vpop.permute.xlu0 %1570  ;;  %v3432_v59 = vpop.permute.xlu2 %555 }
 0x3a2   :  { %v1387_v58 = vpop.permute.xlu1 %1386  ;;  %v3436_v44 = vsel %vm908_vm10, %v1571_v41, %v1579_v2  ;;  %v3440_v53 = vsel %vm908_vm10, %v1579_v2, %v1571_v41 }
 0x3a3   :  { %3956 = vst [vmem:[#allocation66_spill] sm:$0xff] %v3436_v44  ;;  %v3444_v62 = vsel %vm708_vm5, %v1379_v24, %v1387_v58  ;;  %v3448_v36 = vsel %vm708_vm5, %v1387_v58, %v1379_v24 }
 0x3a4   :  { %3957 = vst [vmem:[#allocation67_spill] sm:$0xff] %v3440_v53 }
 0x3a5   :  { %3958 = vst [vmem:[#allocation68_spill] sm:$0xff] %v3448_v36 }
 0x3a7   :  { %1764 = vperm.xlu0 %2110, %v238_v31   ;;  %1428 = vrot.lane.b32.xlu2 %v2631_v50, %s2282_s0  ;;  %v239_v31 = vld [vmem:[%s3874_s6 + $0x8] sm:$0xff] }
 0x3a8   :  { %1436 = vrot.lane.b32.xlu1 %v2634_v42, %s2282_s0 }
 0x3a9   :  { %v1249_v41 = vpop.permute.xlu0 %1248  ;;  %v611_v58 = vpop.permute.xlu2 %610 }
 0x3aa   :  { %v1533_v2 = vpop.permute.xlu1 %1532 }
 0x3ab   :  { %v3459_v0 = vsel %vm860_vm2, %v1525_v8, %v1533_v2  ;;  %v3463_v24 = vsel %vm860_vm2, %v1533_v2, %v1525_v8 }
 0x3ac   :  { %3959 = vst [vmem:[#allocation69_spill] sm:$0xff] %v3459_v0  ;;  %v670_v0 = vld [vmem:[#allocation6 + $0x2] ss:$8 sm:$0x3] }
 0x3ad   :  { %3960 = vst [vmem:[#allocation70_spill] sm:$0xff] %v3463_v24  ;;  %v718_v24 = vld [vmem:[#allocation6 + $0x3] ss:$8 sm:$0x3] }
 0x3ae   :  { %v721_v60 = vperm.slane %v718_v24, 1 }
 0x3af   :  { %1769 = vperm.xlu2 %2109, %v239_v31  }
 0x3b1   :  { %v603_v50 = vpop.permute.xlu0 %602  ;;  %v699_v44 = vpop.permute.xlu2 %698 }
 0x3b2   :  { %v1487_v53 = vpop.permute.xlu1 %1486 }
 0x3b3   :  { %v3470_v42 = vsel %vm812_vm11, %v1479_v27, %v1487_v53  ;;  %v3474_v18 = vsel %vm812_vm11, %v1487_v53, %v1479_v27 }
 0x3b4   :  { %3961 = vst [vmem:[#allocation71_spill] sm:$0xff] %v3470_v42  ;;  %v720_v42 = vperm.slane %v718_v24, 0 }
 0x3b5   :  { %3962 = vst [vmem:[#allocation72_spill] sm:$0xff] %v3474_v18 }
 0x3b6   :  { %v726_v24 = vmul.f32 %v720_v42, %v3120_v57 }
 0x3b9   :  { %v659_v14 = vpop.permute.xlu0 %658  ;;  %v3484_v36 = vpop.permute.xlu2 %762 }
 0x3ba   :  { %v1241_v8 = vpop.permute.xlu1 %1240 }
 0x3bb   :  { %v3478_v2 = vsel %vm565_vm0, %v1241_v8, %v1249_v41  ;;  %v3482_v31 = vsel %vm565_vm0, %v1249_v41, %v1241_v8  ;;  %v728_v41 = vmul.f32 %v720_v42, %v3340_v29  ;;  %v729_v8 = vmul.f32 %v721_v60, %v3335_v3 }
 0x3bc   :  { %3963 = vst [vmem:[#allocation73_spill] sm:$0xff] %v3478_v2  ;;  %v673_v3 = vperm.slane %v670_v0, 1 }
 0x3bd   :  { %3964 = vst [vmem:[#allocation74_spill] sm:$0xff] %v3482_v31  ;;  %v727_v31 = vmul.f32 %v721_v60, %v3116_v23 }
 0x3c1   :  { %v707_v54 = vpop.permute.xlu0 %706 }
 0x3c2   :  { %v3486_v12 = vpop.permute.xlu1 %563  ;;  %v712_v27 = vsel %vm708_vm5, %v699_v44, %v707_v54  ;;  %v716_v53 = vsel %vm708_vm5, %v707_v54, %v699_v44  ;;  %v724_v44 = vmul.f32 %v720_v42, %v2811_v30  ;;  %v725_v54 = vmul.f32 %v721_v60, %v2806_v21  ;;  %v622_v30 = vld [vmem:[#allocation6 + $0x1] ss:$8 sm:$0x3] }
 0x3c3   :  { %v730_v18 = vmul.f32 %v720_v42, %v716_v53  ;;  %v731_v2 = vmul.f32 %v721_v60, %v712_v27  ;;  %v681_v21 = vmul.f32 %v673_v3, %v3345_v1  ;;  %v3508_v60 = vld [vmem:[#allocation6 + $0x6] ss:$8 sm:$0x3]  ;;  %v679_v53 = vmul.f32 %v673_v3, %v3053_v9 }
 0x3c4   :  { %v872_v1 = vperm.slane %v3508_v60, 0 }
 0x3c5   :  { %1778 = vmatpush.msra.mxu1 %v730_v18  ;;  %1847 = vmatpush.msrb.mxu0 %v731_v2  ;;  %v3500_v18 = vpop.permute.xlu2 %858  ;;  %v672_v2 = vperm.slane %v670_v0, 0 }
 0x3c7   :  { %1779 = vmatpush.msra.mxu1 %v728_v41  ;;  %1848 = vmatpush.msrb.mxu0 %v729_v8  ;;  %v680_v42 = vmul.f32 %v672_v2, %v3350_v51  ;;  %v678_v0 = vmul.f32 %v672_v2, %v3058_v11  ;;  %v620_v41 = vsel %vm612_vm15, %v611_v58, %v603_v50  ;;  %v624_v51 = vperm.slane %v622_v30, 0 }
 0x3c8   :  { %v677_v11 = vmul.f32 %v673_v3, %v2786_v37 }
 0x3c9   :  { %1780 = vmatpush.msra.mxu1 %v726_v24  ;;  %1849 = vmatpush.msrb.mxu0 %v727_v31  ;;  %v3496_v48 = vpop.permute.xlu0 %810  ;;  %v632_v37 = vmul.f32 %v624_v51, %v3324_v13  ;;  %v573_v13 = vsel %vm565_vm0, %v3486_v12, %v3432_v59 }
 0x3ca   :  { %v651_v29 = vpop.permute.xlu1 %650 }
 0x3cb   :  { %v664_v27 = vsel %vm660_vm3, %v651_v29, %v659_v14  ;;  %v668_v23 = vsel %vm660_vm3, %v659_v14, %v651_v29  ;;  %1781 = vmatpush.msra.mxu1 %v724_v44  ;;  %1850 = vmatpush.msrb.mxu0 %v725_v54  ;;  %v616_v14 = vsel %vm612_vm15, %v603_v50, %v611_v58  ;;  %v625_v54 = vperm.slane %v622_v30, 1 }
 0x3cc   :  { %v682_v57 = vmul.f32 %v672_v2, %v668_v23  ;;  %v683_v31 = vmul.f32 %v673_v3, %v664_v27  ;;  %v676_v44 = vmul.f32 %v672_v2, %v2790_v39  ;;  %v634_v29 = vmul.f32 %v624_v51, %v620_v41  ;;  %v3532_v2 = vld [vmem:[#allocation6 + $0x7] ss:$8 sm:$0x3] }
 0x3cd   :  { %v3527_v58 = vpop.permute.xlu2 %906  ;;  %v635_v27 = vmul.f32 %v625_v54, %v616_v14  ;;  %v880_v23 = vmul.f32 %v872_v1, %v3398_v17  ;;  %v633_v39 = vmul.f32 %v625_v54, %v3320_v35  ;;  %v878_v3 = vmul.f32 %v872_v1, %v3157_v26 }
 0x3ce   :  { %1782 = vmatpush.msra.mxu1 %v682_v57  ;;  %1851 = vmatpush.msrb.mxu0 %v683_v31  ;;  %v574_v57 = vld [vmem:[#allocation6] ss:$8 sm:$0x3]  ;;  %v3535_v31 = vld [vmem:[#allocation6 + $0x5] ss:$8 sm:$0x3]  ;;  %v631_v17 = vmul.f32 %v625_v54, %v3081_v16  ;;  %v628_v30 = vmul.f32 %v624_v51, %v2756_v32  ;;  %v876_v26 = vmul.f32 %v872_v1, %v2895_v56 }
 0x3cf   :  { %v824_v14 = vperm.slane %v3535_v31, 0 }
 0x3d0   :  { %1783 = vmatpush.msra.mxu1 %v680_v42  ;;  %1852 = vmatpush.msrb.mxu0 %v681_v21  ;;  %v630_v42 = vmul.f32 %v624_v51, %v3086_v46  ;;  %v576_v21 = vperm.slane %v574_v57, 0  ;;  %v569_v46 = vsel %vm565_vm0, %v3432_v59, %v3486_v12  ;;  %v577_v12 = vperm.slane %v574_v57, 1 }
 0x3d1   :  { %v3516_v8 = vpop.permute.xlu0 %850  ;;  %v921_v57 = vperm.slane %v3532_v2, 1 }
 0x3d2   :  { %v3519_v24 = vpop.permute.xlu1 %754  ;;  %1784 = vmatpush.msra.mxu1 %v678_v0  ;;  %1853 = vmatpush.msrb.mxu0 %v679_v53  ;;  %v864_v9 = vsel %vm860_vm2, %v3516_v8, %v3500_v18  ;;  %v920_v0 = vperm.slane %v3532_v2, 0  ;;  %v629_v53 = vmul.f32 %v625_v54, %v2752_v20  ;;  %v586_v59 = vmul.f32 %v576_v21, %v573_v13 }
 0x3d3   :  { %v882_v50 = vmul.f32 %v872_v1, %v864_v9  ;;  %v587_v20 = vmul.f32 %v577_v12, %v569_v46  ;;  %v832_v9 = vmul.f32 %v824_v14, %v3376_v45  ;;  %v585_v54 = vmul.f32 %v577_v12, %v3291_v55 }
 0x3d4   :  { %1785 = vmatpush.msra.mxu1 %v676_v44  ;;  %1854 = vmatpush.msrb.mxu0 %v677_v11  ;;  %v928_v1 = vmul.f32 %v920_v0, %v3420_v22  ;;  %v584_v11 = vmul.f32 %v576_v21, %v3296_v43  ;;  %v830_v22 = vmul.f32 %v824_v14, %v3145_v49 }
 0x3d5   :  { %1801 = vmatpush.msra.mxu2 %v882_v50  ;;  %v3562_v44 = vpop.permute.xlu2 %1334  ;;  %v926_v50 = vmul.f32 %v920_v0, %v3190_v34  ;;  %v868_v43 = vsel %vm860_vm2, %v3500_v18, %v3516_v8  ;;  %v583_v55 = vmul.f32 %v577_v12, %v3062_v6  ;;  %v924_v45 = vmul.f32 %v920_v0, %v2860_v47  ;;  %v3594_v6 = vld [vmem:[%s3873_s5] sm:$0xff] }
 0x3d6   :  { %1786 = vmatpush.msra.mxu1 %v634_v29  ;;  %1855 = vmatpush.msrb.mxu0 %v635_v27  ;;  %v582_v29 = vmul.f32 %v576_v21, %v3066_v28  ;;  %v580_v27 = vmul.f32 %v576_v21, %v2766_v33  ;;  %v768_v33 = vsel %vm764_vm6, %v3519_v24, %v3484_v36  ;;  %v873_v47 = vperm.slane %v3508_v60, 1 }
 0x3d7   :  { %1802 = vmatpush.msra.mxu2 %v880_v23  ;;  %v3571_v23 = vld [vmem:[#allocation6 + $0x4] ss:$8 sm:$0x3]  ;;  %v828_v18 = vmul.f32 %v824_v14, %v2870_v61  ;;  %v581_v8 = vmul.f32 %v577_v12, %v2761_v40  ;;  %v3605_v40 = vld [vmem:[#allocation6 + $0x6] ss:$8 sm:$0x3]  ;;  %v929_v2 = vmul.f32 %v921_v57, %v3424_v7 }
 0x3d8   :  { %1787 = vmatpush.msra.mxu1 %v632_v37  ;;  %1856 = vmatpush.msrb.mxu0 %v633_v39  ;;  %v883_v37 = vmul.f32 %v873_v47, %v868_v43  ;;  %v881_v60 = vmul.f32 %v873_v47, %v3402_v15  ;;  %v879_v21 = vmul.f32 %v873_v47, %v3162_v38  ;;  %v3967_v12 = vld [vmem:[#allocation42_spill] sm:$0xff] }
 0x3d9   :  { %1803 = vmatpush.msra.mxu2 %v878_v3  ;;  %v899_v35 = vpop.permute.xlu0 %898  ;;  %v3601_v3 = vld [vmem:[#allocation6 + $0x3] ss:$8 sm:$0x3] }
 0x3da   :  { %v3550_v16 = vpop.permute.xlu1 %802  ;;  %1788 = vmatpush.msra.mxu1 %v630_v42  ;;  %1857 = vmatpush.msrb.mxu0 %v631_v17  ;;  %v912_v32 = vsel %vm908_vm10, %v899_v35, %v3527_v58  ;;  %v916_v28 = vsel %vm908_vm10, %v3527_v58, %v899_v35  ;;  %v776_v58 = vperm.slane %v3571_v23, 0  ;;  %v1401_v13 = vperm.slane %v3601_v3, 1 }
 0x3db   :  { %v816_v56 = vsel %vm812_vm11, %v3550_v16, %v3496_v48  ;;  %1804 = vmatpush.msra.mxu2 %v876_v26  ;;  %v930_v41 = vmul.f32 %v920_v0, %v912_v32  ;;  %v931_v61 = vmul.f32 %v921_v57, %v916_v28  ;;  %v927_v35 = vmul.f32 %v921_v57, %v3195_v5 }
 0x3dc   :  { %1789 = vmatpush.msra.mxu1 %v628_v30  ;;  %1858 = vmatpush.msrb.mxu0 %v629_v53  ;;  %v834_v51 = vmul.f32 %v824_v14, %v816_v56  ;;  %v786_v39 = vmul.f32 %v776_v58, %v768_v33  ;;  %v784_v42 = vmul.f32 %v776_v58, %v3361_v10  ;;  %v1546_v10 = vperm.slane %v3605_v40, 0  ;;  %v3645_v56 = vld [vmem:[#allocation6 + $0x2] ss:$8 sm:$0x3]  ;;  %v3973_v33 = vld [vmem:[#allocation21_spill] sm:$0xff] }
 0x3dd   :  { %1836 = vmatpush.msra.mxu3 %v930_v41  ;;  %v3609_v17 = vpop.permute.xlu2 %1534  ;;  %v782_v7 = vmul.f32 %v776_v58, %v3107_v25  ;;  %v820_v38 = vsel %vm812_vm11, %v3496_v48, %v3550_v16  ;;  %v877_v5 = vmul.f32 %v873_v47, %v2900_v63  ;;  %v925_v25 = vmul.f32 %v921_v57, %v2864_v19  ;;  %v3638_v48 = vld [vmem:[%s3873_s5 + $0x18] sm:$0xff] }
 0x3de   :  { %1790 = vmatpush.msra.mxu1 %v586_v59  ;;  %1805 = vmatpush.msra.mxu2 %v834_v51  ;;  %v780_v46 = vmul.f32 %v776_v58, %v2833_v4  ;;  %v825_v16 = vperm.slane %v3535_v31, 1  ;;  %v1409_v19 = vmul.f32 %v1401_v13, %v3444_v62  ;;  %v3965_v4 = vld [vmem:[#allocation61_spill] sm:$0xff]  ;;  %v3968_v59 = vld [vmem:[#allocation43_spill] sm:$0xff]  ;;  %v3970_v62 = vld [vmem:[#allocation48_spill] sm:$0xff]  ;;  %v777_v57 = vperm.slane %v3571_v23, 1 }
 0x3df   :  { %1859 = vmatpush.msrb.mxu0 %v587_v20  ;;  %1837 = vmatpush.msra.mxu3 %v928_v1  ;;  %v3966_v41 = vld [vmem:[#allocation69_spill] sm:$0xff]  ;;  %v1407_v51 = vmul.f32 %v1401_v13, %v3968_v59  ;;  %v3977_v23 = vld [vmem:[#allocation62_spill] sm:$0xff] }
 0x3e0   :  { %1791 = vmatpush.msra.mxu1 %v584_v11  ;;  %1806 = vmatpush.msra.mxu2 %v832_v9  ;;  %v835_v32 = vmul.f32 %v825_v16, %v820_v38  ;;  %v833_v63 = vmul.f32 %v825_v16, %v3965_v4  ;;  %v1554_v31 = vmul.f32 %v1546_v10, %v3966_v41  ;;  %v3969_v20 = vld [vmem:[#allocation41_spill] sm:$0xff]  ;;  %v3981_v38 = vld [vmem:[#allocation28_spill] sm:$0xff] }
 0x3e1   :  { %1860 = vmatpush.msrb.mxu0 %v585_v54  ;;  %1838 = vmatpush.msra.mxu3 %v926_v50  ;;  %v3578_v34 = vpop.permute.xlu0 %1388  ;;  %v831_v1 = vmul.f32 %v825_v16, %v3969_v20  ;;  %v1552_v9 = vmul.f32 %v1546_v10, %v3970_v62  ;;  %v829_v28 = vmul.f32 %v825_v16, %v3973_v33  ;;  %v3985_v20 = vld [vmem:[#allocation27_spill] sm:$0xff]  ;;  %v3735_v62 = vld [vmem:[%s3873_s5 + $0x20] sm:$0xff] }
 0x3e2   :  { %v3588_v49 = vpop.permute.xlu1 %1380  ;;  %1792 = vmatpush.msra.mxu1 %v582_v29  ;;  %1807 = vmatpush.msra.mxu2 %v830_v22  ;;  %v3971_v29 = vld [vmem:[#allocation23_spill] sm:$0xff] }
 0x3e3   :  { %1861 = vmatpush.msrb.mxu0 %v583_v55  ;;  %1839 = vmatpush.msra.mxu3 %v924_v45  ;;  %v1393_v15 = vsel %vm708_vm5, %v3588_v49, %v3578_v34  ;;  %v1355_v55 = vperm.slane %v3645_v56, 1  ;;  %v772_v45 = vsel %vm764_vm6, %v3484_v36, %v3519_v24  ;;  %v1397_v47 = vsel %vm708_vm5, %v3578_v34, %v3588_v49  ;;  %v3975_v36 = vld [vmem:[#allocation24_spill] sm:$0xff]  ;;  %v3691_v49 = vld [vmem:[#allocation6 + $0x5] ss:$8 sm:$0x3] }
 0x3e4   :  { %1793 = vmatpush.msra.mxu1 %v580_v27  ;;  %1808 = vmatpush.msra.mxu2 %v828_v18  ;;  %v1411_v53 = vmul.f32 %v1401_v13, %v1393_v15  ;;  %v3972_v27 = vld [vmem:[#allocation26_spill] sm:$0xff]  ;;  %v3673_v18 = vld [vmem:[%s3873_s5 + $0x10] sm:$0xff]  ;;  %v1550_v24 = vmul.f32 %v1546_v10, %v3975_v36  ;;  %v787_v34 = vmul.f32 %v777_v57, %v772_v45  ;;  %v3988_v45 = vld [vmem:[#allocation45_spill] sm:$0xff] }
 0x3e5   :  { %1862 = vmatpush.msrb.mxu0 %v581_v8  ;;  %1794 = vmatmul.f32.vlgmr.msra.gmra.mxu1 %v3594_v6  ;;  %v3654_v54 = vpop.permute.xlu2 %1480  ;;  %v1405_v43 = vmul.f32 %v1401_v13, %v3972_v27  ;;  %v3974_v8 = vld [vmem:[#allocation16_spill] sm:$0xff]  ;;  %v3696_v13 = vld [vmem:[#allocation6 + $0x1] ss:$8 sm:$0x3] }
 0x3e6   :  { %1863 = vmatmul.f32.vlgmr.msrb.gmra.mxu0 %v3594_v6  ;;  %1870 = vmatpush.msrb.mxu3 %v883_v37  ;;  %v3685_v37 = vld [vmem:[%s3873_s5 + $0x8] sm:$0xff]  ;;  %v1309_v4 = vperm.slane %v3696_v13, 1  ;;  %v3991_v36 = vld [vmem:[#allocation54_spill] sm:$0xff] }
 0x3e7   :  { %1905 = vmatpush.msrb.mxu1 %v931_v61  ;;  %1809 = vmatpush.msra.mxu2 %v786_v39  ;;  %v1400_v61 = vperm.slane %v3601_v3, 0  ;;  %v3976_v39 = vld [vmem:[#allocation12_spill] sm:$0xff]  ;;  %v3979_v3 = vld [vmem:[#allocation46_spill] sm:$0xff]  ;;  %v3987_v27 = vld [vmem:[#allocation71_spill] sm:$0xff] }
 0x3e8   :  { %1871 = vmatpush.msrb.mxu3 %v881_v60  ;;  %v1363_v60 = vmul.f32 %v1355_v55, %v3977_v23  ;;  %v1361_v15 = vmul.f32 %v1355_v55, %v3979_v3  ;;  %v3994_v23 = vld [vmem:[#allocation47_spill] sm:$0xff] }
 0x3e9   :  { %1906 = vmatpush.msrb.mxu1 %v929_v2  ;;  %1810 = vmatpush.msra.mxu2 %v784_v42  ;;  %v3619_v30 = vpop.permute.xlu0 %1526  ;;  %v1410_v2 = vmul.f32 %v1400_v61, %v1397_v47  ;;  %v3978_v42 = vld [vmem:[#allocation60_spill] sm:$0xff]  ;;  %v3745_v47 = vld [vmem:[#allocation6 + $0x7] ss:$8 sm:$0x3] }
 0x3ea   :  { %1872 = vmatpush.msrb.mxu3 %v879_v21  ;;  %v3626_v26 = vpop.permute.xlu1 %1342  ;;  %v1539_v0 = vsel %vm860_vm2, %v3619_v30, %v3609_v17  ;;  %v785_v21 = vmul.f32 %v777_v57, %v3978_v42  ;;  %v3995_v42 = vld [vmem:[#allocation34_spill] sm:$0xff] }
 0x3eb   :  { %1907 = vmatpush.msrb.mxu1 %v927_v35  ;;  %1811 = vmatpush.msra.mxu2 %v782_v7  ;;  %v1556_v14 = vmul.f32 %v1546_v10, %v1539_v0  ;;  %v1347_v50 = vsel %vm660_vm3, %v3562_v44, %v3626_v26  ;;  %v3980_v35 = vld [vmem:[#allocation68_spill] sm:$0xff]  ;;  %v1359_v0 = vmul.f32 %v1355_v55, %v3981_v38  ;;  %v3996_v38 = vld [vmem:[#allocation17_spill] sm:$0xff] }
 0x3ec   :  { %1873 = vmatpush.msrb.mxu3 %v877_v5  ;;  %v1365_v58 = vmul.f32 %v1355_v55, %v1347_v50  ;;  %v1408_v7 = vmul.f32 %v1400_v61, %v3980_v35  ;;  %v1500_v5 = vperm.slane %v3691_v49, 0  ;;  %v1351_v41 = vsel %vm660_vm3, %v3626_v26, %v3562_v44  ;;  %v3986_v50 = vld [vmem:[#allocation64_spill] sm:$0xff]  ;;  %v1260_v55 = vld [vmem:[#allocation6] ss:$8 sm:$0x3] }
 0x3ed   :  { %1908 = vmatpush.msrb.mxu1 %v925_v25  ;;  %1812 = vmatpush.msra.mxu2 %v780_v46  ;;  %v3982_v25 = vld [vmem:[#allocation40_spill] sm:$0xff]  ;;  %v1354_v44 = vperm.slane %v3645_v56, 0  ;;  %v3989_v56 = vld [vmem:[#allocation63_spill] sm:$0xff]  ;;  %v1263_v3 = vperm.slane %v1260_v55, 1 }
 0x3ee   :  { %1866 = vmatmul.f32.gmra.mxu0 %v3638_v48  ;;  %1797 = vmatmul.f32.gmra.mxu1 %v3638_v48  ;;  %v783_v46 = vmul.f32 %v777_v57, %v3982_v25  ;;  %v1308_v25 = vperm.slane %v3696_v13, 0  ;;  %v4000_v13 = vld [vmem:[#allocation65_spill] sm:$0xff] }
 0x3ef   :  { %1985 = vmatpush.msra.mxu1 %v1411_v53  ;;  %1874 = vmatpush.msrb.mxu3 %v835_v32  ;;  %v1362_v33 = vmul.f32 %v1354_v44, %v3989_v56 }
 0x3f0   :  { %1813 = vmatpush.msra.mxu2 %v3967_v12  ;;  %1939 = vmatpush.msra.mxu0 %v1556_v14  ;;  %v3983_v14 = vld [vmem:[#allocation44_spill] sm:$0xff] }
 0x3f1   :  { %1986 = vmatpush.msra.mxu1 %v1409_v19  ;;  %1875 = vmatpush.msrb.mxu3 %v833_v63  ;;  %v3651_v11 = vpop.permute.xlu0 %1296  ;;  %v1406_v32 = vmul.f32 %v1400_v61, %v3983_v14  ;;  %v3719_v63 = vpop.permute.xlu2 %1580  ;;  %v3984_v12 = vld [vmem:[#allocation20_spill] sm:$0xff] }
 0x3f2   :  { %1814 = vmatpush.msra.mxu2 %v3971_v29  ;;  %1940 = vmatpush.msra.mxu0 %v1554_v31  ;;  %v3661_v22 = vpop.permute.xlu1 %1288  ;;  %v781_v59 = vmul.f32 %v777_v57, %v3984_v12  ;;  %v1317_v29 = vmul.f32 %v1309_v4, %v3986_v50  ;;  %v1547_v50 = vperm.slane %v3605_v40, 1 }
 0x3f3   :  { %1987 = vmatpush.msra.mxu1 %v1407_v51  ;;  %1876 = vmatpush.msrb.mxu3 %v831_v1  ;;  %v1301_v53 = vsel %vm612_vm15, %v3661_v22, %v3651_v11  ;;  %v3729_v51 = vld [vmem:[%s3873_s5 + $0x28] sm:$0xff]  ;;  %v1404_v1 = vmul.f32 %v1400_v61, %v3985_v20  ;;  %v3992_v61 = vld [vmem:[#allocation32_spill] sm:$0xff]  ;;  %v4002_v20 = vld [vmem:[#allocation50_spill] sm:$0xff]  ;;  %s2287_s5 = smov [#allocation8]  }
 0x3f4   :  { %1815 = vmatpush.msra.mxu2 %v3974_v8  ;;  %1941 = vmatpush.msra.mxu0 %v1552_v9  ;;  %v1319_v26 = vmul.f32 %v1309_v4, %v1301_v53  ;;  %v1364_v9 = vmul.f32 %v1354_v44, %v1351_v41  ;;  %v3990_v8 = vld [vmem:[#allocation52_spill] sm:$0xff]  ;;  %v3998_v53 = vld [vmem:[#allocation13_spill] sm:$0xff]  ;;  %s2067_s29 = sshll.u32 %s2287_s5, 4  ;;  %s2068_s29 = int_to_ptr.vmem [resolvable:$true] %s2067_s29 }
 0x3f5   :  { %1988 = vmatpush.msra.mxu1 %v1405_v43  ;;  %1877 = vmatpush.msrb.mxu3 %v829_v28  ;;  %v1508_v43 = vmul.f32 %v1500_v5, %v3987_v27  ;;  %v1315_v57 = vmul.f32 %v1309_v4, %v3990_v8 }
 0x3f6   :  { %1816 = vmatpush.msra.mxu2 %v3976_v39  ;;  %2087 = vmatmul.msk.f32.vlgmr.msra.gmra.mxu3 %vm188_vm4, %v3673_v18  ;;  %v1313_v39 = vmul.f32 %v1309_v4, %v3992_v61  ;;  %v1316_v4 = vmul.f32 %v1308_v25, %v4000_v13  ;;  %v4008_v61 = vld [vmem:[#allocation70_spill] sm:$0xff] }
 0x3f7   :  { %1942 = vmatpush.msra.mxu0 %v1550_v24  ;;  %1989 = vmatpush.msra.mxu1 %v1365_v58  ;;  %v1506_v24 = vmul.f32 %v1500_v5, %v3991_v36 }
 0x3f8   :  { %1817 = vmatmul.f32.vlgmr.msra.gmra.mxu2 %v3685_v37  ;;  %1878 = vmatpush.msrb.mxu3 %v787_v34  ;;  %v3993_v34 = vld [vmem:[#allocation22_spill] sm:$0xff] }
 0x3f9   :  { %1916 = vmatpush.msrb.mxu2 %v1410_v2  ;;  %1990 = vmatpush.msra.mxu1 %v1363_v60  ;;  %v3700_v10 = vpop.permute.xlu0 %1572  ;;  %v1360_v60 = vmul.f32 %v1354_v44, %v3994_v23  ;;  %v4010_v23 = vld [vmem:[#allocation49_spill] sm:$0xff] }
 0x3fa   :  { %1879 = vmatpush.msrb.mxu3 %v785_v21  ;;  %v3705_v16 = vpop.permute.xlu1 %1488  ;;  %2089 = vmatmul.msk.f32.vlgmr.msrb.gmra.mxu1 %vm188_vm4, %v3673_v18  ;;  %v1504_v21 = vmul.f32 %v1500_v5, %v3995_v42  ;;  %v1585_v35 = vsel %vm908_vm10, %v3700_v10, %v3719_v63  ;;  %v1501_v42 = vperm.slane %v3691_v49, 1 }
 0x3fb   :  { %1917 = vmatpush.msrb.mxu2 %v1408_v7  ;;  %1991 = vmatpush.msra.mxu1 %v1361_v15  ;;  %v1493_v19 = vsel %vm812_vm11, %v3654_v54, %v3705_v16  ;;  %v1305_v15 = vsel %vm612_vm15, %v3651_v11, %v3661_v22  ;;  %v1592_v7 = vperm.slane %v3745_v47, 0 }
 0x3fc   :  { %1880 = vmatpush.msrb.mxu3 %v783_v46  ;;  %v1510_v31 = vmul.f32 %v1500_v5, %v1493_v19  ;;  %v3767_v46 = vpop.permute.xlu2 %1440  ;;  %v1318_v14 = vmul.f32 %v1308_v25, %v1305_v15 }
 0x3fd   :  { %1918 = vmatpush.msrb.mxu2 %v1406_v32  ;;  %1992 = vmatpush.msra.mxu1 %v1359_v0  ;;  %v3997_v0 = vld [vmem:[#allocation29_spill] sm:$0xff]  ;;  %v1602_v22 = vmul.f32 %v1592_v7, %v1585_v35  ;;  %v3999_v32 = vld [vmem:[#allocation66_spill] sm:$0xff] }
 0x3fe   :  { %1881 = vmatpush.msrb.mxu3 %v781_v59  ;;  %1943 = vmatpush.msra.mxu0 %v1510_v31  ;;  %v1358_v5 = vmul.f32 %v1354_v44, %v3997_v0  ;;  %v1600_v19 = vmul.f32 %v1592_v7, %v3999_v32  ;;  %v4001_v31 = vld [vmem:[#allocation73_spill] sm:$0xff]  ;;  %v1543_v44 = vsel %vm860_vm2, %v3609_v17, %v3619_v30 }
 0x3ff   :  { %1919 = vmatpush.msrb.mxu2 %v1404_v1  ;;  %2088 = vmatmul.msk.f32.gmra.mxu3 %vm188_vm4, %v3729_v51  ;;  %v1271_v12 = vmul.f32 %v1263_v3, %v4001_v31  ;;  %v1598_v1 = vmul.f32 %v1592_v7, %v4002_v20  ;;  %v4007_v17 = vld [vmem:[#allocation37_spill] sm:$0xff]  ;;  %v1557_v36 = vmul.f32 %v1547_v50, %v1543_v44 }
 0x400   :  { %1993 = vmatpush.msra.mxu1 %v1319_v26  ;;  %1820 = vmatmul.f32.gmra.mxu2 %v3735_v62  ;;  %v4003_v26 = vld [vmem:[#allocation53_spill] sm:$0xff]  ;;  %v1267_v30 = vmul.f32 %v1263_v3, %v4007_v17 }
 0x401   :  { %1882 = vmatpush.msrb.mxu3 %v3988_v45  ;;  %1920 = vmatpush.msrb.mxu2 %v1364_v9  ;;  %v1251_v28 = vpop.permute.xlu0 %1250  ;;  %v1314_v9 = vmul.f32 %v1308_v25, %v4003_v26  ;;  %v4005_v45 = vld [vmem:[#allocation30_spill] sm:$0xff] }
 0x402   :  { %1994 = vmatpush.msra.mxu1 %v1317_v29  ;;  %1944 = vmatpush.msra.mxu0 %v1508_v43  ;;  %v1243_v58 = vpop.permute.xlu1 %1242  ;;  %v4004_v29 = vld [vmem:[#allocation56_spill] sm:$0xff]  ;;  %v1596_v56 = vmul.f32 %v1592_v7, %v4005_v45 }
 0x403   :  { %1883 = vmatpush.msrb.mxu3 %v3993_v34  ;;  %1921 = vmatpush.msrb.mxu2 %v1362_v33  ;;  %v1255_v2 = vsel %vm565_vm0, %v1243_v58, %v1251_v28  ;;  %v1269_v27 = vmul.f32 %v1263_v3, %v4004_v29  ;;  %v1259_v43 = vsel %vm565_vm0, %v1251_v28, %v1243_v58  ;;  %v4006_v33 = vld [vmem:[#allocation33_spill] sm:$0xff]  ;;  %v4009_v28 = vld [vmem:[#allocation74_spill] sm:$0xff] }
 0x404   :  { %1995 = vmatpush.msra.mxu1 %v1315_v57  ;;  %1945 = vmatpush.msra.mxu0 %v1506_v24  ;;  %v1273_v11 = vmul.f32 %v1263_v3, %v1255_v2  ;;  %v1312_v8 = vmul.f32 %v1308_v25, %v4006_v33  ;;  %v1262_v57 = vperm.slane %v1260_v55, 0  ;;  %v1452_v24 = vld [vmem:[#allocation6 + $0x4] ss:$8 sm:$0x3]  ;;  %v1435_v34 = vpop.permute.xlu2 %1434  ;;  %v1553_v55 = vmul.f32 %v1547_v50, %v4010_v23  ;;  %v4011_v3 = vld [vmem:[#allocation57_spill] sm:$0xff] }
 0x405   :  { %1884 = vmatpush.msrb.mxu3 %v3996_v38  ;;  %1922 = vmatpush.msrb.mxu2 %v1360_v60  ;;  %v1454_v60 = vperm.slane %v1452_v24, 0  ;;  %v4012_v38 = vld [vmem:[#allocation25_spill] sm:$0xff]  ;;  %v4013_v25 = vld [vmem:[#allocation38_spill] sm:$0xff]  ;;  %v1455_v29 = vperm.slane %v1452_v24, 1 }
 0x406   :  { %1996 = vmatpush.msra.mxu1 %v1313_v39  ;;  %1946 = vmatpush.msra.mxu0 %v1504_v21  ;;  %v1272_v40 = vmul.f32 %v1262_v57, %v1259_v43  ;;  %v1555_v39 = vmul.f32 %v1547_v50, %v4008_v61  ;;  %v1270_v58 = vmul.f32 %v1262_v57, %v4009_v28  ;;  %v4019_v43 = vld [vmem:[#allocation31_spill] sm:$0xff]  ;;  %v4023_v24 = vld [vmem:[#allocation14_spill] sm:$0xff] }
 0x407   :  { %1885 = vmatpush.msrb.mxu3 %v3998_v53  ;;  %1923 = vmatpush.msrb.mxu2 %v1358_v5  ;;  %v1497_v21 = vsel %vm812_vm11, %v3705_v16, %v3654_v54  ;;  %v1268_v15 = vmul.f32 %v1262_v57, %v4011_v3  ;;  %v1551_v0 = vmul.f32 %v1547_v50, %v4012_v38  ;;  %v1593_v16 = vperm.slane %v3745_v47, 1  ;;  %v4027_v61 = vld [vmem:[#allocation15_spill] sm:$0xff] }
 0x408   :  { %1886 = vmatmul.f32.vlgmr.msrb.gmra.mxu3 %v3685_v37  ;;  %2090 = vmatmul.msk.f32.gmra.mxu1 %vm188_vm4, %v3729_v51  ;;  %v1589_v5 = vsel %vm908_vm10, %v3719_v63, %v3700_v10 }
 0x409   :  { %1974 = vmatpush.msra.mxu3 %v1602_v22  ;;  %1924 = vmatpush.msrb.mxu2 %v1318_v14  ;;  %v3775_v41 = vpop.permute.xlu0 %1432  ;;  %v1511_v22 = vmul.f32 %v1501_v42, %v1497_v21  ;;  %v1603_v10 = vmul.f32 %v1593_v16, %v1589_v5  ;;  %v4014_v14 = vld [vmem:[#allocation72_spill] sm:$0xff]  ;;  %v1597_v45 = vmul.f32 %v1593_v16, %v4019_v43 }
 0x40a   :  { %1997 = vmatpush.msra.mxu1 %v1273_v11  ;;  %v3778_v59 = vpop.permute.xlu1 %1430  ;;  %v1446_v49 = vsel %vm764_vm6, %v3775_v41, %v3767_v46  ;;  %v1266_v11 = vmul.f32 %v1262_v57, %v4013_v25  ;;  %v1509_v32 = vmul.f32 %v1501_v42, %v4014_v14 }
 0x40b   :  { %1975 = vmatpush.msra.mxu3 %v1600_v19  ;;  %1925 = vmatpush.msrb.mxu2 %v1316_v4  ;;  %v1462_v63 = vmul.f32 %v1454_v60, %v1446_v49  ;;  %v4015_v19 = vld [vmem:[#allocation67_spill] sm:$0xff] }
 0x40c   :  { %1998 = vmatpush.msra.mxu1 %v1271_v12  ;;  %v1601_v47 = vmul.f32 %v1593_v16, %v4015_v19  ;;  %v4016_v4 = vld [vmem:[#allocation55_spill] sm:$0xff]  ;;  %v1429_v12 = vpop.permute.xlu2 %1428 }
 0x40d   :  { %1976 = vmatpush.msra.mxu3 %v1598_v1  ;;  %1926 = vmatpush.msrb.mxu2 %v1314_v9  ;;  %v1507_v31 = vmul.f32 %v1501_v42, %v4016_v4  ;;  %v4017_v1 = vld [vmem:[#allocation51_spill] sm:$0xff] }
 0x40e   :  { %1999 = vmatpush.msra.mxu1 %v1269_v27  ;;  %v1599_v44 = vmul.f32 %v1593_v16, %v4017_v1  ;;  %v4018_v9 = vld [vmem:[#allocation35_spill] sm:$0xff] }
 0x40f   :  { %1977 = vmatpush.msra.mxu3 %v1596_v56  ;;  %1927 = vmatpush.msrb.mxu2 %v1312_v8  ;;  %v1505_v50 = vmul.f32 %v1501_v42, %v4018_v9  ;;  %v1450_v56 = vsel %vm764_vm6, %v3767_v46, %v3775_v41  ;;  %v4020_v46 = vld [vmem:[#allocation59_spill] sm:$0xff] }
 0x410   :  { %2000 = vmatpush.msra.mxu1 %v1267_v30  ;;  %1889 = vmatmul.f32.gmra.mxu3 %v3735_v62  ;;  %v1463_v57 = vmul.f32 %v1455_v29, %v1450_v56  ;;  %v4021_v30 = vld [vmem:[#allocation36_spill] sm:$0xff] }
 0x411   :  { %2008 = vmatpush.msrb.mxu3 %v1557_v36  ;;  %1928 = vmatpush.msrb.mxu2 %v1272_v40  ;;  %v1439_v7 = vpop.permute.xlu0 %1438  ;;  %v4026_v40 = vld [vmem:[#allocation19_spill] sm:$0xff] }
 0x412   :  { %2001 = vmatmul.f32.vlgmr.msra.gmra.mxu1 %v3594_v6  ;;  %v1443_v2 = vpop.permute.xlu1 %1442  ;;  %v1445_v53 = vsel %vm764_vm6, %v3778_v59, %v1439_v7  ;;  %v1449_v8 = vsel %vm764_vm6, %v1439_v7, %v3778_v59  ;;  %v4022_v59 = vld [vmem:[#allocation18_spill] sm:$0xff] }
 0x413   :  { %2009 = vmatpush.msrb.mxu3 %v1555_v39  ;;  %1929 = vmatpush.msrb.mxu2 %v1270_v58  ;;  %v1447_v35 = vsel %vm764_vm6, %v1435_v34, %v1443_v2  ;;  %v1460_v13 = vmul.f32 %v1454_v60, %v1445_v53  ;;  %v1451_v26 = vsel %vm764_vm6, %v1443_v2, %v1435_v34 }
 0x414   :  { %v1464_v54 = vmul.f32 %v1454_v60, %v1447_v35  ;;  %v1465_v33 = vmul.f32 %v1455_v29, %v1451_v26  ;;  %v1461_v41 = vmul.f32 %v1455_v29, %v1449_v8  ;;  %v1770_v2 = vpop.permute.xlu2 %1769 }
 0x415   :  { %2010 = vmatpush.msrb.mxu3 %v1553_v55  ;;  %1930 = vmatpush.msrb.mxu2 %v1268_v15 }
 0x416   :  { %1947 = vmatpush.msra.mxu0 %v1464_v54 }
 0x417   :  { %2011 = vmatpush.msrb.mxu3 %v1551_v0  ;;  %1931 = vmatpush.msrb.mxu2 %v1266_v11 }
 0x418   :  { %1932 = vmatmul.f32.vlgmr.msrb.gmra.mxu2 %v3594_v6  ;;  %1948 = vmatpush.msra.mxu0 %v1462_v63 }
 0x419   :  { %2012 = vmatpush.msrb.mxu3 %v1511_v22  ;;  %2043 = vmatpush.msra.mxu2 %v1603_v10  ;;  %v1765_v34 = vpop.permute.xlu0 %1764 }
 0x41a   :  { %2004 = vmatmul.f32.gmra.mxu1 %v3638_v48  ;;  %v1437_v20 = vpop.permute.xlu1 %1436  ;;  %1949 = vmatpush.msra.mxu0 %v1460_v13 }
 0x41b   :  { %2013 = vmatpush.msrb.mxu3 %v1509_v32  ;;  %2044 = vmatpush.msra.mxu2 %v1601_v47  ;;  %v1444_v6 = vsel %vm764_vm6, %v1429_v12, %v1437_v20  ;;  %v1448_v17 = vsel %vm764_vm6, %v1437_v20, %v1429_v12 }
 0x41c   :  { %v1458_v27 = vmul.f32 %v1454_v60, %v1444_v6  ;;  %2091 = vmatmul.msk.f32.vlgmr.msra.gmra.mxu3 %vm188_vm4, %v3673_v18  ;;  %v1459_v36 = vmul.f32 %v1455_v29, %v1448_v17 }
 0x41d   :  { %2014 = vmatpush.msrb.mxu3 %v1507_v31  ;;  %2045 = vmatpush.msra.mxu2 %v1599_v44 }
 0x41e   :  { %1950 = vmatpush.msra.mxu0 %v1458_v27 }
 0x41f   :  { %2015 = vmatpush.msrb.mxu3 %v1505_v50  ;;  %2046 = vmatpush.msra.mxu2 %v1597_v45 }
 0x420   :  { %1935 = vmatmul.f32.gmra.mxu2 %v3638_v48  ;;  %1951 = vmatpush.msra.mxu0 %v4020_v46  ;;  %v4024_v48 = vld [vmem:[#allocation58_spill] sm:$0xff] }
 0x421   :  { %2016 = vmatpush.msrb.mxu3 %v1465_v33 }
 0x422   :  { %1952 = vmatpush.msra.mxu0 %v4021_v30 }
 0x423   :  { %2017 = vmatpush.msrb.mxu3 %v1463_v57 }
 0x424   :  { %2092 = vmatmul.msk.f32.gmra.mxu3 %vm188_vm4, %v3729_v51  ;;  %1953 = vmatpush.msra.mxu0 %v4022_v59 }
 0x425   :  { %2018 = vmatpush.msrb.mxu3 %v1461_v41 }
 0x426   :  { %1954 = vmatpush.msra.mxu0 %v4023_v24 }
 0x427   :  { %2019 = vmatpush.msrb.mxu3 %v1459_v36  ;;  %1955 = vmatmul.f32.vlgmr.msra.gmra.mxu0 %v3685_v37 }
 0x428   :  { %2093 = vmatmul.msk.f32.vlgmr.msra.gmra.mxu2 %vm188_vm4, %v3673_v18 }
 0x429   :  { %2020 = vmatpush.msrb.mxu3 %v4024_v48 }
 0x42b   :  { %2021 = vmatpush.msrb.mxu3 %v4025_v52 }
 0x42d   :  { %2022 = vmatpush.msrb.mxu3 %v4026_v40 }
 0x42f   :  { %2023 = vmatpush.msrb.mxu3 %v4027_v61  ;;  %1958 = vmatmul.f32.gmra.mxu0 %v3735_v62 }
 0x430   :  { %2024 = vmatmul.f32.vlgmr.msrb.gmra.mxu3 %v3685_v37  ;;  %2094 = vmatmul.msk.f32.gmra.mxu2 %vm188_vm4, %v3729_v51 }
 0x438   :  { %2027 = vmatmul.f32.gmra.mxu3 %v3735_v62 }
 0x462   :  { %v1795_v39 = vpop.f32.mrf.mxu1 }
 0x463   :  { %v1796_v58 = vadd.f32 %v1795_v39, %v1765_v34  ;;  %v1864_v15 = vpop.f32.mrf.mxu0 }
 0x464   :  { %v1865_v51 = vadd.f32 %v1864_v15, %v1765_v34 }
 0x46b   :  { %v1798_v60 = vpop.f32.mrf.mxu1  ;;  %v1867_v5 = vpop.f32.mrf.mxu0 }
 0x46c   :  { %v1799_v42 = vadd.f32 %v1798_v60, %v1770_v2  ;;  %v1868_v49 = vadd.f32 %v1867_v5, %v1770_v2 }
 0x477   :  { %v1910_v62 = vpop.f32.mrf.mxu1 }
 0x479   :  { %v1841_v28 = vpop.f32.mrf.mxu3 }
 0x47b   :  { %v1818_v18 = vpop.f32.mrf.mxu2 }
 0x47c   :  { %v1819_v23 = vadd.f32 %v1818_v18, %v1796_v58 }
 0x47e   :  { %v1842_v55 = vadd.f32 %v1841_v28, %v1819_v23 }
 0x480   :  { %2054 = vst [vmem:[#allocation8] sm:$0xff] %v1842_v55 }
 0x482   :  { %v1844_v21 = vpop.f32.mrf.mxu3 }
 0x483   :  { %v1821_v37 = vpop.f32.mrf.mxu2 }
 0x484   :  { %v1822_v3 = vadd.f32 %v1821_v37, %v1799_v42 }
 0x485   :  { %v1913_v25 = vpop.f32.mrf.mxu1 }
 0x486   :  { %v1845_v35 = vadd.f32 %v1844_v21, %v1822_v3 }
 0x488   :  { %2056 = vst [vmem:[#allocation8 + $0x10] sm:$0xff] %v1845_v35 }
 0x48b   :  { %v1887_v7 = vpop.f32.mrf.mxu3 }
 0x48c   :  { %v1888_v38 = vadd.f32 %v1887_v7, %v1865_v51 }
 0x48e   :  { %v1911_v0 = vadd.f32 %v1910_v62, %v1888_v38 }
 0x48f   :  { %v2002_v13 = vpop.f32.mrf.mxu1 }
 0x490   :  { %2055 = vst [vmem:[#allocation8 + $0x8] sm:$0xff] %v1911_v0  ;;  %v2003_v44 = vadd.f32 %v2002_v13, %v1765_v34 }
 0x493   :  { %v1890_v54 = vpop.f32.mrf.mxu3 }
 0x494   :  { %v1891_v16 = vadd.f32 %v1890_v54, %v1868_v49 }
 0x496   :  { %v1914_v11 = vadd.f32 %v1913_v25, %v1891_v16 }
 0x497   :  { %v2005_v50 = vpop.f32.mrf.mxu1 }
 0x498   :  { %2057 = vst [vmem:[#allocation8 + $0x18] sm:$0xff] %v1914_v11  ;;  %v2006_v29 = vadd.f32 %v2005_v50, %v1770_v2 }
 0x49b   :  { %v1933_v22 = vpop.f32.mrf.mxu2 }
 0x49c   :  { %v1934_v10 = vadd.f32 %v1933_v22, %v1765_v34 }
 0x49f   :  { %v1979_v53 = vpop.f32.mrf.mxu3 }
 0x4a3   :  { %v1936_v32 = vpop.f32.mrf.mxu2 }
 0x4a4   :  { %v1956_v63 = vpop.f32.mrf.mxu0  ;;  %v1937_v4 = vadd.f32 %v1936_v32, %v1770_v2 }
 0x4a5   :  { %v1957_v14 = vadd.f32 %v1956_v63, %v1934_v10 }
 0x4a7   :  { %v1980_v19 = vadd.f32 %v1979_v53, %v1957_v14  ;;  %v1982_v47 = vpop.f32.mrf.mxu3 }
 0x4a9   :  { %2059 = vst [vmem:[#allocation8 + $0x20] sm:$0xff] %v1980_v19 }
 0x4ab   :  { %v2048_v1 = vpop.f32.mrf.mxu2 }
 0x4ac   :  { %v1959_v31 = vpop.f32.mrf.mxu0 }
 0x4ad   :  { %v1960_v12 = vadd.f32 %v1959_v31, %v1937_v4 }
 0x4af   :  { %v1983_v20 = vadd.f32 %v1982_v47, %v1960_v12 }
 0x4b1   :  { %2061 = vst [vmem:[#allocation8 + $0x30] sm:$0xff] %v1983_v20 }
 0x4b3   :  { %v2025_v26 = vpop.f32.mrf.mxu3  ;;  %v2051_v43 = vpop.f32.mrf.mxu2 }
 0x4b4   :  { %v2026_v6 = vadd.f32 %v2025_v26, %v2003_v44 }
 0x4b6   :  { %v2049_v9 = vadd.f32 %v2048_v1, %v2026_v6 }
 0x4b8   :  { %2060 = vst [vmem:[#allocation8 + $0x28] sm:$0xff] %v2049_v9 }
 0x4bb   :  { %v2028_v27 = vpop.f32.mrf.mxu3 }
 0x4bc   :  { %v2029_v45 = vadd.f32 %v2028_v27, %v2006_v29 }
 0x4be   :  { %v2052_v56 = vadd.f32 %v2051_v43, %v2029_v45 }
 0x4c0   :  { %2062 = vst [vmem:[#allocation8 + $0x38] sm:$0xff] %v2052_v56 }
 0x4c1   :  { %2075 = dma.vmem_to_hbm [thread:$0]  %s2068_s29, 1024, %s2070_s11, [#allocation5], %s2276_s9, %s2276_s9, %s2277_s10  }
 0x4c2   :  { %2273 = dma.done.wait [#allocation5], 1024  }
 0x4c3   :  { %2274 = vsyncadd [#allocation5], 4294966272 }
 0x4c4   :  { %2080 = vsyncpa [#allocation4], 1 }
 0x4c5   :  { %2081 = vsyncpa [#allocation7], 1 }
 0x4c6   :  { %2082 = vsyncpa [#allocation5], 1 }

// kernel: tpu_custom_call.1
= control target key start
LH: loop header
LB: loop body
LE: loop exit
PB: predicated region body
PF: predicated region fallthrough
CT: control target
= control target key end

     0   :  { %12 = vsyncpa [#allocation4], 0  ;;  %s3868_s0 = inlined_call_operand.hbm [shape: f32[2,32,256], index: 0, kind: input, shape index: {}]   ;;  %s3869_s1 = inlined_call_operand.hbm [shape: f32[8,256], index: 1, kind: input, shape index: {}]   ;;  %s3870_s2 = inlined_call_operand.vmem [shape: f32[32,32], index: 2, kind: input, shape index: {}]   ;;  %s3871_s3 = inlined_call_operand.vmem [shape: f32[32,1], index: 3, kind: input, shape index: {}]   ;;  %s3872_s4 = inlined_call_operand.vmem [shape: f32[32,1], index: 4, kind: input, shape index: {}]   ;;  %s3873_s5 = inlined_call_operand.vmem [shape: f32[16,288], index: 5, kind: input, shape index: {}]   ;;  %s3874_s6 = inlined_call_operand.vmem [shape: f32[16,1], index: 6, kind: input, shape index: {}]   ;;  %s3875_s7 = inlined_call_operand.hbm [shape: f32[2,16,256], index: 7, kind: output, shape index: {}]  }
   0x1   :  { %13 = vsyncpa [#allocation7], 0 }
   0x2   :  { %14 = vsyncpa [#allocation5], 0  ;;  %s19_s26 = sshll.u32 %s3868_s0, 4  ;;  %s2275_s27 = smov [#allocation3]   ;;  %s20_s26 = int_to_ptr.hbm [resolvable:$true] %s19_s26 }
   0x3   :  { %s21_s28 = sshll.u32 %s2275_s27, 4  ;;  %s33_s8 = sshll.u32 %s3869_s1, 4  ;;  %s22_s28 = int_to_ptr.vmem [resolvable:$true] %s21_s28  ;;  %s34_s8 = int_to_ptr.hbm [resolvable:$true] %s33_s8 }
   0x4   :  { %s2276_s9 = smov 256   ;;  %s2277_s10 = smov 16  }
   0x5   :  { %27 = dma.hbm_to_vmem [thread:$0]  %s20_s26, 2048, %s22_s28, [#allocation4], %s2276_s9, %s2276_s9, %s2277_s10  }
   0x6   :  { %s2278_s11 = smov [#allocation6]  }
   0x7   :  { %s35_s12 = sshll.u32 %s2278_s11, 4  ;;  %s36_s12 = int_to_ptr.vmem [resolvable:$true] %s35_s12 }
   0x8   :  { %38 = dma.hbm_to_vmem [thread:$0]  %s34_s8, 256, %s36_s12, [#allocation7]  }
   0x9   :  { %2269 = dma.done.wait [#allocation4], 2048  }
   0xa   :  { %2270 = vsyncadd [#allocation4], 4294965248 }
   0xb   :  { %2271 = dma.done.wait [#allocation7], 256  }
   0xc   :  { %2272 = vsyncadd [#allocation7], 4294967040  ;;  %v128_v0 = vld [vmem:[#allocation3 + $0x70] sm:$0xff]  ;;  %v129_v1 = vld [vmem:[#allocation3 + $0x78] sm:$0xff]  ;;  %v57_v48 = vlaneseq  ;;  %vm188_vm4 = vcmask 261120   ;;  %vm244_vm5 = vcmask 31744  }
   0xd   :  { %v65_v2 = vld [vmem:[#allocation3 + $0x30] sm:$0xff]  ;;  %v139_v3 = vadd.f32 %v129_v1, %v128_v0  ;;  %v66_v4 = vld [vmem:[#allocation3 + $0x38] sm:$0xff]  ;;  %v63_v5 = vld [vmem:[#allocation3 + $0x20] sm:$0xff]  ;;  %v148_v18 = vmul.f32 %v128_v0, %v128_v0  ;;  %v149_v19 = vmul.f32 %v129_v1, %v129_v1  ;;  %s2281_s12 = smov 15   ;;  %s2282_s0 = smov 127  }
   0xe   :  { %v64_v6 = vld [vmem:[#allocation3 + $0x28] sm:$0xff]  ;;  %v76_v7 = vadd.f32 %v66_v4, %v65_v2  ;;  %v85_v9 = vmul.f32 %v65_v2, %v65_v2  ;;  %v86_v10 = vmul.f32 %v66_v4, %v66_v4  ;;  %v83_v11 = vmul.f32 %v63_v5, %v63_v5  ;;  %v2337_v13 = vld [vmem:[#allocation3 + $0x10] sm:$0xff]  ;;  %v2339_v14 = vld [vmem:[#allocation3 + $0x18] sm:$0xff]  ;;  %s2283_s1 = smov 1   ;;  %s2284_s13 = smov 113  }
   0xf   :  { %v73_v8 = vadd.f32 %v64_v6, %v63_v5  ;;  %140 = vadd.xlane.f32.xlu2 %v139_v3  ;;  %v84_v12 = vmul.f32 %v64_v6, %v64_v6  ;;  %v70_v15 = vadd.f32 %v2339_v14, %v2337_v13  ;;  %v81_v20 = vmul.f32 %v2337_v13, %v2337_v13  ;;  %v2347_v22 = vld [vmem:[#allocation3 + $0x60] sm:$0xff]  ;;  %v2349_v23 = vld [vmem:[#allocation3 + $0x68] sm:$0xff]  ;;  %v124_v29 = vld [vmem:[#allocation3 + $0x50] sm:$0xff]  ;;  %s2285_s14 = smov 112   ;;  %s2286_s15 = smov 111  }
  0x10   :  { %77 = vadd.xlane.f32.xlu0 %v76_v7  ;;  %v96_v16 = vadd.f32 %v86_v10, %v85_v9  ;;  %v82_v21 = vmul.f32 %v2339_v14, %v2339_v14  ;;  %v159_v24 = vadd.f32 %v149_v19, %v148_v18  ;;  %v136_v25 = vadd.f32 %v2349_v23, %v2347_v22  ;;  %v2353_v27 = vld [vmem:[#allocation3] sm:$0xff]  ;;  %v2355_v28 = vld [vmem:[#allocation3 + $0x8] sm:$0xff]  ;;  %v125_v30 = vld [vmem:[#allocation3 + $0x58] sm:$0xff]  ;;  %s2069_s11 = sshll.u32 %s3875_s7, 4  ;;  %s2070_s11 = int_to_ptr.hbm [resolvable:$true] %s2069_s11 }
  0x11   :  { %74 = vadd.xlane.f32.xlu1 %v73_v8  ;;  %v93_v17 = vadd.f32 %v84_v12, %v83_v11  ;;  %v79_v31 = vmul.f32 %v2353_v27, %v2353_v27  ;;  %v80_v32 = vmul.f32 %v2355_v28, %v2355_v28  ;;  %v133_v33 = vadd.f32 %v125_v30, %v124_v29  ;;  %v2367_v40 = vld [vmem:[#allocation3 + $0x40] sm:$0xff]  ;;  %v2369_v41 = vld [vmem:[#allocation3 + $0x48] sm:$0xff] }
  0x12   :  { %v90_v26 = vadd.f32 %v82_v21, %v81_v20  ;;  %v67_v35 = vadd.f32 %v2355_v28, %v2353_v27  ;;  %v144_v36 = vmul.f32 %v124_v29, %v124_v29  ;;  %v145_v37 = vmul.f32 %v125_v30, %v125_v30 }
  0x13   :  { %v87_v34 = vadd.f32 %v80_v32, %v79_v31  ;;  %v146_v38 = vmul.f32 %v2347_v22, %v2347_v22  ;;  %v147_v39 = vmul.f32 %v2349_v23, %v2349_v23  ;;  %v130_v43 = vadd.f32 %v2369_v41, %v2367_v40  ;;  %v234_v31 = vld [vmem:[%s3872_s4] sm:$0xff]  ;;  %v235_v32 = vld [vmem:[%s3872_s4 + $0x8] sm:$0xff] }
  0x14   :  { %v153_v42 = vadd.f32 %v145_v37, %v144_v36  ;;  %v142_v45 = vmul.f32 %v2367_v40, %v2367_v40  ;;  %v143_v46 = vmul.f32 %v2369_v41, %v2369_v41  ;;  %v2377_v52 = vand.u32 127, %v57_v48 }
  0x15   :  { %v156_v44 = vadd.f32 %v147_v39, %v146_v38 }
  0x16   :  { %v150_v47 = vadd.f32 %v143_v46, %v142_v45  ;;  %vm110_vm0 = vcmp.eq.s32.totalorder %v2377_v52, 1  ;;  %vm99_vm1 = vcmp.eq.s32.totalorder %v2377_v52, 0  ;;  %vm162_vm2 = vcmp.eq.s32.totalorder %v2377_v52, 2  ;;  %v186_v45 = vld [vmem:[%s3870_s2 + $0x10] sm:$0xff]  ;;  %v187_v46 = vld [vmem:[%s3870_s2 + $0x18] sm:$0xff] }
  0x17   :  { %71 = vadd.xlane.f32.xlu2 %v70_v15  ;;  %vm173_vm3 = vcmp.eq.s32.totalorder %v2377_v52, 3 }
  0x18   :  { %97 = vadd.xlane.f32.xlu0 %v96_v16 }
  0x19   :  { %94 = vadd.xlane.f32.xlu1 %v93_v17 }
  0x1f   :  { %160 = vadd.xlane.f32.xlu2 %v159_v24 }
  0x20   :  { %91 = vadd.xlane.f32.xlu0 %v90_v26 }
  0x21   :  { %137 = vadd.xlane.f32.xlu1 %v136_v25 }
  0x27   :  { %134 = vadd.xlane.f32.xlu2 %v133_v33 }
  0x28   :  { %68 = vadd.xlane.f32.xlu0 %v67_v35  ;;  %v237_v35 = vld [vmem:[%s3872_s4 + $0x18] sm:$0xff] }
  0x29   :  { %88 = vadd.xlane.f32.xlu1 %v87_v34  ;;  %v2279_v34 = vmov 0  }
  0x2a   :  { %2108 = vset.pattern.permute.xlu1 %v2279_v34  ;;  %2109 = vset.pattern.permute.xlu2 %v2279_v34 }
  0x2b   :  { %2110 = vset.pattern.permute.xlu0 %v2279_v34 }
  0x2f   :  { %154 = vadd.xlane.f32.xlu2 %v153_v42  ;;  %v184_v42 = vld [vmem:[%s3870_s2] sm:$0xff] }
  0x30   :  { %157 = vadd.xlane.f32.xlu0 %v156_v44  ;;  %v185_v44 = vld [vmem:[%s3870_s2 + $0x8] sm:$0xff] }
  0x31   :  { %131 = vadd.xlane.f32.xlu1 %v130_v43  ;;  %v236_v43 = vld [vmem:[%s3872_s4 + $0x10] sm:$0xff] }
  0x38   :  { %151 = vadd.xlane.f32.xlu0 %v150_v47 }
  0x47   :  { %376 = vperm.xlu2 %2109, %v235_v32  }
  0x4a   :  { %371 = vperm.xlu1 %2108, %v234_v31  }
  0x4c   :  { %386 = vperm.xlu0 %2110, %v237_v35  }
  0x52   :  { %381 = vperm.xlu1 %2108, %v236_v43  }
  0x82   :  { %v141_v49 = vpop.xlane.xlu2 %140 }
  0x83   :  { %v78_v50 = vpop.xlane.xlu0 %77  ;;  %v168_v59 = vsel %vm162_vm2, %v141_v49, 0.0 }
  0x84   :  { %v75_v51 = vpop.xlane.xlu1 %74  ;;  %v105_v57 = vsel %vm99_vm1, %v78_v50, 0.0 }
  0x85   :  { %v104_v6 = vsel %vm99_vm1, %v75_v51, 0.0 }
  0x8a   :  { %v72_v53 = vpop.xlane.xlu2 %71 }
  0x8b   :  { %v98_v54 = vpop.xlane.xlu0 %97  ;;  %v103_v10 = vsel %vm99_vm1, %v72_v53, 0.0 }
  0x8c   :  { %v95_v55 = vpop.xlane.xlu1 %94  ;;  %v116_v56 = vsel %vm110_vm0, %v98_v54, 0.0 }
  0x8d   :  { %v120_v58 = vadd.f32 %v116_v56, %v105_v57  ;;  %v115_v5 = vsel %vm110_vm0, %v95_v55, 0.0 }
  0x8e   :  { %v119_v9 = vadd.f32 %v115_v5, %v104_v6 }
  0x8f   :  { %v172_v61 = vadd.f32 %v168_v59, %v120_v58 }
  0x92   :  { %v161_v60 = vpop.xlane.xlu2 %160 }
  0x93   :  { %v92_v63 = vpop.xlane.xlu0 %91  ;;  %v179_v0 = vsel %vm173_vm3, %v161_v60, 0.0 }
  0x94   :  { %v138_v62 = vpop.xlane.xlu1 %137  ;;  %v183_v1 = vadd.f32 %v179_v0, %v172_v61  ;;  %v114_v8 = vsel %vm110_vm0, %v92_v63, 0.0 }
  0x95   :  { %v167_v7 = vsel %vm162_vm2, %v138_v62, 0.0  ;;  %v118_v16 = vadd.f32 %v114_v8, %v103_v10 }
  0x96   :  { %213 = vmatpush.msra.mxu0 %v183_v1  ;;  %v171_v15 = vadd.f32 %v167_v7, %v119_v9 }
  0x9a   :  { %v135_v2 = vpop.xlane.xlu2 %134 }
  0x9b   :  { %v69_v4 = vpop.xlane.xlu0 %68  ;;  %v166_v11 = vsel %vm162_vm2, %v135_v2, 0.0 }
  0x9c   :  { %v89_v3 = vpop.xlane.xlu1 %88  ;;  %v170_v20 = vadd.f32 %v166_v11, %v118_v16  ;;  %v102_v26 = vsel %vm99_vm1, %v69_v4, 0.0 }
  0x9d   :  { %v113_v25 = vsel %vm110_vm0, %v89_v3, 0.0 }
  0x9e   :  { %v117_v33 = vadd.f32 %v113_v25, %v102_v26 }
  0xa2   :  { %v155_v12 = vpop.xlane.xlu2 %154 }
  0xa3   :  { %v158_v17 = vpop.xlane.xlu0 %157  ;;  %v177_v18 = vsel %vm173_vm3, %v155_v12, 0.0 }
  0xa4   :  { %v178_v19 = vsel %vm173_vm3, %v158_v17, 0.0  ;;  %v132_v21 = vpop.xlane.xlu1 %131  ;;  %v181_v29 = vadd.f32 %v177_v18, %v170_v20 }
  0xa5   :  { %v182_v24 = vadd.f32 %v178_v19, %v171_v15  ;;  %v165_v30 = vsel %vm162_vm2, %v132_v21, 0.0 }
  0xa6   :  { %v169_v36 = vadd.f32 %v165_v30, %v117_v33 }
  0xa7   :  { %214 = vmatpush.msra.mxu0 %v182_v24 }
  0xa9   :  { %215 = vmatpush.msra.mxu0 %v181_v29 }
  0xaa   :  { %v2493_v25 = vpop.permute.xlu2 %376 }
  0xab   :  { %v152_v37 = vpop.xlane.xlu0 %151 }
  0xac   :  { %v176_v38 = vsel %vm173_vm3, %v152_v37, 0.0 }
  0xad   :  { %v180_v39 = vadd.f32 %v176_v38, %v169_v36 }
  0xaf   :  { %216 = vmatpush.msra.mxu0 %v180_v39 }
  0xb0   :  { %2083 = vmatmul.msk.f32.vlgmr.msra.gmra.mxu0 %vm188_vm4, %v184_v42 }
  0xb8   :  { %2084 = vmatmul.msk.f32.gmra.mxu0 %vm188_vm4, %v185_v44 }
  0xbc   :  { %v2491_v24 = vpop.permute.xlu1 %371 }
  0xbe   :  { %v2497_v29 = vpop.permute.xlu0 %386 }
  0xc0   :  { %2085 = vmatmul.msk.f32.gmra.mxu0 %vm188_vm4, %v186_v45 }
  0xc4   :  { %v2495_v26 = vpop.permute.xlu1 %381 }
  0xc8   :  { %2086 = vmatmul.msk.f32.gmra.mxu0 %vm188_vm4, %v187_v46 }
 0x12d   :  { %v218_v47 = vpop.f32.mrf.mxu0 }
 0x12e   :  { %v257_v48 = vsel %vm110_vm0, %v218_v47, 0.0  ;;  %v240_v49 = vsel %vm99_vm1, %v218_v47, 0.0  ;;  %v940_v53 = vsel %vm162_vm2, %v218_v47, 0.0  ;;  %v956_v54 = vsel %vm173_vm3, %v218_v47, 0.0 }
 0x12f   :  { %v261_v50 = vsel %vm244_vm5, %v257_v48, 0.0  ;;  %v245_v51 = vsel %vm244_vm5, %v240_v49, 0.0  ;;  %v944_v57 = vsel %vm244_vm5, %v940_v53, 0.0  ;;  %v960_v58 = vsel %vm244_vm5, %v956_v54, 0.0 }
 0x130   :  { %262 = vadd.xlane.f32.xlu2 %v261_v50  ;;  %246 = vadd.xlane.f32.xlu1 %v245_v51 }
 0x135   :  { %v221_v55 = vpop.f32.mrf.mxu0 }
 0x136   :  { %v258_v56 = vsel %vm110_vm0, %v221_v55, 0.0  ;;  %v241_v60 = vsel %vm99_vm1, %v221_v55, 0.0  ;;  %v957_v61 = vsel %vm173_vm3, %v221_v55, 0.0  ;;  %v941_v3 = vsel %vm162_vm2, %v221_v55, 0.0 }
 0x137   :  { %v264_v59 = vsel %vm244_vm5, %v258_v56, 0.0  ;;  %v248_v63 = vsel %vm244_vm5, %v241_v60, 0.0  ;;  %v963_v0 = vsel %vm244_vm5, %v957_v61, 0.0  ;;  %v947_v6 = vsel %vm244_vm5, %v941_v3, 0.0 }
 0x138   :  { %945 = vadd.xlane.f32.xlu2 %v944_v57  ;;  %961 = vadd.xlane.f32.xlu1 %v960_v58 }
 0x139   :  { %265 = vadd.xlane.f32.xlu0 %v264_v59 }
 0x13d   :  { %v224_v62 = vpop.f32.mrf.mxu0 }
 0x13e   :  { %v259_v1 = vsel %vm110_vm0, %v224_v62, 0.0  ;;  %v942_v4 = vsel %vm162_vm2, %v224_v62, 0.0  ;;  %v242_v5 = vsel %vm99_vm1, %v224_v62, 0.0  ;;  %v958_v10 = vsel %vm173_vm3, %v224_v62, 0.0 }
 0x13f   :  { %v267_v2 = vsel %vm244_vm5, %v259_v1, 0.0  ;;  %v950_v7 = vsel %vm244_vm5, %v942_v4, 0.0  ;;  %v251_v8 = vsel %vm244_vm5, %v242_v5, 0.0  ;;  %v966_v15 = vsel %vm244_vm5, %v958_v10, 0.0  ;;  %v230_v1 = vld [vmem:[%s3871_s3] sm:$0xff] }
 0x140   :  { %249 = vadd.xlane.f32.xlu2 %v248_v63  ;;  %268 = vadd.xlane.f32.xlu1 %v267_v2 }
 0x141   :  { %964 = vadd.xlane.f32.xlu0 %v963_v0 }
 0x145   :  { %v227_v9 = vpop.f32.mrf.mxu0 }
 0x146   :  { %v260_v11 = vsel %vm110_vm0, %v227_v9, 0.0  ;;  %v959_v12 = vsel %vm173_vm3, %v227_v9, 0.0  ;;  %v943_v18 = vsel %vm162_vm2, %v227_v9, 0.0  ;;  %v243_v19 = vsel %vm99_vm1, %v227_v9, 0.0 }
 0x147   :  { %v270_v16 = vsel %vm244_vm5, %v260_v11, 0.0  ;;  %v969_v17 = vsel %vm244_vm5, %v959_v12, 0.0  ;;  %v953_v20 = vsel %vm244_vm5, %v943_v18, 0.0  ;;  %v254_v21 = vsel %vm244_vm5, %v243_v19, 0.0 }
 0x148   :  { %948 = vadd.xlane.f32.xlu2 %v947_v6  ;;  %951 = vadd.xlane.f32.xlu1 %v950_v7 }
 0x149   :  { %252 = vadd.xlane.f32.xlu0 %v251_v8 }
 0x150   :  { %967 = vadd.xlane.f32.xlu1 %v966_v15  ;;  %271 = vadd.xlane.f32.xlu2 %v270_v16 }
 0x151   :  { %970 = vadd.xlane.f32.xlu0 %v969_v17 }
 0x158   :  { %954 = vadd.xlane.f32.xlu2 %v953_v20  ;;  %255 = vadd.xlane.f32.xlu1 %v254_v21 }
 0x1a3   :  { %v263_v30 = vpop.xlane.xlu2 %262  ;;  %v2499_v31 = vpop.xlane.xlu1 %246 }
 0x1a4   :  { %v273_v32 = vmul.f32 %v2499_v31, %v2499_v31 }
 0x1a6   :  { %v277_v33 = vsub.f32 %v263_v30, %v273_v32 }
 0x1a8   :  { %v281_v34 = vmax.f32 %v277_v33, 0.0 }
 0x1aa   :  { %v285_v35 = vadd.f32 1e-05, %v281_v34 }
 0x1ab   :  { %v2503_v36 = vpop.xlane.xlu2 %945  ;;  %v962_v37 = vpop.xlane.xlu1 %961 }
 0x1ac   :  { %2111 = vrsqrt.f32 %v285_v35  ;;  %v972_v38 = vmul.f32 %v2503_v36, %v2503_v36  ;;  %v266_v39 = vpop.xlane.xlu0 %265  ;;  %vm295_vm7 = vweird.f32 %v285_v35 }
 0x1ae   :  { %v976_v42 = vsub.f32 %v962_v37, %v972_v38 }
 0x1b0   :  { %v980_v43 = vmax.f32 %v976_v42, 0.0 }
 0x1b2   :  { %v2112_v44 = vpop.eup %2111  ;;  %v984_v45 = vadd.f32 1e-05, %v980_v43 }
 0x1b3   :  { %v290_v46 = vmul.f32 %v2112_v44, %v285_v35  ;;  %v2507_v47 = vpop.xlane.xlu2 %249  ;;  %v269_v48 = vpop.xlane.xlu1 %268  ;;  %vm296_vm6 = vweird.f32 %v2112_v44 }
 0x1b4   :  { %2113 = vrsqrt.f32 %v984_v45  ;;  %v274_v49 = vmul.f32 %v2507_v47, %v2507_v47  ;;  %v965_v50 = vpop.xlane.xlu0 %964  ;;  %vm297_vm8 = vmor %vm295_vm7, %vm296_vm6  ;;  %vm994_vm10 = vweird.f32 %v984_v45 }
 0x1b5   :  { %v291_v51 = vmul.f32 %v2112_v44, %v290_v46 }
 0x1b6   :  { %v278_v53 = vsub.f32 %v266_v39, %v274_v49 }
 0x1b7   :  { %v292_v54 = vmul.f32 0.5, %v291_v51 }
 0x1b8   :  { %v282_v55 = vmax.f32 %v278_v53, 0.0 }
 0x1b9   :  { %v293_v56 = vsub.f32 1.5, %v292_v54 }
 0x1ba   :  { %v2114_v57 = vpop.eup %2113  ;;  %v286_v58 = vadd.f32 1e-05, %v282_v55 }
 0x1bb   :  { %v989_v59 = vmul.f32 %v2114_v57, %v984_v45  ;;  %v2511_v60 = vpop.xlane.xlu2 %948  ;;  %v2513_v61 = vpop.xlane.xlu1 %951  ;;  %v294_v62 = vmul.f32 %v2112_v44, %v293_v56  ;;  %vm995_vm9 = vweird.f32 %v2114_v57 }
 0x1bc   :  { %2115 = vrsqrt.f32 %v286_v58  ;;  %v973_v63 = vmul.f32 %v2511_v60, %v2511_v60  ;;  %v2517_v0 = vpop.xlane.xlu0 %252  ;;  %v974_v10 = vmul.f32 %v2513_v61, %v2513_v61  ;;  %vm996_vm11 = vmor %vm994_vm10, %vm995_vm9  ;;  %vm305_vm12 = vweird.f32 %v286_v58 }
 0x1bd   :  { %v990_v2 = vmul.f32 %v2114_v57, %v989_v59  ;;  %v275_v3 = vmul.f32 %v2517_v0, %v2517_v0  ;;  %v298_v5 = vsel %vm297_vm8, %v2112_v44, %v294_v62 }
 0x1be   :  { %v977_v4 = vsub.f32 %v965_v50, %v973_v63  ;;  %v337_v8 = vmul.f32 %v298_v5, %v230_v1 }
 0x1bf   :  { %v991_v6 = vmul.f32 0.5, %v990_v2  ;;  %v279_v7 = vsub.f32 %v269_v48, %v275_v3  ;;  %v231_v48 = vld [vmem:[%s3871_s3 + $0x8] sm:$0xff] }
 0x1c0   :  { %v981_v9 = vmax.f32 %v977_v4, 0.0  ;;  %343 = vperm.xlu0 %2110, %v337_v8   ;;  %v1040_v8 = vsub.f32 %v2347_v22, %v2513_v61  ;;  %v1037_v22 = vsub.f32 %v2369_v41, %v2503_v36 }
 0x1c1   :  { %v992_v11 = vsub.f32 1.5, %v991_v6  ;;  %v283_v12 = vmax.f32 %v279_v7, 0.0 }
 0x1c2   :  { %v2116_v15 = vpop.eup %2115  ;;  %v985_v16 = vadd.f32 1e-05, %v981_v9 }
 0x1c3   :  { %v300_v17 = vmul.f32 %v2116_v15, %v286_v58  ;;  %v287_v18 = vadd.f32 1e-05, %v283_v12  ;;  %v968_v19 = vpop.xlane.xlu1 %967  ;;  %v272_v20 = vpop.xlane.xlu2 %271  ;;  %v993_v21 = vmul.f32 %v2114_v57, %v992_v11  ;;  %vm306_vm13 = vweird.f32 %v2116_v15 }
 0x1c4   :  { %2117 = vrsqrt.f32 %v985_v16  ;;  %v978_v30 = vsub.f32 %v968_v19, %v974_v10  ;;  %vm307_vm14 = vmor %vm305_vm12, %vm306_vm13  ;;  %v971_v53 = vpop.xlane.xlu0 %970  ;;  %vm1004_vm15 = vweird.f32 %v985_v16 }
 0x1c5   :  { %2119 = vrsqrt.f32 %v287_v18  ;;  %v997_v32 = vsel %vm996_vm11, %v2114_v57, %v993_v21  ;;  %v301_v33 = vmul.f32 %v2116_v15, %v300_v17  ;;  %vm315_vm1 = vweird.f32 %v287_v18 }
 0x1c6   :  { %v982_v34 = vmax.f32 %v978_v30, 0.0  ;;  %v1044_v35 = vmul.f32 %v997_v32, %v230_v1 }
 0x1c7   :  { %v302_v37 = vmul.f32 0.5, %v301_v33 }
 0x1c8   :  { %v986_v38 = vadd.f32 1e-05, %v982_v34  ;;  %1050 = vperm.xlu0 %2110, %v1044_v35  }
 0x1c9   :  { %v303_v39 = vsub.f32 1.5, %v302_v37 }
 0x1ca   :  { %v2118_v42 = vpop.eup %2117  ;;  %2121 = vrsqrt.f32 %v986_v38  ;;  %vm1014_vm6 = vweird.f32 %v986_v38 }
 0x1cb   :  { %v2120_v43 = vpop.eup %2119  ;;  %v999_v44 = vmul.f32 %v2118_v42, %v985_v16  ;;  %v2526_v45 = vpop.xlane.xlu2 %954  ;;  %v304_v49 = vmul.f32 %v2116_v15, %v303_v39  ;;  %vm1005_vm0 = vweird.f32 %v2118_v42 }
 0x1cc   :  { %v2528_v46 = vpop.xlane.xlu1 %255  ;;  %v310_v50 = vmul.f32 %v2120_v43, %v287_v18  ;;  %v975_v54 = vmul.f32 %v2526_v45, %v2526_v45  ;;  %vm316_vm2 = vweird.f32 %v2120_v43  ;;  %vm2537_vm3 = vmor %vm1004_vm15, %vm1005_vm0 }
 0x1cd   :  { %v276_v51 = vmul.f32 %v2528_v46, %v2528_v46  ;;  %v308_v55 = vsel %vm307_vm14, %v2116_v15, %v304_v49  ;;  %v1000_v58 = vmul.f32 %v2118_v42, %v999_v44  ;;  %vm317_vm5 = vmor %vm315_vm1, %vm316_vm2  ;;  %v232_v15 = vld [vmem:[%s3871_s3 + $0x10] sm:$0xff] }
 0x1ce   :  { %v338_v57 = vmul.f32 %v308_v55, %v231_v48  ;;  %v311_v59 = vmul.f32 %v2120_v43, %v310_v50  ;;  %v979_v62 = vsub.f32 %v971_v53, %v975_v54 }
 0x1cf   :  { %v280_v56 = vsub.f32 %v272_v20, %v276_v51  ;;  %v1001_v2 = vmul.f32 0.5, %v1000_v58  ;;  %v233_v51 = vld [vmem:[%s3871_s3 + $0x18] sm:$0xff]  ;;  %s2280_s3 = smov 17  }
 0x1d0   :  { %v2122_v63 = vpop.eup %2121  ;;  %348 = vperm.xlu1 %2108, %v338_v57   ;;  %v312_v3 = vmul.f32 0.5, %v311_v59  ;;  %v983_v5 = vmax.f32 %v979_v62, 0.0  ;;  %v329_v59 = vsub.f32 %v2353_v27, %v2499_v31  ;;  %v330_v62 = vsub.f32 %v2355_v28, %v2499_v31 }
 0x1d1   :  { %v284_v1 = vmax.f32 %v280_v56, 0.0  ;;  %v1009_v4 = vmul.f32 %v2122_v63, %v986_v38  ;;  %v1002_v7 = vsub.f32 1.5, %v1001_v2  ;;  %vm1015_vm7 = vweird.f32 %v2122_v63 }
 0x1d2   :  { %v313_v9 = vsub.f32 1.5, %v312_v3  ;;  %v987_v11 = vadd.f32 1e-05, %v983_v5  ;;  %vm1016_vm8 = vmor %vm1014_vm6, %vm1015_vm7  ;;  %v1041_v27 = vsub.f32 %v2349_v23, %v2513_v61 }
 0x1d3   :  { %v288_v6 = vadd.f32 1e-05, %v284_v1  ;;  %v1010_v10 = vmul.f32 %v2122_v63, %v1009_v4  ;;  %v1003_v12 = vmul.f32 %v2118_v42, %v1002_v7 }
 0x1d4   :  { %v314_v16 = vmul.f32 %v2120_v43, %v313_v9  ;;  %vm1024_vm11 = vweird.f32 %v987_v11 }
 0x1d5   :  { %2123 = vrsqrt.f32 %v288_v6  ;;  %v1011_v17 = vmul.f32 0.5, %v1010_v10  ;;  %v1007_v19 = vsel %vm2537_vm3, %v2118_v42, %v1003_v12  ;;  %vm325_vm9 = vweird.f32 %v288_v6 }
 0x1d6   :  { %2125 = vrsqrt.f32 %v987_v11  ;;  %v318_v20 = vsel %vm317_vm5, %v2120_v43, %v314_v16  ;;  %v1045_v30 = vmul.f32 %v1007_v19, %v231_v48 }
 0x1d7   :  { %v1012_v21 = vsub.f32 1.5, %v1011_v17  ;;  %v339_v32 = vmul.f32 %v318_v20, %v232_v15 }
 0x1d8   :  { %1055 = vperm.xlu1 %2108, %v1045_v30  }
 0x1d9   :  { %353 = vperm.xlu2 %2109, %v339_v32   ;;  %v1013_v18 = vmul.f32 %v2122_v63, %v1012_v21 }
 0x1db   :  { %v2124_v33 = vpop.eup %2123  ;;  %v1017_v37 = vsel %vm1016_vm8, %v2122_v63, %v1013_v18 }
 0x1dc   :  { %v2126_v34 = vpop.eup %2125  ;;  %v320_v35 = vmul.f32 %v2124_v33, %v288_v6  ;;  %v1046_v44 = vmul.f32 %v1017_v37, %v232_v15  ;;  %vm326_vm10 = vweird.f32 %v2124_v33  ;;  %v1036_v15 = vsub.f32 %v2367_v40, %v2503_v36 }
 0x1dd   :  { %v1019_v39 = vmul.f32 %v2126_v34, %v987_v11  ;;  %vm1025_vm12 = vweird.f32 %v2126_v34  ;;  %vm327_vm13 = vmor %vm325_vm9, %vm326_vm10 }
 0x1de   :  { %v321_v38 = vmul.f32 %v2124_v33, %v320_v35  ;;  %vm1026_vm14 = vmor %vm1024_vm11, %vm1025_vm12 }
 0x1df   :  { %v1020_v49 = vmul.f32 %v2126_v34, %v1019_v39 }
 0x1e0   :  { %v322_v50 = vmul.f32 0.5, %v321_v38 }
 0x1e1   :  { %v1021_v42 = vmul.f32 0.5, %v1020_v49  ;;  %1060 = vperm.xlu2 %2109, %v1046_v44  }
 0x1e2   :  { %v323_v43 = vsub.f32 1.5, %v322_v50 }
 0x1e3   :  { %v1022_v48 = vsub.f32 1.5, %v1021_v42 }
 0x1e4   :  { %v324_v53 = vmul.f32 %v2124_v33, %v323_v43 }
 0x1e5   :  { %v1023_v54 = vmul.f32 %v2126_v34, %v1022_v48 }
 0x1e6   :  { %v328_v55 = vsel %vm327_vm13, %v2124_v33, %v324_v53 }
 0x1e7   :  { %v340_v56 = vmul.f32 %v328_v55, %v233_v51  ;;  %v1027_v57 = vsel %vm1026_vm14, %v2126_v34, %v1023_v54 }
 0x1e8   :  { %v1047_v58 = vmul.f32 %v1027_v57, %v233_v51 }
 0x1e9   :  { %358 = vperm.xlu2 %2109, %v340_v56  }
 0x1ea   :  { %1065 = vperm.xlu0 %2110, %v1047_v58  }
 0x232   :  { %v344_v1 = vpop.permute.xlu0 %343 }
 0x233   :  { %v2554_v63 = vpop.permute.xlu2 %353  ;;  %v361_v2 = vmul.f32 %v344_v1, %v329_v59  ;;  %v362_v3 = vmul.f32 %v344_v1, %v330_v62 }
 0x235   :  { %v389_v4 = vadd.f32 %v2491_v24, %v361_v2  ;;  %v390_v5 = vadd.f32 %v2491_v24, %v362_v3 }
 0x237   :  { %v397_v6 = vsub.f32 0.0, %v389_v4  ;;  %v398_v7 = vsub.f32 0.0, %v390_v5 }
 0x239   :  { %v405_v9 = vmul.f32 1.442695, %v397_v6  ;;  %v407_v10 = vmul.f32 1.442695, %v398_v7 }
 0x23a   :  { %v1051_v12 = vpop.permute.xlu0 %1050 }
 0x23b   :  { %v1061_v28 = vpop.permute.xlu2 %1060  ;;  %2127 = vpow2.f32 %v405_v9  ;;  %v1068_v19 = vmul.f32 %v1051_v12, %v1036_v15  ;;  %v1069_v23 = vmul.f32 %v1051_v12, %v1037_v22 }
 0x23c   :  { %v2562_v31 = vmul.f32 %v1061_v28, %v1040_v8  ;;  %v2564_v11 = vmul.f32 %v1061_v28, %v1041_v27  ;;  %2129 = vpow2.f32 %v407_v10 }
 0x23d   :  { %v2571_v21 = vadd.f32 %v1068_v19, %v2491_v24  ;;  %v2574_v30 = vadd.f32 %v1069_v23, %v2491_v24 }
 0x23f   :  { %v1084_v32 = vsub.f32 0.0, %v2571_v21  ;;  %v1085_v40 = vsub.f32 0.0, %v2574_v30 }
 0x241   :  { %v2128_v16 = vpop.eup %2127  ;;  %v1092_v34 = vmul.f32 1.442695, %v1084_v32  ;;  %v1094_v37 = vmul.f32 1.442695, %v1085_v40 }
 0x242   :  { %v2130_v17 = vpop.eup %2129  ;;  %v421_v61 = vadd.f32 1.0, %v2128_v16 }
 0x243   :  { %v422_v20 = vadd.f32 1.0, %v2130_v17 }
 0x244   :  { %2131 = vrcp.f32 %v421_v61  ;;  %v440_v39 = vand.u32 2147483648, %v421_v61  ;;  %v438_v49 = vand.u32 2147483647, %v421_v61  ;;  %vm434_vm1 = vweird.f32 %v421_v61 }
 0x245   :  { %2133 = vrcp.f32 %v422_v20  ;;  %v454_v50 = vand.u32 2147483648, %v422_v20  ;;  %v452_v24 = vand.u32 2147483647, %v422_v20  ;;  %vm448_vm3 = vweird.f32 %v422_v20 }
 0x246   :  { %2135 = vpow2.f32 %v1092_v34  ;;  %v441_v48 = vor.u32 1.1754944e-38, %v440_v39  ;;  %vm439_vm5 = vcmp.eq.f32.partialorder %v438_v49, 8.507059e+37 }
 0x247   :  { %2137 = vpow2.f32 %v1094_v37  ;;  %v455_v54 = vor.u32 1.1754944e-38, %v454_v50  ;;  %vm453_vm7 = vcmp.eq.f32.partialorder %v452_v24, 8.507059e+37 }
 0x24a   :  { %v2132_v18 = vpop.eup %2131 }
 0x24b   :  { %v2134_v33 = vpop.eup %2133  ;;  %v430_v41 = vmul.f32 %v2132_v18, %v421_v61  ;;  %vm435_vm15 = vweird.f32 %v2132_v18 }
 0x24c   :  { %v444_v36 = vmul.f32 %v2134_v33, %v422_v20  ;;  %vm449_vm0 = vweird.f32 %v2134_v33  ;;  %vm436_vm2 = vmor %vm434_vm1, %vm435_vm15  ;;  %v2136_v59 = vpop.eup %2135 }
 0x24d   :  { %v431_v35 = vsub.f32 1.0, %v430_v41  ;;  %vm450_vm6 = vmor %vm448_vm3, %vm449_vm0  ;;  %v2138_v1 = vpop.eup %2137  ;;  %v1108_v2 = vadd.f32 1.0, %v2136_v59 }
 0x24e   :  { %v445_v44 = vsub.f32 1.0, %v444_v36  ;;  %v1109_v3 = vadd.f32 1.0, %v2138_v1 }
 0x24f   :  { %v432_v38 = vmul.f32 %v2132_v18, %v431_v35  ;;  %2139 = vrcp.f32 %v1108_v2  ;;  %vm1121_vm10 = vweird.f32 %v1108_v2  ;;  %v1127_v20 = vand.u32 2147483648, %v1108_v2 }
 0x250   :  { %v446_v42 = vmul.f32 %v2134_v33, %v445_v44  ;;  %2141 = vrcp.f32 %v1109_v3  ;;  %v1141_v32 = vand.u32 2147483648, %v1109_v3  ;;  %vm1135_vm12 = vweird.f32 %v1109_v3 }
 0x251   :  { %v433_v43 = vadd.f32 %v2132_v18, %v432_v38  ;;  %v1128_v37 = vor.u32 1.1754944e-38, %v1127_v20 }
 0x252   :  { %v447_v51 = vadd.f32 %v2134_v33, %v446_v42  ;;  %v1142_v39 = vor.u32 1.1754944e-38, %v1141_v32 }
 0x253   :  { %v437_v53 = vsel %vm436_vm2, %v2132_v18, %v433_v43  ;;  %v1125_v18 = vand.u32 2147483647, %v1108_v2 }
 0x254   :  { %v442_v55 = vsel %vm439_vm5, %v441_v48, %v437_v53  ;;  %v451_v56 = vsel %vm450_vm6, %v2134_v33, %v447_v51  ;;  %v1139_v33 = vand.u32 2147483647, %v1109_v3 }
 0x255   :  { %v456_v57 = vsel %vm453_vm7, %v455_v54, %v451_v56  ;;  %v2578_v58 = vmul.f32 %v442_v55, %v389_v4  ;;  %v349_v4 = vpop.permute.xlu1 %348  ;;  %v2140_v7 = vpop.eup %2139  ;;  %vm1126_vm14 = vcmp.eq.f32.partialorder %v1125_v18, 8.507059e+37  ;;  %v1031_v54 = vld [vmem:[#allocation3 + $0x58] sm:$0xff] }
 0x256   :  { %v2580_v62 = vmul.f32 %v456_v57, %v390_v5  ;;  %v331_v5 = vsub.f32 %v2337_v13, %v2507_v47  ;;  %v2142_v8 = vpop.eup %2141  ;;  %v1117_v9 = vmul.f32 %v2140_v7, %v1108_v2  ;;  %v332_v13 = vsub.f32 %v2339_v14, %v2507_v47  ;;  %v2688_v18 = vpop.permute.xlu2 %358 }
 0x257   :  { %3894 = vst [vmem:[#allocation12_spill] sm:$0xff] %v2578_v58  ;;  %596 = vrot.lane.b32.xlu0 %v2578_v58, %s2277_s10  ;;  %549 = vrot.lane.b32.xlu2 %v2578_v58, %s2280_s3  ;;  %v1131_v10 = vmul.f32 %v2142_v8, %v1109_v3  ;;  %vm1122_vm8 = vweird.f32 %v2140_v7  ;;  %vm1136_vm9 = vweird.f32 %v2142_v8  ;;  %vm1140_vm15 = vcmp.eq.f32.partialorder %v1139_v33, 8.507059e+37 }
 0x258   :  { %3895 = vst [vmem:[#allocation13_spill] sm:$0xff] %v2580_v62  ;;  %557 = vrot.lane.b32.xlu1 %v2580_v62, %s2280_s3  ;;  %v363_v6 = vmul.f32 %v349_v4, %v331_v5  ;;  %v364_v28 = vmul.f32 %v349_v4, %v332_v13  ;;  %v1118_v15 = vsub.f32 1.0, %v1117_v9  ;;  %vm2618_vm11 = vmor %vm1121_vm10, %vm1122_vm8  ;;  %v1039_v1 = vsub.f32 %v1031_v54, %v2511_v60 }
 0x259   :  { %v1132_v16 = vsub.f32 1.0, %v1131_v10  ;;  %vm1137_vm13 = vmor %vm1135_vm12, %vm1136_vm9 }
 0x25a   :  { %v2597_v27 = vadd.f32 %v2493_v25, %v363_v6  ;;  %v2609_v22 = vadd.f32 %v2493_v25, %v364_v28  ;;  %v1119_v47 = vmul.f32 %v2140_v7, %v1118_v15 }
 0x25b   :  { %v1133_v17 = vmul.f32 %v2142_v8, %v1132_v16 }
 0x25c   :  { %v399_v12 = vsub.f32 0.0, %v2597_v27  ;;  %v400_v19 = vsub.f32 0.0, %v2609_v22  ;;  %v1120_v23 = vadd.f32 %v2140_v7, %v1119_v47 }
 0x25d   :  { %v1134_v61 = vadd.f32 %v2142_v8, %v1133_v17  ;;  %v1056_v55 = vpop.permute.xlu1 %1055 }
 0x25e   :  { %v409_v14 = vmul.f32 1.442695, %v399_v12  ;;  %v411_v41 = vmul.f32 1.442695, %v400_v19  ;;  %v1124_v34 = vsel %vm2618_vm11, %v2140_v7, %v1120_v23  ;;  %v1071_v3 = vmul.f32 %v1056_v55, %v1039_v1 }
 0x25f   :  { %652 = vrot.lane.b32.xlu0 %v2580_v62, %s2281_s12  ;;  %604 = vrot.lane.b32.xlu2 %v2580_v62, %s2277_s10  ;;  %v1138_v35 = vsel %vm1137_vm13, %v2142_v8, %v1134_v61  ;;  %v1129_v44 = vsel %vm1126_vm14, %v1128_v37, %v1124_v34 }
 0x260   :  { %644 = vrot.lane.b32.xlu1 %v2578_v58, %s2281_s12  ;;  %2143 = vpow2.f32 %v409_v14  ;;  %v1143_v38 = vsel %vm1140_vm15, %v1142_v39, %v1138_v35  ;;  %v2631_v50 = vmul.f32 %v1129_v44, %v2571_v21  ;;  %v2660_v8 = vadd.f32 %v1071_v3, %v2493_v25 }
 0x261   :  { %2145 = vpow2.f32 %v411_v41  ;;  %v2634_v42 = vmul.f32 %v1143_v38, %v2574_v30  ;;  %v1030_v30 = vld [vmem:[#allocation3 + $0x50] sm:$0xff]  ;;  %v2192_v38 = vld [vmem:[#allocation3 + $0x20] sm:$0xff]  ;;  %vm612_vm15 = vcmp.lt.s32.totalorder %v2377_v52, 16 }
 0x262   :  { %3898 = vst [vmem:[#allocation14_spill] sm:$0xff] %v2631_v50  ;;  %v1038_v56 = vsub.f32 %v1030_v30, %v2511_v60  ;;  %v1087_v12 = vsub.f32 0.0, %v2660_v8 }
 0x263   :  { %3899 = vst [vmem:[#allocation15_spill] sm:$0xff] %v2634_v42 }
 0x264   :  { %v1070_v2 = vmul.f32 %v1056_v55, %v1038_v56  ;;  %v1098_v19 = vmul.f32 1.442695, %v1087_v12 }
 0x266   :  { %v2144_v36 = vpop.eup %2143  ;;  %v2657_v7 = vadd.f32 %v1070_v2, %v2493_v25 }
 0x267   :  { %756 = vrot.lane.b32.xlu0 %v2580_v62, %s2282_s0  ;;  %692 = vrot.lane.b32.xlu2 %v2578_v58, %s2283_s1  ;;  %v423_v49 = vadd.f32 1.0, %v2144_v36  ;;  %v2146_v24 = vpop.eup %2145  ;;  %v2191_v36 = vld [vmem:[#allocation3 + $0x28] sm:$0xff] }
 0x268   :  { %700 = vrot.lane.b32.xlu1 %v2580_v62, %s2283_s1  ;;  %v424_v43 = vadd.f32 1.0, %v2146_v24  ;;  %v1086_v28 = vsub.f32 0.0, %v2657_v7 }
 0x269   :  { %2147 = vrcp.f32 %v423_v49  ;;  %v468_v6 = vand.u32 2147483648, %v423_v49  ;;  %vm462_vm1 = vweird.f32 %v423_v49  ;;  %v466_v60 = vand.u32 2147483647, %v423_v49 }
 0x26a   :  { %2149 = vrcp.f32 %v424_v43  ;;  %v482_v16 = vand.u32 2147483648, %v424_v43  ;;  %v1096_v14 = vmul.f32 1.442695, %v1086_v28  ;;  %vm476_vm6 = vweird.f32 %v424_v43 }
 0x26b   :  { %v469_v13 = vor.u32 1.1754944e-38, %v468_v6  ;;  %vm467_vm3 = vcmp.eq.f32.partialorder %v466_v60, 8.507059e+37  ;;  %v480_v47 = vand.u32 2147483647, %v424_v43 }
 0x26c   :  { %v483_v61 = vor.u32 1.1754944e-38, %v482_v16  ;;  %2151 = vpow2.f32 %v1096_v14 }
 0x26d   :  { %vm481_vm8 = vcmp.eq.f32.partialorder %v480_v47, 8.507059e+37  ;;  %2153 = vpow2.f32 %v1098_v19 }
 0x26f   :  { %804 = vrot.lane.b32.xlu0 %v2580_v62, %s2284_s13  ;;  %844 = vrot.lane.b32.xlu2 %v2578_v58, %s2285_s14  ;;  %v2148_v48 = vpop.eup %2147 }
 0x270   :  { %748 = vrot.lane.b32.xlu1 %v2578_v58, %s2282_s0  ;;  %v458_v51 = vmul.f32 %v2148_v48, %v423_v49  ;;  %v2150_v53 = vpop.eup %2149  ;;  %vm463_vm0 = vweird.f32 %v2148_v48  ;;  %v333_v49 = vsub.f32 %v2192_v38, %v2517_v0 }
 0x271   :  { %v472_v59 = vmul.f32 %v2150_v53, %v424_v43  ;;  %vm464_vm2 = vmor %vm462_vm1, %vm463_vm0  ;;  %vm477_vm5 = vweird.f32 %v2150_v53  ;;  %vm565_vm0 = vcmp.lt.s32.totalorder %v2377_v52, 17 }
 0x272   :  { %v459_v21 = vsub.f32 1.0, %v458_v51  ;;  %vm478_vm7 = vmor %vm476_vm6, %vm477_vm5  ;;  %v2152_v32 = vpop.eup %2151  ;;  %v365_v51 = vmul.f32 %v2554_v63, %v333_v49  ;;  %vm708_vm5 = vcmp.lt.s32.totalorder %v2377_v52, 1  ;;  %vm764_vm6 = vcmp.lt.s32.totalorder %v2377_v52, 127 }
 0x273   :  { %v473_v5 = vsub.f32 1.0, %v472_v59  ;;  %v2154_v40 = vpop.eup %2153  ;;  %v1110_v33 = vadd.f32 1.0, %v2152_v32 }
 0x274   :  { %v460_v57 = vmul.f32 %v2148_v48, %v459_v21  ;;  %v1111_v41 = vadd.f32 1.0, %v2154_v40 }
 0x275   :  { %v474_v10 = vmul.f32 %v2150_v53, %v473_v5  ;;  %2155 = vrcp.f32 %v1110_v33  ;;  %vm1149_vm11 = vweird.f32 %v1110_v33  ;;  %v1155_v3 = vand.u32 2147483648, %v1110_v33 }
 0x276   :  { %v461_v4 = vadd.f32 %v2148_v48, %v460_v57  ;;  %2157 = vrcp.f32 %v1111_v41  ;;  %v2722_v57 = vpop.permute.xlu0 %1065  ;;  %v1153_v60 = vand.u32 2147483647, %v1110_v33  ;;  %vm1163_vm13 = vweird.f32 %v1111_v41 }
 0x277   :  { %892 = vrot.lane.b32.xlu0 %v2578_v58, %s2286_s15  ;;  %900 = vrot.lane.b32.xlu2 %v2580_v62, %s2286_s15  ;;  %v475_v15 = vadd.f32 %v2150_v53, %v474_v10 }
 0x278   :  { %796 = vrot.lane.b32.xlu1 %v2578_v58, %s2284_s13  ;;  %v465_v9 = vsel %vm464_vm2, %v2148_v48, %v461_v4  ;;  %v1169_v4 = vand.u32 2147483648, %v1111_v41  ;;  %vm1154_vm1 = vcmp.eq.f32.partialorder %v1153_v60, 8.507059e+37 }
 0x279   :  { %v470_v25 = vsel %vm467_vm3, %v469_v13, %v465_v9  ;;  %v479_v23 = vsel %vm478_vm7, %v2150_v53, %v475_v15  ;;  %v1167_v9 = vand.u32 2147483647, %v1111_v41  ;;  %vm660_vm3 = vcmp.lt.s32.totalorder %v2377_v52, 15 }
 0x27a   :  { %v2671_v17 = vmul.f32 %v470_v25, %v2597_v27  ;;  %v484_v20 = vsel %vm481_vm8, %v483_v61, %v479_v23  ;;  %v1156_v25 = vor.u32 1.1754944e-38, %v1155_v3  ;;  %v1170_v15 = vor.u32 1.1754944e-38, %v1169_v4 }
 0x27b   :  { %v2680_v27 = vmul.f32 %v484_v20, %v2609_v22  ;;  %v334_v22 = vsub.f32 %v2191_v36, %v2517_v0  ;;  %v2156_v37 = vpop.eup %2155  ;;  %v2713_v0 = vadd.f32 %v2495_v26, %v365_v51  ;;  %vm1168_vm2 = vcmp.eq.f32.partialorder %v1167_v9, 8.507059e+37 }
 0x27c   :  { %3900 = vst [vmem:[#allocation16_spill] sm:$0xff] %v2671_v17  ;;  %v2158_v39 = vpop.eup %2157  ;;  %v1145_v24 = vmul.f32 %v2156_v37, %v1110_v33  ;;  %vm1150_vm9 = vweird.f32 %v2156_v37  ;;  %v2844_v9 = vadd.f32 %v2564_v11, %v2495_v26 }
 0x27d   :  { %3901 = vst [vmem:[#allocation17_spill] sm:$0xff] %v2680_v27  ;;  %v366_v34 = vmul.f32 %v2554_v63, %v334_v22  ;;  %v1159_v43 = vmul.f32 %v2158_v39, %v1111_v41  ;;  %v401_v63 = vsub.f32 0.0, %v2713_v0  ;;  %vm1164_vm10 = vweird.f32 %v2158_v39  ;;  %vm2726_vm12 = vmor %vm1149_vm11, %vm1150_vm9 }
 0x27e   :  { %v1146_v30 = vsub.f32 1.0, %v1145_v24  ;;  %vm2730_vm14 = vmor %vm1163_vm13, %vm1164_vm10  ;;  %vm908_vm10 = vcmp.lt.s32.totalorder %v2377_v52, 111  ;;  %vm812_vm11 = vcmp.lt.s32.totalorder %v2377_v52, 113 }
 0x27f   :  { %1382 = vrot.lane.b32.xlu0 %v2634_v42, %s2283_s1  ;;  %1328 = vrot.lane.b32.xlu2 %v2631_v50, %s2281_s12  ;;  %v2701_v44 = vadd.f32 %v2495_v26, %v366_v34  ;;  %v1160_v53 = vsub.f32 1.0, %v1159_v43  ;;  %v413_v5 = vmul.f32 1.442695, %v401_v63 }
 0x280   :  { %852 = vrot.lane.b32.xlu1 %v2580_v62, %s2285_s14  ;;  %v1147_v55 = vmul.f32 %v2156_v37, %v1146_v30 }
 0x281   :  { %v402_v48 = vsub.f32 0.0, %v2701_v44  ;;  %v1161_v56 = vmul.f32 %v2158_v39, %v1160_v53 }
 0x282   :  { %v1148_v1 = vadd.f32 %v2156_v37, %v1147_v55 }
 0x283   :  { %v415_v54 = vmul.f32 1.442695, %v402_v48  ;;  %v1162_v2 = vadd.f32 %v2158_v39, %v1161_v56 }
 0x284   :  { %v1152_v28 = vsel %vm2726_vm12, %v2156_v37, %v1148_v1 }
 0x285   :  { %2159 = vpow2.f32 %v415_v54  ;;  %v1166_v12 = vsel %vm2730_vm14, %v2158_v39, %v1162_v2  ;;  %v1157_v19 = vsel %vm1154_vm1, %v1156_v25, %v1152_v28  ;;  %v2817_v54 = vadd.f32 %v2562_v31, %v2495_v26 }
 0x286   :  { %2161 = vpow2.f32 %v413_v5  ;;  %v1171_v23 = vsel %vm1168_vm2, %v1170_v15, %v1166_v12  ;;  %v2769_v41 = vmul.f32 %v1157_v19, %v2657_v7  ;;  %v1089_v26 = vsub.f32 0.0, %v2844_v9 }
 0x287   :  { %1520 = vrot.lane.b32.xlu0 %v2631_v50, %s2285_s14  ;;  %1528 = vrot.lane.b32.xlu2 %v2634_v42, %s2285_s14  ;;  %v2772_v36 = vmul.f32 %v1171_v23, %v2660_v8  ;;  %v1088_v63 = vsub.f32 0.0, %v2817_v54  ;;  %vm860_vm2 = vcmp.lt.s32.totalorder %v2377_v52, 112 }
 0x288   :  { %1374 = vrot.lane.b32.xlu1 %v2631_v50, %s2283_s1  ;;  %3906 = vst [vmem:[#allocation18_spill] sm:$0xff] %v2769_v41 }
 0x289   :  { %3907 = vst [vmem:[#allocation19_spill] sm:$0xff] %v2772_v36 }
 0x28b   :  { %v2160_v10 = vpop.eup %2159 }
 0x28c   :  { %v2746_v16 = vadd.f32 1.0, %v2160_v10  ;;  %v2162_v22 = vpop.eup %2161  ;;  %v1100_v10 = vmul.f32 1.442695, %v1088_v63 }
 0x28e   :  { %2163 = vrcp.f32 %v2746_v16  ;;  %v510_v6 = vand.u32 2147483648, %v2746_v16  ;;  %vm504_vm8 = vweird.f32 %v2746_v16  ;;  %v508_v60 = vand.u32 2147483647, %v2746_v16 }
 0x28f   :  { %1290 = vrot.lane.b32.xlu0 %v2634_v42, %s2277_s10  ;;  %1474 = vrot.lane.b32.xlu2 %v2631_v50, %s2284_s13 }
 0x290   :  { %1336 = vrot.lane.b32.xlu1 %v2634_v42, %s2281_s12  ;;  %v511_v12 = vor.u32 1.1754944e-38, %v510_v6  ;;  %vm509_vm12 = vcmp.eq.f32.partialorder %v508_v60, 8.507059e+37 }
 0x294   :  { %v2164_v38 = vpop.eup %2163 }
 0x295   :  { %v500_v49 = vmul.f32 %v2164_v38, %v2746_v16  ;;  %vm505_vm7 = vweird.f32 %v2164_v38 }
 0x296   :  { %vm506_vm9 = vmor %vm504_vm8, %vm505_vm7 }
 0x297   :  { %1566 = vrot.lane.b32.xlu0 %v2631_v50, %s2286_s15  ;;  %1574 = vrot.lane.b32.xlu2 %v2634_v42, %s2286_s15  ;;  %v501_v51 = vsub.f32 1.0, %v500_v49 }
 0x298   :  { %1282 = vrot.lane.b32.xlu1 %v2631_v50, %s2277_s10 }
 0x299   :  { %v502_v56 = vmul.f32 %v2164_v38, %v501_v51 }
 0x29b   :  { %v503_v3 = vadd.f32 %v2164_v38, %v502_v56 }
 0x29d   :  { %v507_v28 = vsel %vm506_vm9, %v2164_v38, %v503_v3  ;;  %v1102_v38 = vmul.f32 1.442695, %v1089_v26 }
 0x29e   :  { %v512_v15 = vsel %vm509_vm12, %v511_v12, %v507_v28  ;;  %v2193_v12 = vld [vmem:[#allocation3 + $0x30] sm:$0xff] }
 0x29f   :  { %1244 = vrot.lane.b32.xlu0 %v2634_v42, %s2280_s3  ;;  %598 = vrot.lane.b32.xlu2 %v2671_v17, %s2277_s10  ;;  %v335_v26 = vsub.f32 %v2193_v12, %v2528_v46 }
 0x2a0   :  { %1482 = vrot.lane.b32.xlu1 %v2634_v42, %s2284_s13 }
 0x2a7   :  { %559 = vrot.lane.b32.xlu0 %v2680_v27, %s2280_s3  ;;  %654 = vrot.lane.b32.xlu2 %v2680_v27, %s2281_s12 }
 0x2a8   :  { %1236 = vrot.lane.b32.xlu1 %v2631_v50, %s2280_s3 }
 0x2af   :  { %646 = vrot.lane.b32.xlu0 %v2671_v17, %s2281_s12  ;;  %758 = vrot.lane.b32.xlu2 %v2680_v27, %s2282_s0 }
 0x2b0   :  { %551 = vrot.lane.b32.xlu1 %v2671_v17, %s2280_s3 }
 0x2b1   :  { %v2698_v35 = vpop.permute.xlu2 %549 }
 0x2b7   :  { %702 = vrot.lane.b32.xlu0 %v2680_v27, %s2283_s1  ;;  %806 = vrot.lane.b32.xlu2 %v2680_v27, %s2284_s13 }
 0x2b8   :  { %606 = vrot.lane.b32.xlu1 %v2680_v27, %s2277_s10 }
 0x2b9   :  { %v605_v21 = vpop.permute.xlu2 %604 }
 0x2bf   :  { %750 = vrot.lane.b32.xlu0 %v2671_v17, %s2282_s0  ;;  %854 = vrot.lane.b32.xlu2 %v2680_v27, %s2285_s14 }
 0x2c0   :  { %694 = vrot.lane.b32.xlu1 %v2671_v17, %s2283_s1 }
 0x2c1   :  { %v2724_v59 = vpop.permute.xlu2 %692 }
 0x2c7   :  { %798 = vrot.lane.b32.xlu0 %v2671_v17, %s2284_s13  ;;  %894 = vrot.lane.b32.xlu2 %v2671_v17, %s2286_s15 }
 0x2c8   :  { %846 = vrot.lane.b32.xlu1 %v2671_v17, %s2285_s14 }
 0x2c9   :  { %v2748_v14 = vpop.permute.xlu2 %844  ;;  %v597_v47 = vpop.permute.xlu0 %596 }
 0x2ca   :  { %v558_v61 = vpop.permute.xlu1 %557  ;;  %v2752_v20 = vsel %vm612_vm15, %v597_v47, %v605_v21  ;;  %v2756_v32 = vsel %vm612_vm15, %v605_v21, %v597_v47 }
 0x2cb   :  { %v2761_v40 = vsel %vm565_vm0, %v2698_v35, %v558_v61  ;;  %v2766_v33 = vsel %vm565_vm0, %v558_v61, %v2698_v35  ;;  %v2782_v35 = vadd.f32 1.0, %v2162_v22 }
 0x2cd   :  { %2165 = vrcp.f32 %v2782_v35  ;;  %vm490_vm14 = vweird.f32 %v2782_v35 }
 0x2ce   :  { %2167 = vpow2.f32 %v1100_v10 }
 0x2cf   :  { %1376 = vrot.lane.b32.xlu0 %v2769_v41, %s2283_s1  ;;  %1384 = vrot.lane.b32.xlu2 %v2772_v36, %s2283_s1  ;;  %2169 = vpow2.f32 %v1102_v38 }
 0x2d0   :  { %902 = vrot.lane.b32.xlu1 %v2680_v27, %s2286_s15 }
 0x2d1   :  { %v901_v34 = vpop.permute.xlu2 %900  ;;  %v653_v7 = vpop.permute.xlu0 %652 }
 0x2d2   :  { %v645_v8 = vpop.permute.xlu1 %644 }
 0x2d3   :  { %v2786_v37 = vsel %vm660_vm3, %v645_v8, %v653_v7  ;;  %v2790_v39 = vsel %vm660_vm3, %v653_v7, %v645_v8  ;;  %v2813_v53 = vpop.eup %2165  ;;  %v496_v7 = vand.u32 2147483648, %v2782_v35  ;;  %v494_v8 = vand.u32 2147483647, %v2782_v35 }
 0x2d4   :  { %v486_v55 = vmul.f32 %v2813_v53, %v2782_v35  ;;  %vm491_vm13 = vweird.f32 %v2813_v53  ;;  %v2168_v49 = vpop.eup %2167 }
 0x2d5   :  { %vm492_vm1 = vmor %vm490_vm14, %vm491_vm13  ;;  %vm495_vm7 = vcmp.eq.f32.partialorder %v494_v8, 8.507059e+37 }
 0x2d6   :  { %v487_v2 = vsub.f32 1.0, %v486_v55  ;;  %v2890_v55 = vadd.f32 1.0, %v2168_v49 }
 0x2d7   :  { %1338 = vrot.lane.b32.xlu0 %v2772_v36, %s2281_s12  ;;  %1284 = vrot.lane.b32.xlu2 %v2769_v41, %s2277_s10 }
 0x2d8   :  { %1330 = vrot.lane.b32.xlu1 %v2769_v41, %s2281_s12  ;;  %v488_v13 = vmul.f32 %v2813_v53, %v487_v2  ;;  %2171 = vrcp.f32 %v2890_v55  ;;  %vm1177_vm9 = vweird.f32 %v2890_v55 }
 0x2d9   :  { %v2801_v24 = vpop.permute.xlu2 %1328  ;;  %v757_v43 = vpop.permute.xlu0 %756 }
 0x2da   :  { %v701_v48 = vpop.permute.xlu1 %700  ;;  %v489_v23 = vadd.f32 %v2813_v53, %v488_v13 }
 0x2db   :  { %v2806_v21 = vsel %vm708_vm5, %v2724_v59, %v701_v48  ;;  %v2811_v30 = vsel %vm708_vm5, %v701_v48, %v2724_v59  ;;  %v497_v48 = vor.u32 1.1754944e-38, %v496_v7 }
 0x2df   :  { %1530 = vrot.lane.b32.xlu0 %v2772_v36, %s2285_s14  ;;  %1476 = vrot.lane.b32.xlu2 %v2769_v41, %s2284_s13 }
 0x2e0   :  { %1522 = vrot.lane.b32.xlu1 %v2769_v41, %s2285_s14 }
 0x2e1   :  { %v2829_v59 = vpop.permute.xlu2 %1528  ;;  %v805_v31 = vpop.permute.xlu0 %804 }
 0x2e2   :  { %v749_v1 = vpop.permute.xlu1 %748 }
 0x2e3   :  { %v2833_v4 = vsel %vm764_vm6, %v749_v1, %v757_v43  ;;  %v2837_v5 = vsel %vm764_vm6, %v757_v43, %v749_v1  ;;  %v493_v43 = vsel %vm492_vm1, %v2813_v53, %v489_v23  ;;  %v2170_v1 = vpop.eup %2169 }
 0x2e4   :  { %3908 = vst [vmem:[#allocation20_spill] sm:$0xff] %v2837_v5  ;;  %v498_v51 = vsel %vm495_vm7, %v497_v48, %v493_v43  ;;  %v2172_v28 = vpop.eup %2171  ;;  %v2194_v48 = vld [vmem:[#allocation3 + $0x38] sm:$0xff] }
 0x2e5   :  { %vm1178_vm8 = vweird.f32 %v2172_v28 }
 0x2e6   :  { %vm1179_vm12 = vmor %vm1177_vm9, %vm1178_vm8 }
 0x2e7   :  { %1568 = vrot.lane.b32.xlu0 %v2769_v41, %s2286_s15  ;;  %1576 = vrot.lane.b32.xlu2 %v2772_v36, %s2286_s15 }
 0x2e8   :  { %1292 = vrot.lane.b32.xlu1 %v2772_v36, %s2277_s10 }
 0x2e9   :  { %v2856_v11 = vpop.permute.xlu2 %1474  ;;  %v893_v25 = vpop.permute.xlu0 %892 }
 0x2ea   :  { %v797_v16 = vpop.permute.xlu1 %796  ;;  %v2860_v47 = vsel %vm908_vm10, %v893_v25, %v901_v34  ;;  %v2864_v19 = vsel %vm908_vm10, %v901_v34, %v893_v25  ;;  %v2880_v34 = vmul.f32 %v512_v15, %v2701_v44  ;;  %v1173_v25 = vmul.f32 %v2172_v28, %v2890_v55 }
 0x2eb   :  { %v2870_v61 = vsel %vm812_vm11, %v797_v16, %v805_v31  ;;  %v2874_v22 = vsel %vm812_vm11, %v805_v31, %v797_v16  ;;  %v2903_v31 = vmul.f32 %v498_v51, %v2713_v0 }
 0x2ec   :  { %3909 = vst [vmem:[#allocation21_spill] sm:$0xff] %v2874_v22  ;;  %v1174_v7 = vsub.f32 1.0, %v1173_v25 }
 0x2ed   :  { %3910 = vst [vmem:[#allocation22_spill] sm:$0xff] %v2880_v34 }
 0x2ee   :  { %3911 = vst [vmem:[#allocation23_spill] sm:$0xff] %v2903_v31  ;;  %v1175_v51 = vmul.f32 %v2172_v28, %v1174_v7  ;;  %v1183_v7 = vand.u32 2147483648, %v2890_v55 }
 0x2ef   :  { %1246 = vrot.lane.b32.xlu0 %v2772_v36, %s2280_s3  ;;  %561 = vrot.lane.b32.xlu2 %v2880_v34, %s2280_s3 }
 0x2f0   :  { %1484 = vrot.lane.b32.xlu1 %v2772_v36, %s2284_s13  ;;  %v1176_v25 = vadd.f32 %v2172_v28, %v1175_v51 }
 0x2f1   :  { %v1575_v44 = vpop.permute.xlu2 %1574  ;;  %v1383_v35 = vpop.permute.xlu0 %1382 }
 0x2f2   :  { %v853_v53 = vpop.permute.xlu1 %852  ;;  %v1180_v51 = vsel %vm1179_vm12, %v2172_v28, %v1176_v25 }
 0x2f3   :  { %v2895_v56 = vsel %vm860_vm2, %v2748_v14, %v853_v53  ;;  %v2900_v63 = vsel %vm860_vm2, %v853_v53, %v2748_v14  ;;  %v2914_v14 = vadd.f32 1.0, %v2170_v1 }
 0x2f5   :  { %2173 = vrcp.f32 %v2914_v14  ;;  %vm1191_vm1 = vweird.f32 %v2914_v14 }
 0x2f7   :  { %553 = vrot.lane.b32.xlu0 %v2903_v31, %s2280_s3  ;;  %648 = vrot.lane.b32.xlu2 %v2903_v31, %s2281_s12 }
 0x2f8   :  { %1238 = vrot.lane.b32.xlu1 %v2769_v41, %s2280_s3 }
 0x2f9   :  { %v2912_v2 = vpop.permute.xlu2 %598  ;;  %v1521_v3 = vpop.permute.xlu0 %1520 }
 0x2fa   :  { %v1375_v6 = vpop.permute.xlu1 %1374  ;;  %v2919_v0 = vsel %vm860_vm2, %v1521_v3, %v2829_v59  ;;  %v2924_v60 = vsel %vm860_vm2, %v2829_v59, %v1521_v3  ;;  %v367_v59 = vmul.f32 %v2688_v18, %v335_v26 }
 0x2fb   :  { %3912 = vst [vmem:[#allocation24_spill] sm:$0xff] %v2919_v0  ;;  %v2928_v10 = vsel %vm708_vm5, %v1375_v6, %v1383_v35  ;;  %v2932_v13 = vsel %vm708_vm5, %v1383_v35, %v1375_v6  ;;  %v2174_v49 = vpop.eup %2173  ;;  %v336_v35 = vsub.f32 %v2194_v48, %v2528_v46  ;;  %v1181_v48 = vand.u32 2147483647, %v2890_v55 }
 0x2fc   :  { %3913 = vst [vmem:[#allocation25_spill] sm:$0xff] %v2924_v60  ;;  %v2957_v43 = vadd.f32 %v2497_v29, %v367_v59  ;;  %v1187_v53 = vmul.f32 %v2174_v49, %v2914_v14  ;;  %vm1192_vm14 = vweird.f32 %v2174_v49 }
 0x2fd   :  { %3914 = vst [vmem:[#allocation26_spill] sm:$0xff] %v2928_v10  ;;  %vm1182_vm13 = vcmp.eq.f32.partialorder %v1181_v48, 8.507059e+37  ;;  %v1195_v48 = vand.u32 2147483647, %v2914_v14  ;;  %vm1193_vm7 = vmor %vm1191_vm1, %vm1192_vm14 }
 0x2fe   :  { %3915 = vst [vmem:[#allocation27_spill] sm:$0xff] %v2932_v13  ;;  %v403_v1 = vsub.f32 0.0, %v2957_v43  ;;  %v1188_v59 = vsub.f32 1.0, %v1187_v53 }
 0x2ff   :  { %608 = vrot.lane.b32.xlu0 %v2880_v34, %s2277_s10  ;;  %704 = vrot.lane.b32.xlu2 %v2880_v34, %s2283_s1  ;;  %vm1196_vm8 = vcmp.eq.f32.partialorder %v1195_v48, 8.507059e+37 }
 0x300   :  { %600 = vrot.lane.b32.xlu1 %v2903_v31, %s2277_s10  ;;  %v1189_v53 = vmul.f32 %v2174_v49, %v1188_v59 }
 0x301   :  { %v2944_v15 = vpop.permute.xlu2 %654  ;;  %v1291_v16 = vpop.permute.xlu0 %1290 }
 0x302   :  { %v1337_v23 = vpop.permute.xlu1 %1336 }
 0x303   :  { %v2949_v8 = vsel %vm660_vm3, %v2801_v24, %v1337_v23  ;;  %v2954_v38 = vsel %vm660_vm3, %v1337_v23, %v2801_v24  ;;  %v368_v24 = vmul.f32 %v2688_v18, %v336_v35 }
 0x304   :  { %3916 = vst [vmem:[#allocation28_spill] sm:$0xff] %v2949_v8 }
 0x305   :  { %3917 = vst [vmem:[#allocation29_spill] sm:$0xff] %v2954_v38  ;;  %v2991_v35 = vadd.f32 %v2497_v29, %v368_v24 }
 0x307   :  { %696 = vrot.lane.b32.xlu0 %v2903_v31, %s2283_s1  ;;  %752 = vrot.lane.b32.xlu2 %v2903_v31, %s2282_s0  ;;  %v404_v55 = vsub.f32 0.0, %v2991_v35 }
 0x308   :  { %656 = vrot.lane.b32.xlu1 %v2880_v34, %s2281_s12 }
 0x309   :  { %v2969_v3 = vpop.permute.xlu2 %758  ;;  %v1567_v6 = vpop.permute.xlu0 %1566 }
 0x30a   :  { %v1283_v46 = vpop.permute.xlu1 %1282  ;;  %v2973_v12 = vsel %vm908_vm10, %v1567_v6, %v1575_v44  ;;  %v2977_v26 = vsel %vm908_vm10, %v1575_v44, %v1567_v6  ;;  %v417_v44 = vmul.f32 1.442695, %v403_v1 }
 0x30b   :  { %3918 = vst [vmem:[#allocation30_spill] sm:$0xff] %v2973_v12  ;;  %v2981_v18 = vsel %vm612_vm15, %v1283_v46, %v1291_v16  ;;  %v2985_v23 = vsel %vm612_vm15, %v1291_v16, %v1283_v46  ;;  %v1184_v16 = vor.u32 1.1754944e-38, %v1183_v7  ;;  %v1190_v46 = vadd.f32 %v2174_v49, %v1189_v53 }
 0x30c   :  { %3919 = vst [vmem:[#allocation31_spill] sm:$0xff] %v2977_v26  ;;  %2175 = vpow2.f32 %v417_v44  ;;  %v1197_v7 = vand.u32 2147483648, %v2914_v14 }
 0x30d   :  { %3920 = vst [vmem:[#allocation32_spill] sm:$0xff] %v2981_v18  ;;  %v1185_v6 = vsel %vm1182_vm13, %v1184_v16, %v1180_v51  ;;  %v419_v51 = vmul.f32 1.442695, %v404_v55  ;;  %v1194_v16 = vsel %vm1193_vm7, %v2174_v49, %v1190_v46 }
 0x30e   :  { %3921 = vst [vmem:[#allocation33_spill] sm:$0xff] %v2985_v23  ;;  %v3016_v44 = vmul.f32 %v1185_v6, %v2817_v54 }
 0x30f   :  { %856 = vrot.lane.b32.xlu0 %v2880_v34, %s2285_s14  ;;  %800 = vrot.lane.b32.xlu2 %v2903_v31, %s2284_s13  ;;  %2177 = vpow2.f32 %v419_v51 }
 0x310   :  { %760 = vrot.lane.b32.xlu1 %v2880_v34, %s2282_s0  ;;  %3924 = vst [vmem:[#allocation36_spill] sm:$0xff] %v3016_v44 }
 0x311   :  { %v3000_v24 = vpop.permute.xlu2 %806  ;;  %v1245_v1 = vpop.permute.xlu0 %1244 }
 0x312   :  { %v1483_v28 = vpop.permute.xlu1 %1482  ;;  %v2176_v53 = vpop.eup %2175 }
 0x313   :  { %v3005_v25 = vsel %vm812_vm11, %v2856_v11, %v1483_v28  ;;  %v3010_v59 = vsel %vm812_vm11, %v1483_v28, %v2856_v11  ;;  %v1198_v11 = vor.u32 1.1754944e-38, %v1197_v7  ;;  %v3026_v55 = vadd.f32 1.0, %v2176_v53 }
 0x314   :  { %3922 = vst [vmem:[#allocation34_spill] sm:$0xff] %v3005_v25 }
 0x315   :  { %3923 = vst [vmem:[#allocation35_spill] sm:$0xff] %v3010_v59  ;;  %v1199_v6 = vsel %vm1196_vm8, %v1198_v11, %v1194_v16  ;;  %2179 = vrcp.f32 %v3026_v55  ;;  %v2178_v48 = vpop.eup %2177  ;;  %vm518_vm12 = vweird.f32 %v3026_v55  ;;  %v522_v18 = vand.u32 2147483647, %v3026_v55 }
 0x316   :  { %v3037_v7 = vmul.f32 %v1199_v6, %v2844_v9 }
 0x317   :  { %904 = vrot.lane.b32.xlu0 %v2880_v34, %s2286_s15  ;;  %1378 = vrot.lane.b32.xlu2 %v3016_v44, %s2283_s1  ;;  %vm523_vm14 = vcmp.eq.f32.partialorder %v522_v18, 8.507059e+37 }
 0x318   :  { %808 = vrot.lane.b32.xlu1 %v2880_v34, %s2284_s13  ;;  %3927 = vst [vmem:[#allocation39_spill] sm:$0xff] %v3037_v7 }
 0x319   :  { %v3024_v14 = vpop.permute.xlu2 %854  ;;  %v560_v54 = vpop.permute.xlu0 %559 }
 0x31a   :  { %v1237_v28 = vpop.permute.xlu1 %1236 }
 0x31b   :  { %v3030_v49 = vsel %vm565_vm0, %v1237_v28, %v1245_v1  ;;  %v3034_v46 = vsel %vm565_vm0, %v1245_v1, %v1237_v28  ;;  %v3048_v1 = vadd.f32 1.0, %v2178_v48  ;;  %v2180_v48 = vpop.eup %2179 }
 0x31c   :  { %3925 = vst [vmem:[#allocation37_spill] sm:$0xff] %v3030_v49  ;;  %v514_v26 = vmul.f32 %v2180_v48, %v3026_v55  ;;  %v2195_v49 = vld [vmem:[#allocation3 + $0x78] sm:$0xff]  ;;  %vm519_vm9 = vweird.f32 %v2180_v48 }
 0x31d   :  { %3926 = vst [vmem:[#allocation38_spill] sm:$0xff] %v3034_v46  ;;  %2181 = vrcp.f32 %v3048_v1  ;;  %v1043_v23 = vsub.f32 %v2195_v49, %v2526_v45  ;;  %vm520_vm13 = vmor %vm518_vm12, %vm519_vm9  ;;  %vm532_vm7 = vweird.f32 %v3048_v1 }
 0x31f   :  { %1332 = vrot.lane.b32.xlu0 %v3016_v44, %s2281_s12  ;;  %1340 = vrot.lane.b32.xlu2 %v3037_v7, %s2281_s12  ;;  %v4025_v52 = vld [vmem:[#allocation39_spill] sm:$0xff] }
 0x320   :  { %848 = vrot.lane.b32.xlu1 %v2903_v31, %s2285_s14 }
 0x321   :  { %v3046_v51 = vpop.permute.xlu2 %894  ;;  %v647_v53 = vpop.permute.xlu0 %646 }
 0x322   :  { %v552_v16 = vpop.permute.xlu1 %551  ;;  %v3053_v9 = vsel %vm660_vm3, %v647_v53, %v2944_v15  ;;  %v3058_v11 = vsel %vm660_vm3, %v2944_v15, %v647_v53 }
 0x323   :  { %v3062_v6 = vsel %vm565_vm0, %v552_v16, %v560_v54  ;;  %v3066_v28 = vsel %vm565_vm0, %v560_v54, %v552_v16  ;;  %v515_v54 = vsub.f32 1.0, %v514_v26  ;;  %v3088_v60 = vpop.eup %2181  ;;  %v2196_v26 = vld [vmem:[#allocation3 + $0x70] sm:$0xff] }
 0x324   :  { %v528_v62 = vmul.f32 %v3088_v60, %v3048_v1  ;;  %v1042_v38 = vsub.f32 %v2196_v26, %v2526_v45  ;;  %vm533_vm1 = vweird.f32 %v3088_v60 }
 0x325   :  { %v516_v12 = vmul.f32 %v2180_v48, %v515_v54  ;;  %vm534_vm8 = vmor %vm532_vm7, %vm533_vm1 }
 0x326   :  { %v1074_v54 = vmul.f32 %v2722_v57, %v1042_v38  ;;  %v529_v34 = vsub.f32 1.0, %v528_v62  ;;  %v524_v38 = vand.u32 2147483648, %v3026_v55 }
 0x327   :  { %1286 = vrot.lane.b32.xlu0 %v3016_v44, %s2277_s10  ;;  %1524 = vrot.lane.b32.xlu2 %v3016_v44, %s2285_s14  ;;  %v517_v26 = vadd.f32 %v2180_v48, %v516_v12 }
 0x328   :  { %896 = vrot.lane.b32.xlu1 %v2903_v31, %s2286_s15  ;;  %v3129_v62 = vadd.f32 %v1074_v54, %v2497_v29  ;;  %v530_v12 = vmul.f32 %v3088_v60, %v529_v34 }
 0x329   :  { %v3076_v15 = vpop.permute.xlu2 %1384  ;;  %v703_v53 = vpop.permute.xlu0 %702 }
 0x32a   :  { %v607_v59 = vpop.permute.xlu1 %606  ;;  %v531_v18 = vadd.f32 %v3088_v60, %v530_v12 }
 0x32b   :  { %v3081_v16 = vsel %vm612_vm15, %v2912_v2, %v607_v59  ;;  %v3086_v46 = vsel %vm612_vm15, %v607_v59, %v2912_v2  ;;  %v1075_v2 = vmul.f32 %v2722_v57, %v1043_v23 }
 0x32c   :  { %v535_v5 = vsel %vm534_vm8, %v3088_v60, %v531_v18 }
 0x32d   :  { %v3126_v13 = vadd.f32 %v1075_v2, %v2497_v29 }
 0x32f   :  { %1570 = vrot.lane.b32.xlu0 %v3016_v44, %s2286_s15  ;;  %1294 = vrot.lane.b32.xlu2 %v3037_v7, %s2277_s10  ;;  %v1091_v55 = vsub.f32 0.0, %v3126_v13 }
 0x330   :  { %1386 = vrot.lane.b32.xlu1 %v3037_v7, %s2283_s1 }
 0x331   :  { %v3101_v59 = vpop.permute.xlu2 %1284  ;;  %v751_v49 = vpop.permute.xlu0 %750 }
 0x332   :  { %v695_v27 = vpop.permute.xlu1 %694  ;;  %v3107_v25 = vsel %vm764_vm6, %v751_v49, %v2969_v3  ;;  %v3112_v45 = vsel %vm764_vm6, %v2969_v3, %v751_v49  ;;  %v521_v3 = vsel %vm520_vm13, %v2180_v48, %v517_v26  ;;  %v1090_v48 = vsub.f32 0.0, %v3129_v62 }
 0x333   :  { %3928 = vst [vmem:[#allocation40_spill] sm:$0xff] %v3112_v45  ;;  %v3116_v23 = vsel %vm708_vm5, %v695_v27, %v703_v53  ;;  %v3120_v57 = vsel %vm708_vm5, %v703_v53, %v695_v27  ;;  %v525_v27 = vor.u32 1.1754944e-38, %v524_v38 }
 0x335   :  { %v526_v2 = vsel %vm523_vm14, %v525_v27, %v521_v3  ;;  %v538_v3 = vand.u32 2147483648, %v3048_v1  ;;  %v1106_v27 = vmul.f32 1.442695, %v1091_v55 }
 0x336   :  { %v3168_v12 = vmul.f32 %v526_v2, %v2957_v43 }
 0x337   :  { %1248 = vrot.lane.b32.xlu0 %v3037_v7, %s2280_s3  ;;  %1478 = vrot.lane.b32.xlu2 %v3016_v44, %s2284_s13  ;;  %2183 = vpow2.f32 %v1106_v27 }
 0x338   :  { %1532 = vrot.lane.b32.xlu1 %v3037_v7, %s2285_s14  ;;  %3930 = vst [vmem:[#allocation42_spill] sm:$0xff] %v3168_v12 }
 0x339   :  { %v3139_v53 = vpop.permute.xlu2 %1476  ;;  %v799_v29 = vpop.permute.xlu0 %798 }
 0x33a   :  { %v847_v34 = vpop.permute.xlu1 %846  ;;  %v3145_v49 = vsel %vm812_vm11, %v799_v29, %v3000_v24  ;;  %v3150_v54 = vsel %vm812_vm11, %v3000_v24, %v799_v29  ;;  %v536_v24 = vand.u32 2147483647, %v3048_v1  ;;  %v1104_v29 = vmul.f32 1.442695, %v1090_v48 }
 0x33b   :  { %3929 = vst [vmem:[#allocation41_spill] sm:$0xff] %v3150_v54  ;;  %v3157_v26 = vsel %vm860_vm2, %v847_v34, %v3024_v14  ;;  %v3162_v38 = vsel %vm860_vm2, %v3024_v14, %v847_v34  ;;  %v539_v14 = vor.u32 1.1754944e-38, %v538_v3 }
 0x33c   :  { %vm537_vm9 = vcmp.eq.f32.partialorder %v536_v24, 8.507059e+37  ;;  %2185 = vpow2.f32 %v1104_v29 }
 0x33d   :  { %v540_v2 = vsel %vm537_vm9, %v539_v14, %v535_v5  ;;  %v2184_v3 = vpop.eup %2183 }
 0x33e   :  { %v3198_v18 = vmul.f32 %v540_v2, %v2991_v35  ;;  %v1115_v29 = vadd.f32 1.0, %v2184_v3 }
 0x33f   :  { %602 = vrot.lane.b32.xlu0 %v3168_v12, %s2277_s10  ;;  %1578 = vrot.lane.b32.xlu2 %v3037_v7, %s2286_s15 }
 0x340   :  { %1486 = vrot.lane.b32.xlu1 %v3037_v7, %s2284_s13  ;;  %3933 = vst [vmem:[#allocation45_spill] sm:$0xff] %v3198_v18  ;;  %2187 = vrcp.f32 %v1115_v29  ;;  %vm1219_vm14 = vweird.f32 %v1115_v29 }
 0x341   :  { %v1577_v1 = vpop.permute.xlu2 %1576  ;;  %v1377_v43 = vpop.permute.xlu0 %1376 }
 0x342   :  { %v903_v55 = vpop.permute.xlu1 %902  ;;  %v3180_v60 = vsel %vm708_vm5, %v1377_v43, %v3076_v15  ;;  %v3185_v48 = vsel %vm708_vm5, %v3076_v15, %v1377_v43  ;;  %v2186_v15 = vpop.eup %2185 }
 0x343   :  { %3931 = vst [vmem:[#allocation43_spill] sm:$0xff] %v3180_v60  ;;  %v3190_v34 = vsel %vm908_vm10, %v3046_v51, %v903_v55  ;;  %v3195_v5 = vsel %vm908_vm10, %v903_v55, %v3046_v51  ;;  %v1114_v14 = vadd.f32 1.0, %v2186_v15 }
 0x344   :  { %3932 = vst [vmem:[#allocation44_spill] sm:$0xff] %v3185_v48 }
 0x345   :  { %2189 = vrcp.f32 %v1114_v14  ;;  %vm1205_vm1 = vweird.f32 %v1114_v14 }
 0x347   :  { %658 = vrot.lane.b32.xlu0 %v3198_v18, %s2281_s12  ;;  %555 = vrot.lane.b32.xlu2 %v3168_v12, %s2280_s3 }
 0x348   :  { %1240 = vrot.lane.b32.xlu1 %v3016_v44, %s2280_s3 }
 0x349   :  { %v3206_v24 = vpop.permute.xlu2 %561  ;;  %v1339_v27 = vpop.permute.xlu0 %1338 }
 0x34a   :  { %v1331_v51 = vpop.permute.xlu1 %1330 }
 0x34b   :  { %v3210_v35 = vsel %vm660_vm3, %v1331_v51, %v1339_v27  ;;  %v3214_v43 = vsel %vm660_vm3, %v1339_v27, %v1331_v51  ;;  %v2188_v51 = vpop.eup %2187 }
 0x34c   :  { %3934 = vst [vmem:[#allocation46_spill] sm:$0xff] %v3210_v35  ;;  %v1215_v48 = vmul.f32 %v2188_v51, %v1115_v29  ;;  %vm1220_vm12 = vweird.f32 %v2188_v51 }
 0x34d   :  { %3935 = vst [vmem:[#allocation47_spill] sm:$0xff] %v3214_v43  ;;  %v2190_v43 = vpop.eup %2189  ;;  %vm1221_vm7 = vmor %vm1219_vm14, %vm1220_vm12 }
 0x34e   :  { %v1201_v45 = vmul.f32 %v2190_v43, %v1114_v14  ;;  %vm1206_vm13 = vweird.f32 %v2190_v43 }
 0x34f   :  { %706 = vrot.lane.b32.xlu0 %v3198_v18, %s2283_s1  ;;  %610 = vrot.lane.b32.xlu2 %v3198_v18, %s2277_s10  ;;  %vm3276_vm8 = vmor %vm1205_vm1, %vm1206_vm13 }
 0x350   :  { %563 = vrot.lane.b32.xlu1 %v3198_v18, %s2280_s3  ;;  %v1202_v22 = vsub.f32 1.0, %v1201_v45  ;;  %v1225_v45 = vand.u32 2147483648, %v1115_v29 }
 0x351   :  { %v3222_v2 = vpop.permute.xlu2 %648  ;;  %v1531_v55 = vpop.permute.xlu0 %1530 }
 0x352   :  { %v1523_v3 = vpop.permute.xlu1 %1522 }
 0x353   :  { %v3226_v15 = vsel %vm860_vm2, %v1523_v3, %v1531_v55  ;;  %v3230_v27 = vsel %vm860_vm2, %v1531_v55, %v1523_v3 }
 0x354   :  { %3936 = vst [vmem:[#allocation48_spill] sm:$0xff] %v3226_v15 }
 0x355   :  { %3937 = vst [vmem:[#allocation49_spill] sm:$0xff] %v3230_v27  ;;  %v1216_v27 = vsub.f32 1.0, %v1215_v48 }
 0x357   :  { %810 = vrot.lane.b32.xlu0 %v3198_v18, %s2284_s13  ;;  %698 = vrot.lane.b32.xlu2 %v3168_v12, %s2283_s1  ;;  %v1217_v10 = vmul.f32 %v2188_v51, %v1216_v27  ;;  %v1211_v27 = vand.u32 2147483648, %v1114_v14 }
 0x358   :  { %650 = vrot.lane.b32.xlu1 %v3168_v12, %s2281_s12 }
 0x359   :  { %v3238_v8 = vpop.permute.xlu2 %704  ;;  %v1569_v35 = vpop.permute.xlu0 %1568 }
 0x35a   :  { %v1293_v58 = vpop.permute.xlu1 %1292  ;;  %v3242_v55 = vsel %vm908_vm10, %v1569_v35, %v1577_v1  ;;  %v3246_v3 = vsel %vm908_vm10, %v1577_v1, %v1569_v35  ;;  %v1203_v1 = vmul.f32 %v2190_v43, %v1202_v22 }
 0x35b   :  { %3938 = vst [vmem:[#allocation50_spill] sm:$0xff] %v3242_v55  ;;  %v3251_v0 = vsel %vm612_vm15, %v3101_v59, %v1293_v58  ;;  %v3256_v17 = vsel %vm612_vm15, %v1293_v58, %v3101_v59  ;;  %v1218_v55 = vadd.f32 %v2188_v51, %v1217_v10 }
 0x35c   :  { %3939 = vst [vmem:[#allocation51_spill] sm:$0xff] %v3246_v3  ;;  %v1204_v22 = vadd.f32 %v2190_v43, %v1203_v1 }
 0x35d   :  { %3940 = vst [vmem:[#allocation52_spill] sm:$0xff] %v3251_v0  ;;  %v1209_v0 = vand.u32 2147483647, %v1114_v14  ;;  %v1222_v31 = vsel %vm1221_vm7, %v2188_v51, %v1218_v55 }
 0x35e   :  { %3941 = vst [vmem:[#allocation53_spill] sm:$0xff] %v3256_v17  ;;  %v1223_v17 = vand.u32 2147483647, %v1115_v29  ;;  %v1212_v29 = vor.u32 1.1754944e-38, %v1211_v27 }
 0x35f   :  { %850 = vrot.lane.b32.xlu0 %v3168_v12, %s2285_s14  ;;  %762 = vrot.lane.b32.xlu2 %v3198_v18, %s2282_s0  ;;  %vm1210_vm12 = vcmp.eq.f32.partialorder %v1209_v0, 8.507059e+37 }
 0x360   :  { %754 = vrot.lane.b32.xlu1 %v3168_v12, %s2282_s0  ;;  %vm1224_vm9 = vcmp.eq.f32.partialorder %v1223_v17, 8.507059e+37 }
 0x361   :  { %v3264_v48 = vpop.permute.xlu2 %752  ;;  %v1247_v35 = vpop.permute.xlu0 %1246 }
 0x362   :  { %v1485_v3 = vpop.permute.xlu1 %1484 }
 0x363   :  { %v3269_v58 = vsel %vm812_vm11, %v3139_v53, %v1485_v3  ;;  %v3274_v59 = vsel %vm812_vm11, %v1485_v3, %v3139_v53  ;;  %v1208_v53 = vsel %vm3276_vm8, %v2190_v43, %v1204_v22  ;;  %v1226_v3 = vor.u32 1.1754944e-38, %v1225_v45 }
 0x364   :  { %3942 = vst [vmem:[#allocation54_spill] sm:$0xff] %v3269_v58  ;;  %v1213_v22 = vsel %vm1210_vm12, %v1212_v29, %v1208_v53 }
 0x365   :  { %3943 = vst [vmem:[#allocation55_spill] sm:$0xff] %v3274_v59  ;;  %v1227_v59 = vsel %vm1224_vm9, %v1226_v3, %v1222_v31  ;;  %v3310_v0 = vmul.f32 %v1213_v22, %v3129_v62 }
 0x366   :  { %v3307_v31 = vmul.f32 %v1227_v59, %v3126_v13 }
 0x367   :  { %898 = vrot.lane.b32.xlu0 %v3168_v12, %s2286_s15  ;;  %858 = vrot.lane.b32.xlu2 %v3198_v18, %s2285_s14  ;;  %3949 = vst [vmem:[#allocation59_spill] sm:$0xff] %v3310_v0 }
 0x368   :  { %802 = vrot.lane.b32.xlu1 %v3168_v12, %s2284_s13  ;;  %3948 = vst [vmem:[#allocation58_spill] sm:$0xff] %v3307_v31 }
 0x369   :  { %v801_v14 = vpop.permute.xlu2 %800  ;;  %v554_v1 = vpop.permute.xlu0 %553 }
 0x36a   :  { %v1239_v51 = vpop.permute.xlu1 %1238  ;;  %v3291_v55 = vsel %vm565_vm0, %v554_v1, %v3206_v24  ;;  %v3296_v43 = vsel %vm565_vm0, %v3206_v24, %v554_v1 }
 0x36b   :  { %v3300_v45 = vsel %vm565_vm0, %v1239_v51, %v1247_v35  ;;  %v3304_v17 = vsel %vm565_vm0, %v1247_v35, %v1239_v51 }
 0x36c   :  { %3946 = vst [vmem:[#allocation56_spill] sm:$0xff] %v3300_v45 }
 0x36d   :  { %3947 = vst [vmem:[#allocation57_spill] sm:$0xff] %v3304_v17 }
 0x36f   :  { %906 = vrot.lane.b32.xlu2 %v3198_v18, %s2286_s15  ;;  %1388 = vrot.lane.b32.xlu0 %v3307_v31, %s2283_s1 }
 0x370   :  { %1380 = vrot.lane.b32.xlu1 %v3310_v0, %s2283_s1 }
 0x371   :  { %v1379_v24 = vpop.permute.xlu2 %1378  ;;  %v609_v27 = vpop.permute.xlu0 %608 }
 0x372   :  { %v601_v10 = vpop.permute.xlu1 %600 }
 0x373   :  { %v3320_v35 = vsel %vm612_vm15, %v601_v10, %v609_v27  ;;  %v3324_v13 = vsel %vm612_vm15, %v609_v27, %v601_v10 }
 0x377   :  { %1526 = vrot.lane.b32.xlu0 %v3310_v0, %s2285_s14  ;;  %1334 = vrot.lane.b32.xlu2 %v3310_v0, %s2281_s12 }
 0x378   :  { %1342 = vrot.lane.b32.xlu1 %v3307_v31, %s2281_s12 }
 0x379   :  { %v1341_v62 = vpop.permute.xlu2 %1340  ;;  %v697_v59 = vpop.permute.xlu0 %696 }
 0x37a   :  { %v657_v53 = vpop.permute.xlu1 %656  ;;  %v3335_v3 = vsel %vm708_vm5, %v697_v59, %v3238_v8  ;;  %v3340_v29 = vsel %vm708_vm5, %v3238_v8, %v697_v59 }
 0x37b   :  { %v3345_v1 = vsel %vm660_vm3, %v3222_v2, %v657_v53  ;;  %v3350_v51 = vsel %vm660_vm3, %v657_v53, %v3222_v2 }
 0x37f   :  { %1296 = vrot.lane.b32.xlu0 %v3307_v31, %s2277_s10  ;;  %1534 = vrot.lane.b32.xlu2 %v3307_v31, %s2285_s14 }
 0x380   :  { %1288 = vrot.lane.b32.xlu1 %v3310_v0, %s2277_s10 }
 0x381   :  { %v1525_v8 = vpop.permute.xlu2 %1524  ;;  %v857_v22 = vpop.permute.xlu0 %856 }
 0x382   :  { %v761_v27 = vpop.permute.xlu1 %760 }
 0x383   :  { %v3361_v10 = vsel %vm764_vm6, %v3264_v48, %v761_v27  ;;  %v3366_v2 = vsel %vm764_vm6, %v761_v27, %v3264_v48 }
 0x384   :  { %3950 = vst [vmem:[#allocation60_spill] sm:$0xff] %v3366_v2 }
 0x387   :  { %1572 = vrot.lane.b32.xlu0 %v3310_v0, %s2286_s15  ;;  %1480 = vrot.lane.b32.xlu2 %v3310_v0, %s2284_s13 }
 0x388   :  { %1488 = vrot.lane.b32.xlu1 %v3307_v31, %s2284_s13 }
 0x389   :  { %v1295_v59 = vpop.permute.xlu2 %1294  ;;  %v905_v53 = vpop.permute.xlu0 %904 }
 0x38a   :  { %v809_v17 = vpop.permute.xlu1 %808 }
 0x38b   :  { %v3376_v45 = vsel %vm812_vm11, %v801_v14, %v809_v17  ;;  %v3380_v48 = vsel %vm812_vm11, %v809_v17, %v801_v14 }
 0x38c   :  { %3951 = vst [vmem:[#allocation61_spill] sm:$0xff] %v3380_v48 }
 0x38f   :  { %1250 = vrot.lane.b32.xlu0 %v3307_v31, %s2280_s3  ;;  %1580 = vrot.lane.b32.xlu2 %v3307_v31, %s2286_s15 }
 0x390   :  { %1242 = vrot.lane.b32.xlu1 %v3310_v0, %s2280_s3 }
 0x391   :  { %v1479_v27 = vpop.permute.xlu2 %1478  ;;  %v1333_v58 = vpop.permute.xlu0 %1332 }
 0x392   :  { %v849_v18 = vpop.permute.xlu1 %848  ;;  %v3390_v2 = vsel %vm660_vm3, %v1333_v58, %v1341_v62  ;;  %v3394_v14 = vsel %vm660_vm3, %v1341_v62, %v1333_v58 }
 0x393   :  { %3952 = vst [vmem:[#allocation62_spill] sm:$0xff] %v3390_v2  ;;  %v3398_v17 = vsel %vm860_vm2, %v849_v18, %v857_v22  ;;  %v3402_v15 = vsel %vm860_vm2, %v857_v22, %v849_v18 }
 0x394   :  { %3953 = vst [vmem:[#allocation63_spill] sm:$0xff] %v3394_v14 }
 0x397   :  { %1432 = vrot.lane.b32.xlu0 %v3016_v44, %s2282_s0  ;;  %1440 = vrot.lane.b32.xlu2 %v3037_v7, %s2282_s0 }
 0x398   :  { %1430 = vrot.lane.b32.xlu1 %v2769_v41, %s2282_s0 }
 0x399   :  { %v1579_v2 = vpop.permute.xlu2 %1578  ;;  %v1287_v58 = vpop.permute.xlu0 %1286 }
 0x39a   :  { %v897_v62 = vpop.permute.xlu1 %896  ;;  %v3412_v14 = vsel %vm612_vm15, %v1287_v58, %v1295_v59  ;;  %v3416_v18 = vsel %vm612_vm15, %v1295_v59, %v1287_v58 }
 0x39b   :  { %3954 = vst [vmem:[#allocation64_spill] sm:$0xff] %v3412_v14  ;;  %v3420_v22 = vsel %vm908_vm10, %v897_v62, %v905_v53  ;;  %v3424_v7 = vsel %vm908_vm10, %v905_v53, %v897_v62 }
 0x39c   :  { %3955 = vst [vmem:[#allocation65_spill] sm:$0xff] %v3416_v18 }
 0x39f   :  { %1438 = vrot.lane.b32.xlu0 %v2772_v36, %s2282_s0  ;;  %1434 = vrot.lane.b32.xlu2 %v3310_v0, %s2282_s0 }
 0x3a0   :  { %1442 = vrot.lane.b32.xlu1 %v3307_v31, %s2282_s0  ;;  %v238_v31 = vld [vmem:[%s3874_s6] sm:$0xff] }
 0x3a1   :  { %v1571_v41 = vpop.permute.xlu0 %1570  ;;  %v3432_v59 = vpop.permute.xlu2 %555 }
 0x3a2   :  { %v1387_v58 = vpop.permute.xlu1 %1386  ;;  %v3436_v44 = vsel %vm908_vm10, %v1571_v41, %v1579_v2  ;;  %v3440_v53 = vsel %vm908_vm10, %v1579_v2, %v1571_v41 }
 0x3a3   :  { %3956 = vst [vmem:[#allocation66_spill] sm:$0xff] %v3436_v44  ;;  %v3444_v62 = vsel %vm708_vm5, %v1379_v24, %v1387_v58  ;;  %v3448_v36 = vsel %vm708_vm5, %v1387_v58, %v1379_v24 }
 0x3a4   :  { %3957 = vst [vmem:[#allocation67_spill] sm:$0xff] %v3440_v53 }
 0x3a5   :  { %3958 = vst [vmem:[#allocation68_spill] sm:$0xff] %v3448_v36 }
 0x3a7   :  { %1764 = vperm.xlu0 %2110, %v238_v31   ;;  %1428 = vrot.lane.b32.xlu2 %v2631_v50, %s2282_s0  ;;  %v239_v31 = vld [vmem:[%s3874_s6 + $0x8] sm:$0xff] }
 0x3a8   :  { %1436 = vrot.lane.b32.xlu1 %v2634_v42, %s2282_s0 }
 0x3a9   :  { %v1249_v41 = vpop.permute.xlu0 %1248  ;;  %v611_v58 = vpop.permute.xlu2 %610 }
 0x3aa   :  { %v1533_v2 = vpop.permute.xlu1 %1532 }
 0x3ab   :  { %v3459_v0 = vsel %vm860_vm2, %v1525_v8, %v1533_v2  ;;  %v3463_v24 = vsel %vm860_vm2, %v1533_v2, %v1525_v8 }
 0x3ac   :  { %3959 = vst [vmem:[#allocation69_spill] sm:$0xff] %v3459_v0  ;;  %v670_v0 = vld [vmem:[#allocation6 + $0x2] ss:$8 sm:$0x3] }
 0x3ad   :  { %3960 = vst [vmem:[#allocation70_spill] sm:$0xff] %v3463_v24  ;;  %v718_v24 = vld [vmem:[#allocation6 + $0x3] ss:$8 sm:$0x3] }
 0x3ae   :  { %v721_v60 = vperm.slane %v718_v24, 1 }
 0x3af   :  { %1769 = vperm.xlu2 %2109, %v239_v31  }
 0x3b1   :  { %v603_v50 = vpop.permute.xlu0 %602  ;;  %v699_v44 = vpop.permute.xlu2 %698 }
 0x3b2   :  { %v1487_v53 = vpop.permute.xlu1 %1486 }
 0x3b3   :  { %v3470_v42 = vsel %vm812_vm11, %v1479_v27, %v1487_v53  ;;  %v3474_v18 = vsel %vm812_vm11, %v1487_v53, %v1479_v27 }
 0x3b4   :  { %3961 = vst [vmem:[#allocation71_spill] sm:$0xff] %v3470_v42  ;;  %v720_v42 = vperm.slane %v718_v24, 0 }
 0x3b5   :  { %3962 = vst [vmem:[#allocation72_spill] sm:$0xff] %v3474_v18 }
 0x3b6   :  { %v726_v24 = vmul.f32 %v720_v42, %v3120_v57 }
 0x3b9   :  { %v659_v14 = vpop.permute.xlu0 %658  ;;  %v3484_v36 = vpop.permute.xlu2 %762 }
 0x3ba   :  { %v1241_v8 = vpop.permute.xlu1 %1240 }
 0x3bb   :  { %v3478_v2 = vsel %vm565_vm0, %v1241_v8, %v1249_v41  ;;  %v3482_v31 = vsel %vm565_vm0, %v1249_v41, %v1241_v8  ;;  %v728_v41 = vmul.f32 %v720_v42, %v3340_v29  ;;  %v729_v8 = vmul.f32 %v721_v60, %v3335_v3 }
 0x3bc   :  { %3963 = vst [vmem:[#allocation73_spill] sm:$0xff] %v3478_v2  ;;  %v673_v3 = vperm.slane %v670_v0, 1 }
 0x3bd   :  { %3964 = vst [vmem:[#allocation74_spill] sm:$0xff] %v3482_v31  ;;  %v727_v31 = vmul.f32 %v721_v60, %v3116_v23 }
 0x3c1   :  { %v707_v54 = vpop.permute.xlu0 %706 }
 0x3c2   :  { %v3486_v12 = vpop.permute.xlu1 %563  ;;  %v712_v27 = vsel %vm708_vm5, %v699_v44, %v707_v54  ;;  %v716_v53 = vsel %vm708_vm5, %v707_v54, %v699_v44  ;;  %v724_v44 = vmul.f32 %v720_v42, %v2811_v30  ;;  %v725_v54 = vmul.f32 %v721_v60, %v2806_v21  ;;  %v622_v30 = vld [vmem:[#allocation6 + $0x1] ss:$8 sm:$0x3] }
 0x3c3   :  { %v730_v18 = vmul.f32 %v720_v42, %v716_v53  ;;  %v731_v2 = vmul.f32 %v721_v60, %v712_v27  ;;  %v681_v21 = vmul.f32 %v673_v3, %v3345_v1  ;;  %v3508_v60 = vld [vmem:[#allocation6 + $0x6] ss:$8 sm:$0x3]  ;;  %v679_v53 = vmul.f32 %v673_v3, %v3053_v9 }
 0x3c4   :  { %v872_v1 = vperm.slane %v3508_v60, 0 }
 0x3c5   :  { %1778 = vmatpush.msra.mxu1 %v730_v18  ;;  %1847 = vmatpush.msrb.mxu0 %v731_v2  ;;  %v3500_v18 = vpop.permute.xlu2 %858  ;;  %v672_v2 = vperm.slane %v670_v0, 0 }
 0x3c7   :  { %1779 = vmatpush.msra.mxu1 %v728_v41  ;;  %1848 = vmatpush.msrb.mxu0 %v729_v8  ;;  %v680_v42 = vmul.f32 %v672_v2, %v3350_v51  ;;  %v678_v0 = vmul.f32 %v672_v2, %v3058_v11  ;;  %v620_v41 = vsel %vm612_vm15, %v611_v58, %v603_v50  ;;  %v624_v51 = vperm.slane %v622_v30, 0 }
 0x3c8   :  { %v677_v11 = vmul.f32 %v673_v3, %v2786_v37 }
 0x3c9   :  { %1780 = vmatpush.msra.mxu1 %v726_v24  ;;  %1849 = vmatpush.msrb.mxu0 %v727_v31  ;;  %v3496_v48 = vpop.permute.xlu0 %810  ;;  %v632_v37 = vmul.f32 %v624_v51, %v3324_v13  ;;  %v573_v13 = vsel %vm565_vm0, %v3486_v12, %v3432_v59 }
 0x3ca   :  { %v651_v29 = vpop.permute.xlu1 %650 }
 0x3cb   :  { %v664_v27 = vsel %vm660_vm3, %v651_v29, %v659_v14  ;;  %v668_v23 = vsel %vm660_vm3, %v659_v14, %v651_v29  ;;  %1781 = vmatpush.msra.mxu1 %v724_v44  ;;  %1850 = vmatpush.msrb.mxu0 %v725_v54  ;;  %v616_v14 = vsel %vm612_vm15, %v603_v50, %v611_v58  ;;  %v625_v54 = vperm.slane %v622_v30, 1 }
 0x3cc   :  { %v682_v57 = vmul.f32 %v672_v2, %v668_v23  ;;  %v683_v31 = vmul.f32 %v673_v3, %v664_v27  ;;  %v676_v44 = vmul.f32 %v672_v2, %v2790_v39  ;;  %v634_v29 = vmul.f32 %v624_v51, %v620_v41  ;;  %v3532_v2 = vld [vmem:[#allocation6 + $0x7] ss:$8 sm:$0x3] }
 0x3cd   :  { %v3527_v58 = vpop.permute.xlu2 %906  ;;  %v635_v27 = vmul.f32 %v625_v54, %v616_v14  ;;  %v880_v23 = vmul.f32 %v872_v1, %v3398_v17  ;;  %v633_v39 = vmul.f32 %v625_v54, %v3320_v35  ;;  %v878_v3 = vmul.f32 %v872_v1, %v3157_v26 }
 0x3ce   :  { %1782 = vmatpush.msra.mxu1 %v682_v57  ;;  %1851 = vmatpush.msrb.mxu0 %v683_v31  ;;  %v574_v57 = vld [vmem:[#allocation6] ss:$8 sm:$0x3]  ;;  %v3535_v31 = vld [vmem:[#allocation6 + $0x5] ss:$8 sm:$0x3]  ;;  %v631_v17 = vmul.f32 %v625_v54, %v3081_v16  ;;  %v628_v30 = vmul.f32 %v624_v51, %v2756_v32  ;;  %v876_v26 = vmul.f32 %v872_v1, %v2895_v56 }
 0x3cf   :  { %v824_v14 = vperm.slane %v3535_v31, 0 }
 0x3d0   :  { %1783 = vmatpush.msra.mxu1 %v680_v42  ;;  %1852 = vmatpush.msrb.mxu0 %v681_v21  ;;  %v630_v42 = vmul.f32 %v624_v51, %v3086_v46  ;;  %v576_v21 = vperm.slane %v574_v57, 0  ;;  %v569_v46 = vsel %vm565_vm0, %v3432_v59, %v3486_v12  ;;  %v577_v12 = vperm.slane %v574_v57, 1 }
 0x3d1   :  { %v3516_v8 = vpop.permute.xlu0 %850  ;;  %v921_v57 = vperm.slane %v3532_v2, 1 }
 0x3d2   :  { %v3519_v24 = vpop.permute.xlu1 %754  ;;  %1784 = vmatpush.msra.mxu1 %v678_v0  ;;  %1853 = vmatpush.msrb.mxu0 %v679_v53  ;;  %v864_v9 = vsel %vm860_vm2, %v3516_v8, %v3500_v18  ;;  %v920_v0 = vperm.slane %v3532_v2, 0  ;;  %v629_v53 = vmul.f32 %v625_v54, %v2752_v20  ;;  %v586_v59 = vmul.f32 %v576_v21, %v573_v13 }
 0x3d3   :  { %v882_v50 = vmul.f32 %v872_v1, %v864_v9  ;;  %v587_v20 = vmul.f32 %v577_v12, %v569_v46  ;;  %v832_v9 = vmul.f32 %v824_v14, %v3376_v45  ;;  %v585_v54 = vmul.f32 %v577_v12, %v3291_v55 }
 0x3d4   :  { %1785 = vmatpush.msra.mxu1 %v676_v44  ;;  %1854 = vmatpush.msrb.mxu0 %v677_v11  ;;  %v928_v1 = vmul.f32 %v920_v0, %v3420_v22  ;;  %v584_v11 = vmul.f32 %v576_v21, %v3296_v43  ;;  %v830_v22 = vmul.f32 %v824_v14, %v3145_v49 }
 0x3d5   :  { %1801 = vmatpush.msra.mxu2 %v882_v50  ;;  %v3562_v44 = vpop.permute.xlu2 %1334  ;;  %v926_v50 = vmul.f32 %v920_v0, %v3190_v34  ;;  %v868_v43 = vsel %vm860_vm2, %v3500_v18, %v3516_v8  ;;  %v583_v55 = vmul.f32 %v577_v12, %v3062_v6  ;;  %v924_v45 = vmul.f32 %v920_v0, %v2860_v47  ;;  %v3594_v6 = vld [vmem:[%s3873_s5] sm:$0xff] }
 0x3d6   :  { %1786 = vmatpush.msra.mxu1 %v634_v29  ;;  %1855 = vmatpush.msrb.mxu0 %v635_v27  ;;  %v582_v29 = vmul.f32 %v576_v21, %v3066_v28  ;;  %v580_v27 = vmul.f32 %v576_v21, %v2766_v33  ;;  %v768_v33 = vsel %vm764_vm6, %v3519_v24, %v3484_v36  ;;  %v873_v47 = vperm.slane %v3508_v60, 1 }
 0x3d7   :  { %1802 = vmatpush.msra.mxu2 %v880_v23  ;;  %v3571_v23 = vld [vmem:[#allocation6 + $0x4] ss:$8 sm:$0x3]  ;;  %v828_v18 = vmul.f32 %v824_v14, %v2870_v61  ;;  %v581_v8 = vmul.f32 %v577_v12, %v2761_v40  ;;  %v3605_v40 = vld [vmem:[#allocation6 + $0x6] ss:$8 sm:$0x3]  ;;  %v929_v2 = vmul.f32 %v921_v57, %v3424_v7 }
 0x3d8   :  { %1787 = vmatpush.msra.mxu1 %v632_v37  ;;  %1856 = vmatpush.msrb.mxu0 %v633_v39  ;;  %v883_v37 = vmul.f32 %v873_v47, %v868_v43  ;;  %v881_v60 = vmul.f32 %v873_v47, %v3402_v15  ;;  %v879_v21 = vmul.f32 %v873_v47, %v3162_v38  ;;  %v3967_v12 = vld [vmem:[#allocation42_spill] sm:$0xff] }
 0x3d9   :  { %1803 = vmatpush.msra.mxu2 %v878_v3  ;;  %v899_v35 = vpop.permute.xlu0 %898  ;;  %v3601_v3 = vld [vmem:[#allocation6 + $0x3] ss:$8 sm:$0x3] }
 0x3da   :  { %v3550_v16 = vpop.permute.xlu1 %802  ;;  %1788 = vmatpush.msra.mxu1 %v630_v42  ;;  %1857 = vmatpush.msrb.mxu0 %v631_v17  ;;  %v912_v32 = vsel %vm908_vm10, %v899_v35, %v3527_v58  ;;  %v916_v28 = vsel %vm908_vm10, %v3527_v58, %v899_v35  ;;  %v776_v58 = vperm.slane %v3571_v23, 0  ;;  %v1401_v13 = vperm.slane %v3601_v3, 1 }
 0x3db   :  { %v816_v56 = vsel %vm812_vm11, %v3550_v16, %v3496_v48  ;;  %1804 = vmatpush.msra.mxu2 %v876_v26  ;;  %v930_v41 = vmul.f32 %v920_v0, %v912_v32  ;;  %v931_v61 = vmul.f32 %v921_v57, %v916_v28  ;;  %v927_v35 = vmul.f32 %v921_v57, %v3195_v5 }
 0x3dc   :  { %1789 = vmatpush.msra.mxu1 %v628_v30  ;;  %1858 = vmatpush.msrb.mxu0 %v629_v53  ;;  %v834_v51 = vmul.f32 %v824_v14, %v816_v56  ;;  %v786_v39 = vmul.f32 %v776_v58, %v768_v33  ;;  %v784_v42 = vmul.f32 %v776_v58, %v3361_v10  ;;  %v1546_v10 = vperm.slane %v3605_v40, 0  ;;  %v3645_v56 = vld [vmem:[#allocation6 + $0x2] ss:$8 sm:$0x3]  ;;  %v3973_v33 = vld [vmem:[#allocation21_spill] sm:$0xff] }
 0x3dd   :  { %1836 = vmatpush.msra.mxu3 %v930_v41  ;;  %v3609_v17 = vpop.permute.xlu2 %1534  ;;  %v782_v7 = vmul.f32 %v776_v58, %v3107_v25  ;;  %v820_v38 = vsel %vm812_vm11, %v3496_v48, %v3550_v16  ;;  %v877_v5 = vmul.f32 %v873_v47, %v2900_v63  ;;  %v925_v25 = vmul.f32 %v921_v57, %v2864_v19  ;;  %v3638_v48 = vld [vmem:[%s3873_s5 + $0x18] sm:$0xff] }
 0x3de   :  { %1790 = vmatpush.msra.mxu1 %v586_v59  ;;  %1805 = vmatpush.msra.mxu2 %v834_v51  ;;  %v780_v46 = vmul.f32 %v776_v58, %v2833_v4  ;;  %v825_v16 = vperm.slane %v3535_v31, 1  ;;  %v1409_v19 = vmul.f32 %v1401_v13, %v3444_v62  ;;  %v3965_v4 = vld [vmem:[#allocation61_spill] sm:$0xff]  ;;  %v3968_v59 = vld [vmem:[#allocation43_spill] sm:$0xff]  ;;  %v3970_v62 = vld [vmem:[#allocation48_spill] sm:$0xff]  ;;  %v777_v57 = vperm.slane %v3571_v23, 1 }
 0x3df   :  { %1859 = vmatpush.msrb.mxu0 %v587_v20  ;;  %1837 = vmatpush.msra.mxu3 %v928_v1  ;;  %v3966_v41 = vld [vmem:[#allocation69_spill] sm:$0xff]  ;;  %v1407_v51 = vmul.f32 %v1401_v13, %v3968_v59  ;;  %v3977_v23 = vld [vmem:[#allocation62_spill] sm:$0xff] }
 0x3e0   :  { %1791 = vmatpush.msra.mxu1 %v584_v11  ;;  %1806 = vmatpush.msra.mxu2 %v832_v9  ;;  %v835_v32 = vmul.f32 %v825_v16, %v820_v38  ;;  %v833_v63 = vmul.f32 %v825_v16, %v3965_v4  ;;  %v1554_v31 = vmul.f32 %v1546_v10, %v3966_v41  ;;  %v3969_v20 = vld [vmem:[#allocation41_spill] sm:$0xff]  ;;  %v3981_v38 = vld [vmem:[#allocation28_spill] sm:$0xff] }
 0x3e1   :  { %1860 = vmatpush.msrb.mxu0 %v585_v54  ;;  %1838 = vmatpush.msra.mxu3 %v926_v50  ;;  %v3578_v34 = vpop.permute.xlu0 %1388  ;;  %v831_v1 = vmul.f32 %v825_v16, %v3969_v20  ;;  %v1552_v9 = vmul.f32 %v1546_v10, %v3970_v62  ;;  %v829_v28 = vmul.f32 %v825_v16, %v3973_v33  ;;  %v3985_v20 = vld [vmem:[#allocation27_spill] sm:$0xff]  ;;  %v3735_v62 = vld [vmem:[%s3873_s5 + $0x20] sm:$0xff] }
 0x3e2   :  { %v3588_v49 = vpop.permute.xlu1 %1380  ;;  %1792 = vmatpush.msra.mxu1 %v582_v29  ;;  %1807 = vmatpush.msra.mxu2 %v830_v22  ;;  %v3971_v29 = vld [vmem:[#allocation23_spill] sm:$0xff] }
 0x3e3   :  { %1861 = vmatpush.msrb.mxu0 %v583_v55  ;;  %1839 = vmatpush.msra.mxu3 %v924_v45  ;;  %v1393_v15 = vsel %vm708_vm5, %v3588_v49, %v3578_v34  ;;  %v1355_v55 = vperm.slane %v3645_v56, 1  ;;  %v772_v45 = vsel %vm764_vm6, %v3484_v36, %v3519_v24  ;;  %v1397_v47 = vsel %vm708_vm5, %v3578_v34, %v3588_v49  ;;  %v3975_v36 = vld [vmem:[#allocation24_spill] sm:$0xff]  ;;  %v3691_v49 = vld [vmem:[#allocation6 + $0x5] ss:$8 sm:$0x3] }
 0x3e4   :  { %1793 = vmatpush.msra.mxu1 %v580_v27  ;;  %1808 = vmatpush.msra.mxu2 %v828_v18  ;;  %v1411_v53 = vmul.f32 %v1401_v13, %v1393_v15  ;;  %v3972_v27 = vld [vmem:[#allocation26_spill] sm:$0xff]  ;;  %v3673_v18 = vld [vmem:[%s3873_s5 + $0x10] sm:$0xff]  ;;  %v1550_v24 = vmul.f32 %v1546_v10, %v3975_v36  ;;  %v787_v34 = vmul.f32 %v777_v57, %v772_v45  ;;  %v3988_v45 = vld [vmem:[#allocation45_spill] sm:$0xff] }
 0x3e5   :  { %1862 = vmatpush.msrb.mxu0 %v581_v8  ;;  %1794 = vmatmul.f32.vlgmr.msra.gmra.mxu1 %v3594_v6  ;;  %v3654_v54 = vpop.permute.xlu2 %1480  ;;  %v1405_v43 = vmul.f32 %v1401_v13, %v3972_v27  ;;  %v3974_v8 = vld [vmem:[#allocation16_spill] sm:$0xff]  ;;  %v3696_v13 = vld [vmem:[#allocation6 + $0x1] ss:$8 sm:$0x3] }
 0x3e6   :  { %1863 = vmatmul.f32.vlgmr.msrb.gmra.mxu0 %v3594_v6  ;;  %1870 = vmatpush.msrb.mxu3 %v883_v37  ;;  %v3685_v37 = vld [vmem:[%s3873_s5 + $0x8] sm:$0xff]  ;;  %v1309_v4 = vperm.slane %v3696_v13, 1  ;;  %v3991_v36 = vld [vmem:[#allocation54_spill] sm:$0xff] }
 0x3e7   :  { %1905 = vmatpush.msrb.mxu1 %v931_v61  ;;  %1809 = vmatpush.msra.mxu2 %v786_v39  ;;  %v1400_v61 = vperm.slane %v3601_v3, 0  ;;  %v3976_v39 = vld [vmem:[#allocation12_spill] sm:$0xff]  ;;  %v3979_v3 = vld [vmem:[#allocation46_spill] sm:$0xff]  ;;  %v3987_v27 = vld [vmem:[#allocation71_spill] sm:$0xff] }
 0x3e8   :  { %1871 = vmatpush.msrb.mxu3 %v881_v60  ;;  %v1363_v60 = vmul.f32 %v1355_v55, %v3977_v23  ;;  %v1361_v15 = vmul.f32 %v1355_v55, %v3979_v3  ;;  %v3994_v23 = vld [vmem:[#allocation47_spill] sm:$0xff] }
 0x3e9   :  { %1906 = vmatpush.msrb.mxu1 %v929_v2  ;;  %1810 = vmatpush.msra.mxu2 %v784_v42  ;;  %v3619_v30 = vpop.permute.xlu0 %1526  ;;  %v1410_v2 = vmul.f32 %v1400_v61, %v1397_v47  ;;  %v3978_v42 = vld [vmem:[#allocation60_spill] sm:$0xff]  ;;  %v3745_v47 = vld [vmem:[#allocation6 + $0x7] ss:$8 sm:$0x3] }
 0x3ea   :  { %1872 = vmatpush.msrb.mxu3 %v879_v21  ;;  %v3626_v26 = vpop.permute.xlu1 %1342  ;;  %v1539_v0 = vsel %vm860_vm2, %v3619_v30, %v3609_v17  ;;  %v785_v21 = vmul.f32 %v777_v57, %v3978_v42  ;;  %v3995_v42 = vld [vmem:[#allocation34_spill] sm:$0xff] }
 0x3eb   :  { %1907 = vmatpush.msrb.mxu1 %v927_v35  ;;  %1811 = vmatpush.msra.mxu2 %v782_v7  ;;  %v1556_v14 = vmul.f32 %v1546_v10, %v1539_v0  ;;  %v1347_v50 = vsel %vm660_vm3, %v3562_v44, %v3626_v26  ;;  %v3980_v35 = vld [vmem:[#allocation68_spill] sm:$0xff]  ;;  %v1359_v0 = vmul.f32 %v1355_v55, %v3981_v38  ;;  %v3996_v38 = vld [vmem:[#allocation17_spill] sm:$0xff] }
 0x3ec   :  { %1873 = vmatpush.msrb.mxu3 %v877_v5  ;;  %v1365_v58 = vmul.f32 %v1355_v55, %v1347_v50  ;;  %v1408_v7 = vmul.f32 %v1400_v61, %v3980_v35  ;;  %v1500_v5 = vperm.slane %v3691_v49, 0  ;;  %v1351_v41 = vsel %vm660_vm3, %v3626_v26, %v3562_v44  ;;  %v3986_v50 = vld [vmem:[#allocation64_spill] sm:$0xff]  ;;  %v1260_v55 = vld [vmem:[#allocation6] ss:$8 sm:$0x3] }
 0x3ed   :  { %1908 = vmatpush.msrb.mxu1 %v925_v25  ;;  %1812 = vmatpush.msra.mxu2 %v780_v46  ;;  %v3982_v25 = vld [vmem:[#allocation40_spill] sm:$0xff]  ;;  %v1354_v44 = vperm.slane %v3645_v56, 0  ;;  %v3989_v56 = vld [vmem:[#allocation63_spill] sm:$0xff]  ;;  %v1263_v3 = vperm.slane %v1260_v55, 1 }
 0x3ee   :  { %1866 = vmatmul.f32.gmra.mxu0 %v3638_v48  ;;  %1797 = vmatmul.f32.gmra.mxu1 %v3638_v48  ;;  %v783_v46 = vmul.f32 %v777_v57, %v3982_v25  ;;  %v1308_v25 = vperm.slane %v3696_v13, 0  ;;  %v4000_v13 = vld [vmem:[#allocation65_spill] sm:$0xff] }
 0x3ef   :  { %1985 = vmatpush.msra.mxu1 %v1411_v53  ;;  %1874 = vmatpush.msrb.mxu3 %v835_v32  ;;  %v1362_v33 = vmul.f32 %v1354_v44, %v3989_v56 }
 0x3f0   :  { %1813 = vmatpush.msra.mxu2 %v3967_v12  ;;  %1939 = vmatpush.msra.mxu0 %v1556_v14  ;;  %v3983_v14 = vld [vmem:[#allocation44_spill] sm:$0xff] }
 0x3f1   :  { %1986 = vmatpush.msra.mxu1 %v1409_v19  ;;  %1875 = vmatpush.msrb.mxu3 %v833_v63  ;;  %v3651_v11 = vpop.permute.xlu0 %1296  ;;  %v1406_v32 = vmul.f32 %v1400_v61, %v3983_v14  ;;  %v3719_v63 = vpop.permute.xlu2 %1580  ;;  %v3984_v12 = vld [vmem:[#allocation20_spill] sm:$0xff] }
 0x3f2   :  { %1814 = vmatpush.msra.mxu2 %v3971_v29  ;;  %1940 = vmatpush.msra.mxu0 %v1554_v31  ;;  %v3661_v22 = vpop.permute.xlu1 %1288  ;;  %v781_v59 = vmul.f32 %v777_v57, %v3984_v12  ;;  %v1317_v29 = vmul.f32 %v1309_v4, %v3986_v50  ;;  %v1547_v50 = vperm.slane %v3605_v40, 1 }
 0x3f3   :  { %1987 = vmatpush.msra.mxu1 %v1407_v51  ;;  %1876 = vmatpush.msrb.mxu3 %v831_v1  ;;  %v1301_v53 = vsel %vm612_vm15, %v3661_v22, %v3651_v11  ;;  %v3729_v51 = vld [vmem:[%s3873_s5 + $0x28] sm:$0xff]  ;;  %v1404_v1 = vmul.f32 %v1400_v61, %v3985_v20  ;;  %v3992_v61 = vld [vmem:[#allocation32_spill] sm:$0xff]  ;;  %v4002_v20 = vld [vmem:[#allocation50_spill] sm:$0xff]  ;;  %s2287_s5 = smov [#allocation8]  }
 0x3f4   :  { %1815 = vmatpush.msra.mxu2 %v3974_v8  ;;  %1941 = vmatpush.msra.mxu0 %v1552_v9  ;;  %v1319_v26 = vmul.f32 %v1309_v4, %v1301_v53  ;;  %v1364_v9 = vmul.f32 %v1354_v44, %v1351_v41  ;;  %v3990_v8 = vld [vmem:[#allocation52_spill] sm:$0xff]  ;;  %v3998_v53 = vld [vmem:[#allocation13_spill] sm:$0xff]  ;;  %s2067_s29 = sshll.u32 %s2287_s5, 4  ;;  %s2068_s29 = int_to_ptr.vmem [resolvable:$true] %s2067_s29 }
 0x3f5   :  { %1988 = vmatpush.msra.mxu1 %v1405_v43  ;;  %1877 = vmatpush.msrb.mxu3 %v829_v28  ;;  %v1508_v43 = vmul.f32 %v1500_v5, %v3987_v27  ;;  %v1315_v57 = vmul.f32 %v1309_v4, %v3990_v8 }
 0x3f6   :  { %1816 = vmatpush.msra.mxu2 %v3976_v39  ;;  %2087 = vmatmul.msk.f32.vlgmr.msra.gmra.mxu3 %vm188_vm4, %v3673_v18  ;;  %v1313_v39 = vmul.f32 %v1309_v4, %v3992_v61  ;;  %v1316_v4 = vmul.f32 %v1308_v25, %v4000_v13  ;;  %v4008_v61 = vld [vmem:[#allocation70_spill] sm:$0xff] }
 0x3f7   :  { %1942 = vmatpush.msra.mxu0 %v1550_v24  ;;  %1989 = vmatpush.msra.mxu1 %v1365_v58  ;;  %v1506_v24 = vmul.f32 %v1500_v5, %v3991_v36 }
 0x3f8   :  { %1817 = vmatmul.f32.vlgmr.msra.gmra.mxu2 %v3685_v37  ;;  %1878 = vmatpush.msrb.mxu3 %v787_v34  ;;  %v3993_v34 = vld [vmem:[#allocation22_spill] sm:$0xff] }
 0x3f9   :  { %1916 = vmatpush.msrb.mxu2 %v1410_v2  ;;  %1990 = vmatpush.msra.mxu1 %v1363_v60  ;;  %v3700_v10 = vpop.permute.xlu0 %1572  ;;  %v1360_v60 = vmul.f32 %v1354_v44, %v3994_v23  ;;  %v4010_v23 = vld [vmem:[#allocation49_spill] sm:$0xff] }
 0x3fa   :  { %1879 = vmatpush.msrb.mxu3 %v785_v21  ;;  %v3705_v16 = vpop.permute.xlu1 %1488  ;;  %2089 = vmatmul.msk.f32.vlgmr.msrb.gmra.mxu1 %vm188_vm4, %v3673_v18  ;;  %v1504_v21 = vmul.f32 %v1500_v5, %v3995_v42  ;;  %v1585_v35 = vsel %vm908_vm10, %v3700_v10, %v3719_v63  ;;  %v1501_v42 = vperm.slane %v3691_v49, 1 }
 0x3fb   :  { %1917 = vmatpush.msrb.mxu2 %v1408_v7  ;;  %1991 = vmatpush.msra.mxu1 %v1361_v15  ;;  %v1493_v19 = vsel %vm812_vm11, %v3654_v54, %v3705_v16  ;;  %v1305_v15 = vsel %vm612_vm15, %v3651_v11, %v3661_v22  ;;  %v1592_v7 = vperm.slane %v3745_v47, 0 }
 0x3fc   :  { %1880 = vmatpush.msrb.mxu3 %v783_v46  ;;  %v1510_v31 = vmul.f32 %v1500_v5, %v1493_v19  ;;  %v3767_v46 = vpop.permute.xlu2 %1440  ;;  %v1318_v14 = vmul.f32 %v1308_v25, %v1305_v15 }
 0x3fd   :  { %1918 = vmatpush.msrb.mxu2 %v1406_v32  ;;  %1992 = vmatpush.msra.mxu1 %v1359_v0  ;;  %v3997_v0 = vld [vmem:[#allocation29_spill] sm:$0xff]  ;;  %v1602_v22 = vmul.f32 %v1592_v7, %v1585_v35  ;;  %v3999_v32 = vld [vmem:[#allocation66_spill] sm:$0xff] }
 0x3fe   :  { %1881 = vmatpush.msrb.mxu3 %v781_v59  ;;  %1943 = vmatpush.msra.mxu0 %v1510_v31  ;;  %v1358_v5 = vmul.f32 %v1354_v44, %v3997_v0  ;;  %v1600_v19 = vmul.f32 %v1592_v7, %v3999_v32  ;;  %v4001_v31 = vld [vmem:[#allocation73_spill] sm:$0xff]  ;;  %v1543_v44 = vsel %vm860_vm2, %v3609_v17, %v3619_v30 }
 0x3ff   :  { %1919 = vmatpush.msrb.mxu2 %v1404_v1  ;;  %2088 = vmatmul.msk.f32.gmra.mxu3 %vm188_vm4, %v3729_v51  ;;  %v1271_v12 = vmul.f32 %v1263_v3, %v4001_v31  ;;  %v1598_v1 = vmul.f32 %v1592_v7, %v4002_v20  ;;  %v4007_v17 = vld [vmem:[#allocation37_spill] sm:$0xff]  ;;  %v1557_v36 = vmul.f32 %v1547_v50, %v1543_v44 }
 0x400   :  { %1993 = vmatpush.msra.mxu1 %v1319_v26  ;;  %1820 = vmatmul.f32.gmra.mxu2 %v3735_v62  ;;  %v4003_v26 = vld [vmem:[#allocation53_spill] sm:$0xff]  ;;  %v1267_v30 = vmul.f32 %v1263_v3, %v4007_v17 }
 0x401   :  { %1882 = vmatpush.msrb.mxu3 %v3988_v45  ;;  %1920 = vmatpush.msrb.mxu2 %v1364_v9  ;;  %v1251_v28 = vpop.permute.xlu0 %1250  ;;  %v1314_v9 = vmul.f32 %v1308_v25, %v4003_v26  ;;  %v4005_v45 = vld [vmem:[#allocation30_spill] sm:$0xff] }
 0x402   :  { %1994 = vmatpush.msra.mxu1 %v1317_v29  ;;  %1944 = vmatpush.msra.mxu0 %v1508_v43  ;;  %v1243_v58 = vpop.permute.xlu1 %1242  ;;  %v4004_v29 = vld [vmem:[#allocation56_spill] sm:$0xff]  ;;  %v1596_v56 = vmul.f32 %v1592_v7, %v4005_v45 }
 0x403   :  { %1883 = vmatpush.msrb.mxu3 %v3993_v34  ;;  %1921 = vmatpush.msrb.mxu2 %v1362_v33  ;;  %v1255_v2 = vsel %vm565_vm0, %v1243_v58, %v1251_v28  ;;  %v1269_v27 = vmul.f32 %v1263_v3, %v4004_v29  ;;  %v1259_v43 = vsel %vm565_vm0, %v1251_v28, %v1243_v58  ;;  %v4006_v33 = vld [vmem:[#allocation33_spill] sm:$0xff]  ;;  %v4009_v28 = vld [vmem:[#allocation74_spill] sm:$0xff] }
 0x404   :  { %1995 = vmatpush.msra.mxu1 %v1315_v57  ;;  %1945 = vmatpush.msra.mxu0 %v1506_v24  ;;  %v1273_v11 = vmul.f32 %v1263_v3, %v1255_v2  ;;  %v1312_v8 = vmul.f32 %v1308_v25, %v4006_v33  ;;  %v1262_v57 = vperm.slane %v1260_v55, 0  ;;  %v1452_v24 = vld [vmem:[#allocation6 + $0x4] ss:$8 sm:$0x3]  ;;  %v1435_v34 = vpop.permute.xlu2 %1434  ;;  %v1553_v55 = vmul.f32 %v1547_v50, %v4010_v23  ;;  %v4011_v3 = vld [vmem:[#allocation57_spill] sm:$0xff] }
 0x405   :  { %1884 = vmatpush.msrb.mxu3 %v3996_v38  ;;  %1922 = vmatpush.msrb.mxu2 %v1360_v60  ;;  %v1454_v60 = vperm.slane %v1452_v24, 0  ;;  %v4012_v38 = vld [vmem:[#allocation25_spill] sm:$0xff]  ;;  %v4013_v25 = vld [vmem:[#allocation38_spill] sm:$0xff]  ;;  %v1455_v29 = vperm.slane %v1452_v24, 1 }
 0x406   :  { %1996 = vmatpush.msra.mxu1 %v1313_v39  ;;  %1946 = vmatpush.msra.mxu0 %v1504_v21  ;;  %v1272_v40 = vmul.f32 %v1262_v57, %v1259_v43  ;;  %v1555_v39 = vmul.f32 %v1547_v50, %v4008_v61  ;;  %v1270_v58 = vmul.f32 %v1262_v57, %v4009_v28  ;;  %v4019_v43 = vld [vmem:[#allocation31_spill] sm:$0xff]  ;;  %v4023_v24 = vld [vmem:[#allocation14_spill] sm:$0xff] }
 0x407   :  { %1885 = vmatpush.msrb.mxu3 %v3998_v53  ;;  %1923 = vmatpush.msrb.mxu2 %v1358_v5  ;;  %v1497_v21 = vsel %vm812_vm11, %v3705_v16, %v3654_v54  ;;  %v1268_v15 = vmul.f32 %v1262_v57, %v4011_v3  ;;  %v1551_v0 = vmul.f32 %v1547_v50, %v4012_v38  ;;  %v1593_v16 = vperm.slane %v3745_v47, 1  ;;  %v4027_v61 = vld [vmem:[#allocation15_spill] sm:$0xff] }
 0x408   :  { %1886 = vmatmul.f32.vlgmr.msrb.gmra.mxu3 %v3685_v37  ;;  %2090 = vmatmul.msk.f32.gmra.mxu1 %vm188_vm4, %v3729_v51  ;;  %v1589_v5 = vsel %vm908_vm10, %v3719_v63, %v3700_v10 }
 0x409   :  { %1974 = vmatpush.msra.mxu3 %v1602_v22  ;;  %1924 = vmatpush.msrb.mxu2 %v1318_v14  ;;  %v3775_v41 = vpop.permute.xlu0 %1432  ;;  %v1511_v22 = vmul.f32 %v1501_v42, %v1497_v21  ;;  %v1603_v10 = vmul.f32 %v1593_v16, %v1589_v5  ;;  %v4014_v14 = vld [vmem:[#allocation72_spill] sm:$0xff]  ;;  %v1597_v45 = vmul.f32 %v1593_v16, %v4019_v43 }
 0x40a   :  { %1997 = vmatpush.msra.mxu1 %v1273_v11  ;;  %v3778_v59 = vpop.permute.xlu1 %1430  ;;  %v1446_v49 = vsel %vm764_vm6, %v3775_v41, %v3767_v46  ;;  %v1266_v11 = vmul.f32 %v1262_v57, %v4013_v25  ;;  %v1509_v32 = vmul.f32 %v1501_v42, %v4014_v14 }
 0x40b   :  { %1975 = vmatpush.msra.mxu3 %v1600_v19  ;;  %1925 = vmatpush.msrb.mxu2 %v1316_v4  ;;  %v1462_v63 = vmul.f32 %v1454_v60, %v1446_v49  ;;  %v4015_v19 = vld [vmem:[#allocation67_spill] sm:$0xff] }
 0x40c   :  { %1998 = vmatpush.msra.mxu1 %v1271_v12  ;;  %v1601_v47 = vmul.f32 %v1593_v16, %v4015_v19  ;;  %v4016_v4 = vld [vmem:[#allocation55_spill] sm:$0xff]  ;;  %v1429_v12 = vpop.permute.xlu2 %1428 }
 0x40d   :  { %1976 = vmatpush.msra.mxu3 %v1598_v1  ;;  %1926 = vmatpush.msrb.mxu2 %v1314_v9  ;;  %v1507_v31 = vmul.f32 %v1501_v42, %v4016_v4  ;;  %v4017_v1 = vld [vmem:[#allocation51_spill] sm:$0xff] }
 0x40e   :  { %1999 = vmatpush.msra.mxu1 %v1269_v27  ;;  %v1599_v44 = vmul.f32 %v1593_v16, %v4017_v1  ;;  %v4018_v9 = vld [vmem:[#allocation35_spill] sm:$0xff] }
 0x40f   :  { %1977 = vmatpush.msra.mxu3 %v1596_v56  ;;  %1927 = vmatpush.msrb.mxu2 %v1312_v8  ;;  %v1505_v50 = vmul.f32 %v1501_v42, %v4018_v9  ;;  %v1450_v56 = vsel %vm764_vm6, %v3767_v46, %v3775_v41  ;;  %v4020_v46 = vld [vmem:[#allocation59_spill] sm:$0xff] }
 0x410   :  { %2000 = vmatpush.msra.mxu1 %v1267_v30  ;;  %1889 = vmatmul.f32.gmra.mxu3 %v3735_v62  ;;  %v1463_v57 = vmul.f32 %v1455_v29, %v1450_v56  ;;  %v4021_v30 = vld [vmem:[#allocation36_spill] sm:$0xff] }
 0x411   :  { %2008 = vmatpush.msrb.mxu3 %v1557_v36  ;;  %1928 = vmatpush.msrb.mxu2 %v1272_v40  ;;  %v1439_v7 = vpop.permute.xlu0 %1438  ;;  %v4026_v40 = vld [vmem:[#allocation19_spill] sm:$0xff] }
 0x412   :  { %2001 = vmatmul.f32.vlgmr.msra.gmra.mxu1 %v3594_v6  ;;  %v1443_v2 = vpop.permute.xlu1 %1442  ;;  %v1445_v53 = vsel %vm764_vm6, %v3778_v59, %v1439_v7  ;;  %v1449_v8 = vsel %vm764_vm6, %v1439_v7, %v3778_v59  ;;  %v4022_v59 = vld [vmem:[#allocation18_spill] sm:$0xff] }
 0x413   :  { %2009 = vmatpush.msrb.mxu3 %v1555_v39  ;;  %1929 = vmatpush.msrb.mxu2 %v1270_v58  ;;  %v1447_v35 = vsel %vm764_vm6, %v1435_v34, %v1443_v2  ;;  %v1460_v13 = vmul.f32 %v1454_v60, %v1445_v53  ;;  %v1451_v26 = vsel %vm764_vm6, %v1443_v2, %v1435_v34 }
 0x414   :  { %v1464_v54 = vmul.f32 %v1454_v60, %v1447_v35  ;;  %v1465_v33 = vmul.f32 %v1455_v29, %v1451_v26  ;;  %v1461_v41 = vmul.f32 %v1455_v29, %v1449_v8  ;;  %v1770_v2 = vpop.permute.xlu2 %1769 }
 0x415   :  { %2010 = vmatpush.msrb.mxu3 %v1553_v55  ;;  %1930 = vmatpush.msrb.mxu2 %v1268_v15 }
 0x416   :  { %1947 = vmatpush.msra.mxu0 %v1464_v54 }
 0x417   :  { %2011 = vmatpush.msrb.mxu3 %v1551_v0  ;;  %1931 = vmatpush.msrb.mxu2 %v1266_v11 }
 0x418   :  { %1932 = vmatmul.f32.vlgmr.msrb.gmra.mxu2 %v3594_v6  ;;  %1948 = vmatpush.msra.mxu0 %v1462_v63 }
 0x419   :  { %2012 = vmatpush.msrb.mxu3 %v1511_v22  ;;  %2043 = vmatpush.msra.mxu2 %v1603_v10  ;;  %v1765_v34 = vpop.permute.xlu0 %1764 }
 0x41a   :  { %2004 = vmatmul.f32.gmra.mxu1 %v3638_v48  ;;  %v1437_v20 = vpop.permute.xlu1 %1436  ;;  %1949 = vmatpush.msra.mxu0 %v1460_v13 }
 0x41b   :  { %2013 = vmatpush.msrb.mxu3 %v1509_v32  ;;  %2044 = vmatpush.msra.mxu2 %v1601_v47  ;;  %v1444_v6 = vsel %vm764_vm6, %v1429_v12, %v1437_v20  ;;  %v1448_v17 = vsel %vm764_vm6, %v1437_v20, %v1429_v12 }
 0x41c   :  { %v1458_v27 = vmul.f32 %v1454_v60, %v1444_v6  ;;  %2091 = vmatmul.msk.f32.vlgmr.msra.gmra.mxu3 %vm188_vm4, %v3673_v18  ;;  %v1459_v36 = vmul.f32 %v1455_v29, %v1448_v17 }
 0x41d   :  { %2014 = vmatpush.msrb.mxu3 %v1507_v31  ;;  %2045 = vmatpush.msra.mxu2 %v1599_v44 }
 0x41e   :  { %1950 = vmatpush.msra.mxu0 %v1458_v27 }
 0x41f   :  { %2015 = vmatpush.msrb.mxu3 %v1505_v50  ;;  %2046 = vmatpush.msra.mxu2 %v1597_v45 }
 0x420   :  { %1935 = vmatmul.f32.gmra.mxu2 %v3638_v48  ;;  %1951 = vmatpush.msra.mxu0 %v4020_v46  ;;  %v4024_v48 = vld [vmem:[#allocation58_spill] sm:$0xff] }
 0x421   :  { %2016 = vmatpush.msrb.mxu3 %v1465_v33 }
 0x422   :  { %1952 = vmatpush.msra.mxu0 %v4021_v30 }
 0x423   :  { %2017 = vmatpush.msrb.mxu3 %v1463_v57 }
 0x424   :  { %2092 = vmatmul.msk.f32.gmra.mxu3 %vm188_vm4, %v3729_v51  ;;  %1953 = vmatpush.msra.mxu0 %v4022_v59 }
 0x425   :  { %2018 = vmatpush.msrb.mxu3 %v1461_v41 }
 0x426   :  { %1954 = vmatpush.msra.mxu0 %v4023_v24 }
 0x427   :  { %2019 = vmatpush.msrb.mxu3 %v1459_v36  ;;  %1955 = vmatmul.f32.vlgmr.msra.gmra.mxu0 %v3685_v37 }
 0x428   :  { %2093 = vmatmul.msk.f32.vlgmr.msra.gmra.mxu2 %vm188_vm4, %v3673_v18 }
 0x429   :  { %2020 = vmatpush.msrb.mxu3 %v4024_v48 }
 0x42b   :  { %2021 = vmatpush.msrb.mxu3 %v4025_v52 }
 0x42d   :  { %2022 = vmatpush.msrb.mxu3 %v4026_v40 }
 0x42f   :  { %2023 = vmatpush.msrb.mxu3 %v4027_v61  ;;  %1958 = vmatmul.f32.gmra.mxu0 %v3735_v62 }
 0x430   :  { %2024 = vmatmul.f32.vlgmr.msrb.gmra.mxu3 %v3685_v37  ;;  %2094 = vmatmul.msk.f32.gmra.mxu2 %vm188_vm4, %v3729_v51 }
 0x438   :  { %2027 = vmatmul.f32.gmra.mxu3 %v3735_v62 }
 0x462   :  { %v1795_v39 = vpop.f32.mrf.mxu1 }
 0x463   :  { %v1796_v58 = vadd.f32 %v1795_v39, %v1765_v34  ;;  %v1864_v15 = vpop.f32.mrf.mxu0 }
 0x464   :  { %v1865_v51 = vadd.f32 %v1864_v15, %v1765_v34 }
 0x46b   :  { %v1798_v60 = vpop.f32.mrf.mxu1  ;;  %v1867_v5 = vpop.f32.mrf.mxu0 }
 0x46c   :  { %v1799_v42 = vadd.f32 %v1798_v60, %v1770_v2  ;;  %v1868_v49 = vadd.f32 %v1867_v5, %v1770_v2 }
 0x477   :  { %v1910_v62 = vpop.f32.mrf.mxu1 }
 0x479   :  { %v1841_v28 = vpop.f32.mrf.mxu3 }
 0x47b   :  { %v1818_v18 = vpop.f32.mrf.mxu2 }
 0x47c   :  { %v1819_v23 = vadd.f32 %v1818_v18, %v1796_v58 }
 0x47e   :  { %v1842_v55 = vadd.f32 %v1841_v28, %v1819_v23 }
 0x480   :  { %2054 = vst [vmem:[#allocation8] sm:$0xff] %v1842_v55 }
 0x482   :  { %v1844_v21 = vpop.f32.mrf.mxu3 }
 0x483   :  { %v1821_v37 = vpop.f32.mrf.mxu2 }
 0x484   :  { %v1822_v3 = vadd.f32 %v1821_v37, %v1799_v42 }
 0x485   :  { %v1913_v25 = vpop.f32.mrf.mxu1 }
 0x486   :  { %v1845_v35 = vadd.f32 %v1844_v21, %v1822_v3 }
 0x488   :  { %2056 = vst [vmem:[#allocation8 + $0x10] sm:$0xff] %v1845_v35 }
 0x48b   :  { %v1887_v7 = vpop.f32.mrf.mxu3 }
 0x48c   :  { %v1888_v38 = vadd.f32 %v1887_v7, %v1865_v51 }
 0x48e   :  { %v1911_v0 = vadd.f32 %v1910_v62, %v1888_v38 }
 0x48f   :  { %v2002_v13 = vpop.f32.mrf.mxu1 }
 0x490   :  { %2055 = vst [vmem:[#allocation8 + $0x8] sm:$0xff] %v1911_v0  ;;  %v2003_v44 = vadd.f32 %v2002_v13, %v1765_v34 }
 0x493   :  { %v1890_v54 = vpop.f32.mrf.mxu3 }
 0x494   :  { %v1891_v16 = vadd.f32 %v1890_v54, %v1868_v49 }
 0x496   :  { %v1914_v11 = vadd.f32 %v1913_v25, %v1891_v16 }
 0x497   :  { %v2005_v50 = vpop.f32.mrf.mxu1 }
 0x498   :  { %2057 = vst [vmem:[#allocation8 + $0x18] sm:$0xff] %v1914_v11  ;;  %v2006_v29 = vadd.f32 %v2005_v50, %v1770_v2 }
 0x49b   :  { %v1933_v22 = vpop.f32.mrf.mxu2 }
 0x49c   :  { %v1934_v10 = vadd.f32 %v1933_v22, %v1765_v34 }
 0x49f   :  { %v1979_v53 = vpop.f32.mrf.mxu3 }
 0x4a3   :  { %v1936_v32 = vpop.f32.mrf.mxu2 }
 0x4a4   :  { %v1956_v63 = vpop.f32.mrf.mxu0  ;;  %v1937_v4 = vadd.f32 %v1936_v32, %v1770_v2 }
 0x4a5   :  { %v1957_v14 = vadd.f32 %v1956_v63, %v1934_v10 }
 0x4a7   :  { %v1980_v19 = vadd.f32 %v1979_v53, %v1957_v14  ;;  %v1982_v47 = vpop.f32.mrf.mxu3 }
 0x4a9   :  { %2059 = vst [vmem:[#allocation8 + $0x20] sm:$0xff] %v1980_v19 }
 0x4ab   :  { %v2048_v1 = vpop.f32.mrf.mxu2 }
 0x4ac   :  { %v1959_v31 = vpop.f32.mrf.mxu0 }
 0x4ad   :  { %v1960_v12 = vadd.f32 %v1959_v31, %v1937_v4 }
 0x4af   :  { %v1983_v20 = vadd.f32 %v1982_v47, %v1960_v12 }
 0x4b1   :  { %2061 = vst [vmem:[#allocation8 + $0x30] sm:$0xff] %v1983_v20 }
 0x4b3   :  { %v2025_v26 = vpop.f32.mrf.mxu3  ;;  %v2051_v43 = vpop.f32.mrf.mxu2 }
 0x4b4   :  { %v2026_v6 = vadd.f32 %v2025_v26, %v2003_v44 }
 0x4b6   :  { %v2049_v9 = vadd.f32 %v2048_v1, %v2026_v6 }
 0x4b8   :  { %2060 = vst [vmem:[#allocation8 + $0x28] sm:$0xff] %v2049_v9 }
 0x4bb   :  { %v2028_v27 = vpop.f32.mrf.mxu3 }
 0x4bc   :  { %v2029_v45 = vadd.f32 %v2028_v27, %v2006_v29 }
 0x4be   :  { %v2052_v56 = vadd.f32 %v2051_v43, %v2029_v45 }
 0x4c0   :  { %2062 = vst [vmem:[#allocation8 + $0x38] sm:$0xff] %v2052_v56 }
 0x4c1   :  { %2075 = dma.vmem_to_hbm [thread:$0]  %s2068_s29, 1024, %s2070_s11, [#allocation5], %s2276_s9, %s2276_s9, %s2277_s10  }
 0x4c2   :  { %2273 = dma.done.wait [#allocation5], 1024  }
 0x4c3   :  { %2274 = vsyncadd [#allocation5], 4294966272 }
 0x4c4   :  { %2080 = vsyncpa [#allocation4], 1 }
 0x4c5   :  { %2081 = vsyncpa [#allocation7], 1 }
 0x4c6   :  { %2082 = vsyncpa [#allocation5], 1 }

</bundles_post_ra>
